<compile_context>
chip_gen: v7x
topology: tpu7x:2x2x1
jax: 0.10.0
libtpu: 0.0.40
codegen_flags: <defaults>
</compile_context>

<pallas_src>
import jax
import jax.numpy as jnp
from jax import lax
from jax.experimental import pallas as pl
from jax.experimental.pallas import tpu as pltpu

# ---------------------------------------------------------------------------
# Sizes (match the PyTorch module); hiddensize3 = 400 = 16*5*5 implies 28x28 input.
# ---------------------------------------------------------------------------
INPUTSIZE = 1
HIDDEN1 = 6
HIDDEN2 = 16
HIDDEN3 = 400
HIDDEN4 = 120
HIDDEN5 = 84
OUTPUTSIZE = 10
KERNELSIZE = 5
POOLSIZE = 2

IMG = 28
LANES = 128
K1 = INPUTSIZE * KERNELSIZE * KERNELSIZE        # 25
K2 = HIDDEN1 * KERNELSIZE * KERNELSIZE          # 150
K1_PAD = 128                                    # lane-dense LHS for conv1
K2_PAD = 256                                    # lane-dense LHS for conv2
CONV1_ROWS = IMG * IMG                          # 784 im2col rows / image
POOL1_ROWS = (IMG // 2) * (IMG // 2)            # 196
POOL1_ROWS_PAD = 200                            # multiple of 8
CONV2_OUT = IMG // 2 - KERNELSIZE + 1           # 10
CONV2_ROWS = CONV2_OUT * CONV2_OUT              # 100
CONV2_ROWS_PAD = 104                            # multiple of 8
POOL2_SIDE = CONV2_OUT // 2                     # 5
POOL2_ROWS = POOL2_SIDE * POOL2_SIDE            # 25
POOL2_ROWS_PAD = 32                             # multiple of 8
COMPUTE_DTYPE = jnp.bfloat16                    # MXU input dtype (accumulation is f32)


# ---------------------------------------------------------------------------
# Pallas kernels
# ---------------------------------------------------------------------------
def _conv1_pool_kernel(x_ref, w_ref, b_ref, p_ref, o_ref):
    """One image: sigmoid(patches @ W + b), then 2x2 avg-pool via pool-matrix matmul."""
    act = jnp.dot(x_ref[0], w_ref[...], preferred_element_type=jnp.float32)
    act = jax.nn.sigmoid(act + b_ref[...])                       # f32 epilogue (v5e-safe)
    pooled = jnp.dot(p_ref[...], act.astype(p_ref.dtype),
                     preferred_element_type=jnp.float32)         # (POOL1_ROWS_PAD, 128)
    o_ref[0] = pooled.astype(o_ref.dtype)                        # bf16 store


def conv1_pool(patches, w, bias, pool_mat):
    """patches: (B, CONV1_ROWS, K1_PAD) bf16 -> (B, POOL1_ROWS_PAD, 128) bf16."""
    B = patches.shape[0]
    return pl.pallas_call(
        _conv1_pool_kernel,
        out_shape=jax.ShapeDtypeStruct((B, POOL1_ROWS_PAD, LANES), COMPUTE_DTYPE),
        grid=(B,),
        in_specs=[
            pl.BlockSpec((1, CONV1_ROWS, K1_PAD), lambda i: (i, 0, 0)),
            pl.BlockSpec(w.shape, lambda i: (0, 0)),
            pl.BlockSpec(bias.shape, lambda i: (0, 0)),
            pl.BlockSpec(pool_mat.shape, lambda i: (0, 0)),
        ],
        out_specs=pl.BlockSpec((1, POOL1_ROWS_PAD, LANES), lambda i: (i, 0, 0)),
        compiler_params=pltpu.CompilerParams(dimension_semantics=("parallel",)),
    )(patches, w, bias, pool_mat)


def _conv2_pool_mlp_kernel(x_ref, wc_ref, bc_ref, p_ref,
                           w1_ref, b1_ref, w2_ref, b2_ref, w3_ref, b3_ref, o_ref):
    """One image: conv2 + sigmoid + 2x2 pool + linear1/sigmoid + linear2/sigmoid + linear3."""
    # conv2 as matmul over im2col rows
    act = jnp.dot(x_ref[0], wc_ref[...], preferred_element_type=jnp.float32)
    act = jax.nn.sigmoid(act + bc_ref[...])                      # (CONV2_ROWS_PAD, 128) f32
    # 2x2 average pool as matmul with the precomputed 0/0.25 matrix
    pooled = jnp.dot(p_ref[...], act.astype(p_ref.dtype),
                     preferred_element_type=jnp.float32)         # (POOL2_ROWS_PAD, 128) f32
    # linear1 over the NHWC-flattened 5x5x16 map WITHOUT reshaping the activation:
    #   h[j] = sum_s pooled[s, :] @ W1[s, :, j]  (W1 pre-permuted & zero-padded, so the
    #   0.5-valued padded channel lanes contribute exactly zero).
    h = b1_ref[...]                                              # (1, 128) f32
    for s in range(POOL2_ROWS):                                  # static unroll (25 tiny matmuls)
        h = h + jnp.dot(pooled[s:s + 1, :].astype(w1_ref.dtype), w1_ref[s],
                        preferred_element_type=jnp.float32)
    h = jax.nn.sigmoid(h)
    # linear2 + sigmoid
    h = jnp.dot(h.astype(w2_ref.dtype), w2_ref[...],
                preferred_element_type=jnp.float32) + b2_ref[...]
    h = jax.nn.sigmoid(h)
    # linear3 (no activation)
    out = jnp.dot(h.astype(w3_ref.dtype), w3_ref[...],
                  preferred_element_type=jnp.float32) + b3_ref[...]
    o_ref[0] = jnp.broadcast_to(out, (8, LANES)).astype(o_ref.dtype)


def _full_spec(a):
    n = a.ndim
    return pl.BlockSpec(a.shape, lambda i: (0,) * n)


def conv2_pool_mlp(patches, pr):
    """patches: (B, CONV2_ROWS_PAD, K2_PAD) bf16 -> (B, 8, 128) f32 (row 0 holds logits)."""
    B = patches.shape[0]
    return pl.pallas_call(
        _conv2_pool_mlp_kernel,
        out_shape=jax.ShapeDtypeStruct((B, 8, LANES), jnp.float32),
        grid=(B,),
        in_specs=[
            pl.BlockSpec((1, CONV2_ROWS_PAD, K2_PAD), lambda i: (i, 0, 0)),
            _full_spec(pr["c2_w"]), _full_spec(pr["c2_b"]), _full_spec(pr["pool2"]),
            _full_spec(pr["l1_w"]), _full_spec(pr["l1_b"]),
            _full_spec(pr["l2_w"]), _full_spec(pr["l2_b"]),
            _full_spec(pr["l3_w"]), _full_spec(pr["l3_b"]),
        ],
        out_specs=pl.BlockSpec((1, 8, LANES), lambda i: (i, 0, 0)),
        compiler_params=pltpu.CompilerParams(dimension_semantics=("parallel",)),
    )(patches, pr["c2_w"], pr["c2_b"], pr["pool2"],
      pr["l1_w"], pr["l1_b"], pr["l2_w"], pr["l2_b"], pr["l3_w"], pr["l3_b"])


# ---------------------------------------------------------------------------
# Parameters (PyTorch layout) and one-time preparation
# ---------------------------------------------------------------------------
def init_params(key):
    ks = jax.random.split(key, 10)
    s = 0.1
    return {
        "cnn1_w": jax.random.normal(ks[0], (HIDDEN1, INPUTSIZE, KERNELSIZE, KERNELSIZE), jnp.float32) * s,
        "cnn1_b": jax.random.normal(ks[1], (HIDDEN1,), jnp.float32) * s,
        "cnn2_w": jax.random.normal(ks[2], (HIDDEN2, HIDDEN1, KERNELSIZE, KERNELSIZE), jnp.float32) * s,
        "cnn2_b": jax.random.normal(ks[3], (HIDDEN2,), jnp.float32) * s,
        "lin1_w": jax.random.normal(ks[4], (HIDDEN4, HIDDEN3), jnp.float32) * s,
        "lin1_b": jax.random.normal(ks[5], (HIDDEN4,), jnp.float32) * s,
        "lin2_w": jax.random.normal(ks[6], (HIDDEN5, HIDDEN4), jnp.float32) * s,
        "lin2_b": jax.random.normal(ks[7], (HIDDEN5,), jnp.float32) * s,
        "lin3_w": jax.random.normal(ks[8], (OUTPUTSIZE, HIDDEN5), jnp.float32) * s,
        "lin3_b": jax.random.normal(ks[9], (OUTPUTSIZE,), jnp.float32) * s,
    }


def _pad2(a, rows, cols):
    return jnp.pad(a, ((0, rows - a.shape[0]), (0, cols - a.shape[1])))


def _bias_row(b):
    return jnp.pad(b, (0, LANES - b.shape[0])).reshape(1, LANES).astype(jnp.float32)


def _pool_matrix(h, w, rows_pad, cols_pad):
    """(rows_pad, cols_pad) matrix M with M[o, i] = 0.25 iff input pixel i (row-major of an
    h x w map) belongs to 2x2 output cell o (row-major of an h/2 x w/2 map)."""
    ho, wo = h // POOLSIZE, w // POOLSIZE
    o = jnp.arange(ho * wo)
    i = jnp.arange(h * w)
    oh, ow = o // wo, o % wo
    ih, iw = i // w, i % w
    m = ((ih[None, :] // POOLSIZE == oh[:, None]) & (iw[None, :] // POOLSIZE == ow[:, None]))
    m = m.astype(jnp.float32) * (1.0 / (POOLSIZE * POOLSIZE))
    return _pad2(m, rows_pad, cols_pad).astype(COMPUTE_DTYPE)


def prepare_params(p):
    """One-time transforms: transpose / permute / zero-pad / cast.  Never per step."""
    cd = COMPUTE_DTYPE
    # conv weights -> (K_pad, 128); im2col feature order is (cin, kh, kw) (channel-major),
    # matching weight.reshape(Cout, Cin*kh*kw).
    w1 = p["cnn1_w"].reshape(HIDDEN1, K1).T                                   # (25, 6)
    w2 = p["cnn2_w"].reshape(HIDDEN2, K2).T                                   # (150, 16)
    # linear1: PyTorch flattens NCHW (c, h, w); pooled map is (s = h*5 + w, c), so build
    # W1p[s, c, j] = lin1_w[j, c*25 + h*5 + w]; padded entries are zero.
    l1 = p["lin1_w"].reshape(HIDDEN4, HIDDEN2, POOL2_SIDE, POOL2_SIDE)        # (j, c, h, w)
    l1 = l1.transpose(2, 3, 1, 0).reshape(POOL2_ROWS, HIDDEN2, HIDDEN4)       # (s, c, j)
    l1 = jnp.pad(l1, ((0, POOL2_ROWS_PAD - POOL2_ROWS),
                      (0, LANES - HIDDEN2), (0, LANES - HIDDEN4)))
    return {
        "c1_w": _pad2(w1, K1_PAD, LANES).astype(cd), "c1_b": _bias_row(p["cnn1_b"]),
        "c2_w": _pad2(w2, K2_PAD, LANES).astype(cd), "c2_b": _bias_row(p["cnn2_b"]),
        "pool1": _pool_matrix(IMG, IMG, POOL1_ROWS_PAD, CONV1_ROWS),
        "pool2": _pool_matrix(CONV2_OUT, CONV2_OUT, POOL2_ROWS_PAD, CONV2_ROWS_PAD),
        "l1_w": l1.astype(cd),                                   "l1_b": _bias_row(p["lin1_b"]),
        "l2_w": _pad2(p["lin2_w"].T, LANES, LANES).astype(cd),   "l2_b": _bias_row(p["lin2_b"]),
        "l3_w": _pad2(p["lin3_w"].T, LANES, LANES).astype(cd),   "l3_b": _bias_row(p["lin3_b"]),
    }


# ---------------------------------------------------------------------------
# Forward pass (matches PyTorch Model.forward)
# ---------------------------------------------------------------------------
def _patches_nhwc(x, padding):
    """im2col as ONE fused XLA op; output feature order is (cin, kh, kw)."""
    return lax.conv_general_dilated_patches(
        x, filter_shape=(KERNELSIZE, KERNELSIZE), window_strides=(1, 1),
        padding=((padding, padding), (padding, padding)),
        dimension_numbers=("NHWC", "HWIO", "NHWC"))


def forward(prepared, x):
    """x: (B, 1, 28, 28) NCHW (PyTorch convention) -> (B, 10) f32 logits."""
    B = x.shape[0]
    x = jnp.transpose(x, (0, 2, 3, 1)).astype(COMPUTE_DTYPE)                 # (B,28,28,1)
    # conv1 + pool1 (Pallas kernel A)
    p1 = _patches_nhwc(x, padding=2).reshape(B, CONV1_ROWS, K1)
    p1 = jnp.pad(p1, ((0, 0), (0, 0), (0, K1_PAD - K1)))
    y1 = conv1_pool(p1, prepared["c1_w"], prepared["c1_b"], prepared["pool1"])
    x1 = y1[:, :POOL1_ROWS, :HIDDEN1].reshape(B, IMG // 2, IMG // 2, HIDDEN1)  # (B,14,14,6) bf16
    # conv2 + pool2 + linear1/2/3 (Pallas kernel B)
    p2 = _patches_nhwc(x1, padding=0).reshape(B, CONV2_ROWS, K2)
    p2 = jnp.pad(p2, ((0, 0), (0, CONV2_ROWS_PAD - CONV2_ROWS), (0, K2_PAD - K2)))
    out = conv2_pool_mlp(p2, prepared)                                       # (B, 8, 128) f32
    return out[:, 0, :OUTPUTSIZE]


# ---------------------------------------------------------------------------
# Pure-JAX f32 reference (for the in-script correctness check)
# ---------------------------------------------------------------------------
def _avg_pool2_nchw(x):
    b, c, h, w = x.shape
    return x.reshape(b, c, h // 2, 2, w // 2, 2).mean(axis=(3, 5))


def reference_forward(p, x):
    hp = lax.Precision.HIGHEST
    y = lax.conv_general_dilated(x, p["cnn1_w"], (1, 1), ((2, 2), (2, 2)),
                                 dimension_numbers=("NCHW", "OIHW", "NCHW"), precision=hp)
    y = jax.nn.sigmoid(y + p["cnn1_b"][None, :, None, None])
    y = _avg_pool2_nchw(y)
    y = lax.conv_general_dilated(y, p["cnn2_w"], (1, 1), ((0, 0), (0, 0)),
                                 dimension_numbers=("NCHW", "OIHW", "NCHW"), precision=hp)
    y = jax.nn.sigmoid(y + p["cnn2_b"][None, :, None, None])
    y = _avg_pool2_nchw(y)
    y = y.reshape(y.shape[0], -1)
    y = jax.nn.sigmoid(jnp.dot(y, p["lin1_w"].T, precision=hp) + p["lin1_b"])
    y = jax.nn.sigmoid(jnp.dot(y, p["lin2_w"].T, precision=hp) + p["lin2_b"])
    return jnp.dot(y, p["lin3_w"].T, precision=hp) + p["lin3_b"]


if __name__ == "__main__":
    key = jax.random.PRNGKey(0)
    pkey, xkey = jax.random.split(key)
    params = init_params(pkey)
    prepared = prepare_params(params)       # one-time weight prep (transpose/permute/pad/cast)
    x = jax.random.normal(xkey, (2, INPUTSIZE, IMG, IMG), jnp.float32)
    fwd = jax.jit(forward)
    out = jax.block_until_ready(fwd(prepared, x))
    assert out.shape == (2, OUTPUTSIZE), out.shape
    assert out.dtype == jnp.float32
    assert bool(jnp.all(jnp.isfinite(out)))
    # Correctness check vs a pure-JAX f32 reference: covers the im2col feature order,
    # the lin1 NCHW->NHWC weight permutation, and the bf16 MXU casts.
    ref = jax.block_until_ready(jax.jit(reference_forward)(params, x))
    err = float(jnp.max(jnp.abs(out - ref)))
    assert err < 5e-2, f"max |pallas - reference| = {err}"
    print("KERNEL_OK")
</pallas_src>

<mosaic_0001>
module attributes {stable_mosaic.version = 11 : i64} {
  func.func @_conv1_pool_kernel(%arg0: i32, %arg1: memref<1x784x128xbf16, #tpu.memory_space<vmem>>, %arg2: memref<128x128xbf16, #tpu.memory_space<vmem>>, %arg3: memref<1x128xf32, #tpu.memory_space<vmem>>, %arg4: memref<200x784xbf16, #tpu.memory_space<vmem>>, %arg5: memref<1x200x128xbf16, #tpu.memory_space<vmem>>) attributes {dimension_semantics = [#tpu.dimension_semantics<parallel>], iteration_bounds = array<i64: 2>, scalar_prefetch = 0 : i64, scratch_operands = 0 : i64, tpu.core_type = #tpu.core_type<tc>, window_params = [{transform_indices = @transform_0, window_bounds = array<i64: 1, 784, 128>}, {pipeline_mode = #tpu.pipeline_mode<synchronous>, transform_indices = @transform_1, window_bounds = array<i64: 128, 128>}, {pipeline_mode = #tpu.pipeline_mode<synchronous>, transform_indices = @transform_2, window_bounds = array<i64: 1, 128>}, {pipeline_mode = #tpu.pipeline_mode<synchronous>, transform_indices = @transform_3, window_bounds = array<i64: 200, 784>}, {transform_indices = @transform_4, window_bounds = array<i64: 1, 200, 128>}]} {
    %c0 = arith.constant 0 : index
    %c0_0 = arith.constant 0 : index
    %c0_1 = arith.constant 0 : index
    %0 = vector.load %arg1[%c0, %c0_0, %c0_1] : memref<1x784x128xbf16, #tpu.memory_space<vmem>>, vector<1x784x128xbf16>
    %1 = vector.shape_cast %0 : vector<1x784x128xbf16> to vector<784x128xbf16>
    %c0_2 = arith.constant 0 : index
    %c0_3 = arith.constant 0 : index
    %2 = vector.load %arg2[%c0_2, %c0_3] : memref<128x128xbf16, #tpu.memory_space<vmem>>, vector<128x128xbf16>
    %cst = arith.constant dense<0.000000e+00> : vector<784x128xf32>
    %3 = tpu.matmul %1, %2, %cst {dimension_numbers = #tpu.dot_dimension_numbers<[1], [0], [0], [1], [0, 0, 1, 1], [], []>} : vector<784x128xbf16>, vector<128x128xbf16>, vector<784x128xf32> -> vector<784x128xf32>
    %c0_4 = arith.constant 0 : index
    %c0_5 = arith.constant 0 : index
    %4 = vector.load %arg3[%c0_4, %c0_5] : memref<1x128xf32, #tpu.memory_space<vmem>>, vector<1x128xf32>
    %5 = vector.broadcast %4 : vector<1x128xf32> to vector<784x128xf32>
    %6 = arith.addf %3, %5 : vector<784x128xf32>
    %7 = arith.negf %6 : vector<784x128xf32>
    %8 = math.exp %7 : vector<784x128xf32>
    %cst_6 = arith.constant 1.000000e+00 : f32
    %9 = vector.broadcast %cst_6 : f32 to vector<784x128xf32>
    %10 = arith.addf %9, %8 : vector<784x128xf32>
    %11 = arith.divf %9, %10 : vector<784x128xf32>
    %c0_7 = arith.constant 0 : index
    %c0_8 = arith.constant 0 : index
    %12 = vector.load %arg4[%c0_7, %c0_8] : memref<200x784xbf16, #tpu.memory_space<vmem>>, vector<200x784xbf16>
    %13 = arith.truncf %11 : vector<784x128xf32> to vector<784x128xbf16>
    %cst_9 = arith.constant dense<0.000000e+00> : vector<200x128xf32>
    %14 = tpu.matmul %12, %13, %cst_9 {dimension_numbers = #tpu.dot_dimension_numbers<[1], [0], [0], [1], [0, 0, 1, 1], [], []>} : vector<200x784xbf16>, vector<784x128xbf16>, vector<200x128xf32> -> vector<200x128xf32>
    %15 = arith.truncf %14 : vector<200x128xf32> to vector<200x128xbf16>
    %c0_10 = arith.constant 0 : index
    %c0_11 = arith.constant 0 : index
    %c0_12 = arith.constant 0 : index
    %16 = vector.load %arg5[%c0_10, %c0_11, %c0_12] : memref<1x200x128xbf16, #tpu.memory_space<vmem>>, vector<1x200x128xbf16>
    %17 = vector.shape_cast %16 : vector<1x200x128xbf16> to vector<200x128xbf16>
    %18 = vector.shape_cast %15 : vector<200x128xbf16> to vector<1x200x128xbf16>
    tpu.vector_store %arg5[%c0_10, %c0_11, %c0_12], %18 {strides = array<i32>} : memref<1x200x128xbf16, #tpu.memory_space<vmem>>, vector<1x200x128xbf16>,
    return
  }
  func.func @transform_0(%arg0: i32) -> (i32, i32, i32) {
    %c0_i32 = arith.constant 0 : i32
    %c0_i32_0 = arith.constant 0 : i32
    %c0_i32_1 = arith.constant 0 : i32
    return %arg0, %c0_i32, %c0_i32_0 : i32, i32, i32
  }
  func.func @transform_1(%arg0: i32) -> (i32, i32) {
    %c0_i32 = arith.constant 0 : i32
    %c0_i32_0 = arith.constant 0 : i32
    %c0_i32_1 = arith.constant 0 : i32
    return %c0_i32, %c0_i32_0 : i32, i32
  }
  func.func @transform_2(%arg0: i32) -> (i32, i32) {
    %c0_i32 = arith.constant 0 : i32
    %c0_i32_0 = arith.constant 0 : i32
    %c0_i32_1 = arith.constant 0 : i32
    return %c0_i32, %c0_i32_0 : i32, i32
  }
  func.func @transform_3(%arg0: i32) -> (i32, i32) {
    %c0_i32 = arith.constant 0 : i32
    %c0_i32_0 = arith.constant 0 : i32
    %c0_i32_1 = arith.constant 0 : i32
    return %c0_i32, %c0_i32_0 : i32, i32
  }
  func.func @transform_4(%arg0: i32) -> (i32, i32, i32) {
    %c0_i32 = arith.constant 0 : i32
    %c0_i32_0 = arith.constant 0 : i32
    %c0_i32_1 = arith.constant 0 : i32
    return %arg0, %c0_i32, %c0_i32_0 : i32, i32, i32
  }
}

module attributes {stable_mosaic.version = 11 : i64} {
  func.func @_conv2_pool_mlp_kernel(%arg0: i32, %arg1: memref<1x104x256xbf16, #tpu.memory_space<vmem>>, %arg2: memref<256x128xbf16, #tpu.memory_space<vmem>>, %arg3: memref<1x128xf32, #tpu.memory_space<vmem>>, %arg4: memref<32x104xbf16, #tpu.memory_space<vmem>>, %arg5: memref<32x128x128xbf16, #tpu.memory_space<vmem>>, %arg6: memref<1x128xf32, #tpu.memory_space<vmem>>, %arg7: memref<128x128xbf16, #tpu.memory_space<vmem>>, %arg8: memref<1x128xf32, #tpu.memory_space<vmem>>, %arg9: memref<128x128xbf16, #tpu.memory_space<vmem>>, %arg10: memref<1x128xf32, #tpu.memory_space<vmem>>, %arg11: memref<1x8x128xf32, #tpu.memory_space<vmem>>) attributes {dimension_semantics = [#tpu.dimension_semantics<parallel>], iteration_bounds = array<i64: 2>, scalar_prefetch = 0 : i64, scratch_operands = 0 : i64, tpu.core_type = #tpu.core_type<tc>, window_params = [{transform_indices = @transform_0, window_bounds = array<i64: 1, 104, 256>}, {pipeline_mode = #tpu.pipeline_mode<synchronous>, transform_indices = @transform_1, window_bounds = array<i64: 256, 128>}, {pipeline_mode = #tpu.pipeline_mode<synchronous>, transform_indices = @transform_2, window_bounds = array<i64: 1, 128>}, {pipeline_mode = #tpu.pipeline_mode<synchronous>, transform_indices = @transform_3, window_bounds = array<i64: 32, 104>}, {pipeline_mode = #tpu.pipeline_mode<synchronous>, transform_indices = @transform_4, window_bounds = array<i64: 32, 128, 128>}, {pipeline_mode = #tpu.pipeline_mode<synchronous>, transform_indices = @transform_5, window_bounds = array<i64: 1, 128>}, {pipeline_mode = #tpu.pipeline_mode<synchronous>, transform_indices = @transform_6, window_bounds = array<i64: 128, 128>}, {pipeline_mode = #tpu.pipeline_mode<synchronous>, transform_indices = @transform_7, window_bounds = array<i64: 1, 128>}, {pipeline_mode = #tpu.pipeline_mode<synchronous>, transform_indices = @transform_8, window_bounds = array<i64: 128, 128>}, {pipeline_mode = #tpu.pipeline_mode<synchronous>, transform_indices = @transform_9, window_bounds = array<i64: 1, 128>}, {transform_indices = @transform_10, window_bounds = array<i64: 1, 8, 128>}]} {
    %c0 = arith.constant 0 : index
    %c0_0 = arith.constant 0 : index
    %c0_1 = arith.constant 0 : index
    %0 = vector.load %arg1[%c0, %c0_0, %c0_1] : memref<1x104x256xbf16, #tpu.memory_space<vmem>>, vector<1x104x256xbf16>
    %1 = vector.shape_cast %0 : vector<1x104x256xbf16> to vector<104x256xbf16>
    %c0_2 = arith.constant 0 : index
    %c0_3 = arith.constant 0 : index
    %2 = vector.load %arg2[%c0_2, %c0_3] : memref<256x128xbf16, #tpu.memory_space<vmem>>, vector<256x128xbf16>
    %cst = arith.constant dense<0.000000e+00> : vector<104x128xf32>
    %3 = tpu.matmul %1, %2, %cst {dimension_numbers = #tpu.dot_dimension_numbers<[1], [0], [0], [1], [0, 0, 1, 1], [], []>} : vector<104x256xbf16>, vector<256x128xbf16>, vector<104x128xf32> -> vector<104x128xf32>
    %c0_4 = arith.constant 0 : index
    %c0_5 = arith.constant 0 : index
    %4 = vector.load %arg3[%c0_4, %c0_5] : memref<1x128xf32, #tpu.memory_space<vmem>>, vector<1x128xf32>
    %5 = vector.broadcast %4 : vector<1x128xf32> to vector<104x128xf32>
    %6 = arith.addf %3, %5 : vector<104x128xf32>
    %7 = arith.negf %6 : vector<104x128xf32>
    %8 = math.exp %7 : vector<104x128xf32>
    %cst_6 = arith.constant 1.000000e+00 : f32
    %9 = vector.broadcast %cst_6 : f32 to vector<104x128xf32>
    %10 = arith.addf %9, %8 : vector<104x128xf32>
    %11 = arith.divf %9, %10 : vector<104x128xf32>
    %c0_7 = arith.constant 0 : index
    %c0_8 = arith.constant 0 : index
    %12 = vector.load %arg4[%c0_7, %c0_8] : memref<32x104xbf16, #tpu.memory_space<vmem>>, vector<32x104xbf16>
    %13 = arith.truncf %11 : vector<104x128xf32> to vector<104x128xbf16>
    %cst_9 = arith.constant dense<0.000000e+00> : vector<32x128xf32>
    %14 = tpu.matmul %12, %13, %cst_9 {dimension_numbers = #tpu.dot_dimension_numbers<[1], [0], [0], [1], [0, 0, 1, 1], [], []>} : vector<32x104xbf16>, vector<104x128xbf16>, vector<32x128xf32> -> vector<32x128xf32>
    %c0_10 = arith.constant 0 : index
    %c0_11 = arith.constant 0 : index
    %15 = vector.load %arg6[%c0_10, %c0_11] : memref<1x128xf32, #tpu.memory_space<vmem>>, vector<1x128xf32>
    %16 = vector.extract_strided_slice %14 {offsets = [0, 0], sizes = [1, 128], strides = [1, 1]} : vector<32x128xf32> to vector<1x128xf32>
    %17 = arith.truncf %16 : vector<1x128xf32> to vector<1x128xbf16>
    %c0_12 = arith.constant 0 : index
    %c0_13 = arith.constant 0 : index
    %c0_14 = arith.constant 0 : index
    %18 = vector.load %arg5[%c0_12, %c0_13, %c0_14] : memref<32x128x128xbf16, #tpu.memory_space<vmem>>, vector<1x128x128xbf16>
    %19 = vector.shape_cast %18 : vector<1x128x128xbf16> to vector<128x128xbf16>
    %cst_15 = arith.constant dense<0.000000e+00> : vector<1x128xf32>
    %20 = tpu.matmul %17, %19, %cst_15 {dimension_numbers = #tpu.dot_dimension_numbers<[1], [0], [0], [1], [0, 0, 1, 1], [], []>} : vector<1x128xbf16>, vector<128x128xbf16>, vector<1x128xf32> -> vector<1x128xf32>
    %21 = arith.addf %15, %20 : vector<1x128xf32>
    %22 = vector.extract_strided_slice %14 {offsets = [1, 0], sizes = [1, 128], strides = [1, 1]} : vector<32x128xf32> to vector<1x128xf32>
    %23 = arith.truncf %22 : vector<1x128xf32> to vector<1x128xbf16>
    %c1 = arith.constant 1 : index
    %c0_16 = arith.constant 0 : index
    %c0_17 = arith.constant 0 : index
    %24 = vector.load %arg5[%c1, %c0_16, %c0_17] : memref<32x128x128xbf16, #tpu.memory_space<vmem>>, vector<1x128x128xbf16>
    %25 = vector.shape_cast %24 : vector<1x128x128xbf16> to vector<128x128xbf16>
    %cst_18 = arith.constant dense<0.000000e+00> : vector<1x128xf32>
    %26 = tpu.matmul %23, %25, %cst_18 {dimension_numbers = #tpu.dot_dimension_numbers<[1], [0], [0], [1], [0, 0, 1, 1], [], []>} : vector<1x128xbf16>, vector<128x128xbf16>, vector<1x128xf32> -> vector<1x128xf32>
    %27 = arith.addf %21, %26 : vector<1x128xf32>
    %28 = vector.extract_strided_slice %14 {offsets = [2, 0], sizes = [1, 128], strides = [1, 1]} : vector<32x128xf32> to vector<1x128xf32>
    %29 = arith.truncf %28 : vector<1x128xf32> to vector<1x128xbf16>
    %c2 = arith.constant 2 : index
    %c0_19 = arith.constant 0 : index
    %c0_20 = arith.constant 0 : index
    %30 = vector.load %arg5[%c2, %c0_19, %c0_20] : memref<32x128x128xbf16, #tpu.memory_space<vmem>>, vector<1x128x128xbf16>
    %31 = vector.shape_cast %30 : vector<1x128x128xbf16> to vector<128x128xbf16>
    %cst_21 = arith.constant dense<0.000000e+00> : vector<1x128xf32>
    %32 = tpu.matmul %29, %31, %cst_21 {dimension_numbers = #tpu.dot_dimension_numbers<[1], [0], [0], [1], [0, 0, 1, 1], [], []>} : vector<1x128xbf16>, vector<128x128xbf16>, vector<1x128xf32> -> vector<1x128xf32>
    %33 = arith.addf %27, %32 : vector<1x128xf32>
    %34 = vector.extract_strided_slice %14 {offsets = [3, 0], sizes = [1, 128], strides = [1, 1]} : vector<32x128xf32> to vector<1x128xf32>
    %35 = arith.truncf %34 : vector<1x128xf32> to vector<1x128xbf16>
    %c3 = arith.constant 3 : index
    %c0_22 = arith.constant 0 : index
    %c0_23 = arith.constant 0 : index
    %36 = vector.load %arg5[%c3, %c0_22, %c0_23] : memref<32x128x128xbf16, #tpu.memory_space<vmem>>, vector<1x128x128xbf16>
    %37 = vector.shape_cast %36 : vector<1x128x128xbf16> to vector<128x128xbf16>
    %cst_24 = arith.constant dense<0.000000e+00> : vector<1x128xf32>
    %38 = tpu.matmul %35, %37, %cst_24 {dimension_numbers = #tpu.dot_dimension_numbers<[1], [0], [0], [1], [0, 0, 1, 1], [], []>} : vector<1x128xbf16>, vector<128x128xbf16>, vector<1x128xf32> -> vector<1x128xf32>
    %39 = arith.addf %33, %38 : vector<1x128xf32>
    %40 = vector.extract_strided_slice %14 {offsets = [4, 0], sizes = [1, 128], strides = [1, 1]} : vector<32x128xf32> to vector<1x128xf32>
    %41 = arith.truncf %40 : vector<1x128xf32> to vector<1x128xbf16>
    %c4 = arith.constant 4 : index
    %c0_25 = arith.constant 0 : index
    %c0_26 = arith.constant 0 : index
    %42 = vector.load %arg5[%c4, %c0_25, %c0_26] : memref<32x128x128xbf16, #tpu.memory_space<vmem>>, vector<1x128x128xbf16>
    %43 = vector.shape_cast %42 : vector<1x128x128xbf16> to vector<128x128xbf16>
    %cst_27 = arith.constant dense<0.000000e+00> : vector<1x128xf32>
    %44 = tpu.matmul %41, %43, %cst_27 {dimension_numbers = #tpu.dot_dimension_numbers<[1], [0], [0], [1], [0, 0, 1, 1], [], []>} : vector<1x128xbf16>, vector<128x128xbf16>, vector<1x128xf32> -> vector<1x128xf32>
    %45 = arith.addf %39, %44 : vector<1x128xf32>
    %46 = vector.extract_strided_slice %14 {offsets = [5, 0], sizes = [1, 128], strides = [1, 1]} : vector<32x128xf32> to vector<1x128xf32>
    %47 = arith.truncf %46 : vector<1x128xf32> to vector<1x128xbf16>
    %c5 = arith.constant 5 : index
    %c0_28 = arith.constant 0 : index
    %c0_29 = arith.constant 0 : index
    %48 = vector.load %arg5[%c5, %c0_28, %c0_29] : memref<32x128x128xbf16, #tpu.memory_space<vmem>>, vector<1x128x128xbf16>
    %49 = vector.shape_cast %48 : vector<1x128x128xbf16> to vector<128x128xbf16>
    %cst_30 = arith.constant dense<0.000000e+00> : vector<1x128xf32>
    %50 = tpu.matmul %47, %49, %cst_30 {dimension_numbers = #tpu.dot_dimension_numbers<[1], [0], [0], [1], [0, 0, 1, 1], [], []>} : vector<1x128xbf16>, vector<128x128xbf16>, vector<1x128xf32> -> vector<1x128xf32>
    %51 = arith.addf %45, %50 : vector<1x128xf32>
    %52 = vector.extract_strided_slice %14 {offsets = [6, 0], sizes = [1, 128], strides = [1, 1]} : vector<32x128xf32> to vector<1x128xf32>
    %53 = arith.truncf %52 : vector<1x128xf32> to vector<1x128xbf16>
    %c6 = arith.constant 6 : index
    %c0_31 = arith.constant 0 : index
    %c0_32 = arith.constant 0 : index
    %54 = vector.load %arg5[%c6, %c0_31, %c0_32] : memref<32x128x128xbf16, #tpu.memory_space<vmem>>, vector<1x128x128xbf16>
    %55 = vector.shape_cast %54 : vector<1x128x128xbf16> to vector<128x128xbf16>
    %cst_33 = arith.constant dense<0.000000e+00> : vector<1x128xf32>
    %56 = tpu.matmul %53, %55, %cst_33 {dimension_numbers = #tpu.dot_dimension_numbers<[1], [0], [0], [1], [0, 0, 1, 1], [], []>} : vector<1x128xbf16>, vector<128x128xbf16>, vector<1x128xf32> -> vector<1x128xf32>
    %57 = arith.addf %51, %56 : vector<1x128xf32>
    %58 = vector.extract_strided_slice %14 {offsets = [7, 0], sizes = [1, 128], strides = [1, 1]} : vector<32x128xf32> to vector<1x128xf32>
    %59 = arith.truncf %58 : vector<1x128xf32> to vector<1x128xbf16>
    %c7 = arith.constant 7 : index
    %c0_34 = arith.constant 0 : index
    %c0_35 = arith.constant 0 : index
    %60 = vector.load %arg5[%c7, %c0_34, %c0_35] : memref<32x128x128xbf16, #tpu.memory_space<vmem>>, vector<1x128x128xbf16>
    %61 = vector.shape_cast %60 : vector<1x128x128xbf16> to vector<128x128xbf16>
    %cst_36 = arith.constant dense<0.000000e+00> : vector<1x128xf32>
    %62 = tpu.matmul %59, %61, %cst_36 {dimension_numbers = #tpu.dot_dimension_numbers<[1], [0], [0], [1], [0, 0, 1, 1], [], []>} : vector<1x128xbf16>, vector<128x128xbf16>, vector<1x128xf32> -> vector<1x128xf32>
    %63 = arith.addf %57, %62 : vector<1x128xf32>
    %64 = vector.extract_strided_slice %14 {offsets = [8, 0], sizes = [1, 128], strides = [1, 1]} : vector<32x128xf32> to vector<1x128xf32>
    %65 = arith.truncf %64 : vector<1x128xf32> to vector<1x128xbf16>
    %c8 = arith.constant 8 : index
    %c0_37 = arith.constant 0 : index
    %c0_38 = arith.constant 0 : index
    %66 = vector.load %arg5[%c8, %c0_37, %c0_38] : memref<32x128x128xbf16, #tpu.memory_space<vmem>>, vector<1x128x128xbf16>
    %67 = vector.shape_cast %66 : vector<1x128x128xbf16> to vector<128x128xbf16>
    %cst_39 = arith.constant dense<0.000000e+00> : vector<1x128xf32>
    %68 = tpu.matmul %65, %67, %cst_39 {dimension_numbers = #tpu.dot_dimension_numbers<[1], [0], [0], [1], [0, 0, 1, 1], [], []>} : vector<1x128xbf16>, vector<128x128xbf16>, vector<1x128xf32> -> vector<1x128xf32>
    %69 = arith.addf %63, %68 : vector<1x128xf32>
    %70 = vector.extract_strided_slice %14 {offsets = [9, 0], sizes = [1, 128], strides = [1, 1]} : vector<32x128xf32> to vector<1x128xf32>
    %71 = arith.truncf %70 : vector<1x128xf32> to vector<1x128xbf16>
    %c9 = arith.constant 9 : index
    %c0_40 = arith.constant 0 : index
    %c0_41 = arith.constant 0 : index
    %72 = vector.load %arg5[%c9, %c0_40, %c0_41] : memref<32x128x128xbf16, #tpu.memory_space<vmem>>, vector<1x128x128xbf16>
    %73 = vector.shape_cast %72 : vector<1x128x128xbf16> to vector<128x128xbf16>
    %cst_42 = arith.constant dense<0.000000e+00> : vector<1x128xf32>
    %74 = tpu.matmul %71, %73, %cst_42 {dimension_numbers = #tpu.dot_dimension_numbers<[1], [0], [0], [1], [0, 0, 1, 1], [], []>} : vector<1x128xbf16>, vector<128x128xbf16>, vector<1x128xf32> -> vector<1x128xf32>
    %75 = arith.addf %69, %74 : vector<1x128xf32>
    %76 = vector.extract_strided_slice %14 {offsets = [10, 0], sizes = [1, 128], strides = [1, 1]} : vector<32x128xf32> to vector<1x128xf32>
    %77 = arith.truncf %76 : vector<1x128xf32> to vector<1x128xbf16>
    %c10 = arith.constant 10 : index
    %c0_43 = arith.constant 0 : index
    %c0_44 = arith.constant 0 : index
    %78 = vector.load %arg5[%c10, %c0_43, %c0_44] : memref<32x128x128xbf16, #tpu.memory_space<vmem>>, vector<1x128x128xbf16>
    %79 = vector.shape_cast %78 : vector<1x128x128xbf16> to vector<128x128xbf16>
    %cst_45 = arith.constant dense<0.000000e+00> : vector<1x128xf32>
    %80 = tpu.matmul %77, %79, %cst_45 {dimension_numbers = #tpu.dot_dimension_numbers<[1], [0], [0], [1], [0, 0, 1, 1], [], []>} : vector<1x128xbf16>, vector<128x128xbf16>, vector<1x128xf32> -> vector<1x128xf32>
    %81 = arith.addf %75, %80 : vector<1x128xf32>
    %82 = vector.extract_strided_slice %14 {offsets = [11, 0], sizes = [1, 128], strides = [1, 1]} : vector<32x128xf32> to vector<1x128xf32>
    %83 = arith.truncf %82 : vector<1x128xf32> to vector<1x128xbf16>
    %c11 = arith.constant 11 : index
    %c0_46 = arith.constant 0 : index
    %c0_47 = arith.constant 0 : index
    %84 = vector.load %arg5[%c11, %c0_46, %c0_47] : memref<32x128x128xbf16, #tpu.memory_space<vmem>>, vector<1x128x128xbf16>
    %85 = vector.shape_cast %84 : vector<1x128x128xbf16> to vector<128x128xbf16>
    %cst_48 = arith.constant dense<0.000000e+00> : vector<1x128xf32>
    %86 = tpu.matmul %83, %85, %cst_48 {dimension_numbers = #tpu.dot_dimension_numbers<[1], [0], [0], [1], [0, 0, 1, 1], [], []>} : vector<1x128xbf16>, vector<128x128xbf16>, vector<1x128xf32> -> vector<1x128xf32>
    %87 = arith.addf %81, %86 : vector<1x128xf32>
    %88 = vector.extract_strided_slice %14 {offsets = [12, 0], sizes = [1, 128], strides = [1, 1]} : vector<32x128xf32> to vector<1x128xf32>
    %89 = arith.truncf %88 : vector<1x128xf32> to vector<1x128xbf16>
    %c12 = arith.constant 12 : index
    %c0_49 = arith.constant 0 : index
    %c0_50 = arith.constant 0 : index
    %90 = vector.load %arg5[%c12, %c0_49, %c0_50] : memref<32x128x128xbf16, #tpu.memory_space<vmem>>, vector<1x128x128xbf16>
    %91 = vector.shape_cast %90 : vector<1x128x128xbf16> to vector<128x128xbf16>
    %cst_51 = arith.constant dense<0.000000e+00> : vector<1x128xf32>
    %92 = tpu.matmul %89, %91, %cst_51 {dimension_numbers = #tpu.dot_dimension_numbers<[1], [0], [0], [1], [0, 0, 1, 1], [], []>} : vector<1x128xbf16>, vector<128x128xbf16>, vector<1x128xf32> -> vector<1x128xf32>
    %93 = arith.addf %87, %92 : vector<1x128xf32>
    %94 = vector.extract_strided_slice %14 {offsets = [13, 0], sizes = [1, 128], strides = [1, 1]} : vector<32x128xf32> to vector<1x128xf32>
    %95 = arith.truncf %94 : vector<1x128xf32> to vector<1x128xbf16>
    %c13 = arith.constant 13 : index
    %c0_52 = arith.constant 0 : index
    %c0_53 = arith.constant 0 : index
    %96 = vector.load %arg5[%c13, %c0_52, %c0_53] : memref<32x128x128xbf16, #tpu.memory_space<vmem>>, vector<1x128x128xbf16>
    %97 = vector.shape_cast %96 : vector<1x128x128xbf16> to vector<128x128xbf16>
    %cst_54 = arith.constant dense<0.000000e+00> : vector<1x128xf32>
    %98 = tpu.matmul %95, %97, %cst_54 {dimension_numbers = #tpu.dot_dimension_numbers<[1], [0], [0], [1], [0, 0, 1, 1], [], []>} : vector<1x128xbf16>, vector<128x128xbf16>, vector<1x128xf32> -> vector<1x128xf32>
    %99 = arith.addf %93, %98 : vector<1x128xf32>
    %100 = vector.extract_strided_slice %14 {offsets = [14, 0], sizes = [1, 128], strides = [1, 1]} : vector<32x128xf32> to vector<1x128xf32>
    %101 = arith.truncf %100 : vector<1x128xf32> to vector<1x128xbf16>
    %c14 = arith.constant 14 : index
    %c0_55 = arith.constant 0 : index
    %c0_56 = arith.constant 0 : index
    %102 = vector.load %arg5[%c14, %c0_55, %c0_56] : memref<32x128x128xbf16, #tpu.memory_space<vmem>>, vector<1x128x128xbf16>
    %103 = vector.shape_cast %102 : vector<1x128x128xbf16> to vector<128x128xbf16>
    %cst_57 = arith.constant dense<0.000000e+00> : vector<1x128xf32>
    %104 = tpu.matmul %101, %103, %cst_57 {dimension_numbers = #tpu.dot_dimension_numbers<[1], [0], [0], [1], [0, 0, 1, 1], [], []>} : vector<1x128xbf16>, vector<128x128xbf16>, vector<1x128xf32> -> vector<1x128xf32>
    %105 = arith.addf %99, %104 : vector<1x128xf32>
    %106 = vector.extract_strided_slice %14 {offsets = [15, 0], sizes = [1, 128], strides = [1, 1]} : vector<32x128xf32> to vector<1x128xf32>
    %107 = arith.truncf %106 : vector<1x128xf32> to vector<1x128xbf16>
    %c15 = arith.constant 15 : index
    %c0_58 = arith.constant 0 : index
    %c0_59 = arith.constant 0 : index
    %108 = vector.load %arg5[%c15, %c0_58, %c0_59] : memref<32x128x128xbf16, #tpu.memory_space<vmem>>, vector<1x128x128xbf16>
    %109 = vector.shape_cast %108 : vector<1x128x128xbf16> to vector<128x128xbf16>
    %cst_60 = arith.constant dense<0.000000e+00> : vector<1x128xf32>
    %110 = tpu.matmul %107, %109, %cst_60 {dimension_numbers = #tpu.dot_dimension_numbers<[1], [0], [0], [1], [0, 0, 1, 1], [], []>} : vector<1x128xbf16>, vector<128x128xbf16>, vector<1x128xf32> -> vector<1x128xf32>
    %111 = arith.addf %105, %110 : vector<1x128xf32>
    %112 = vector.extract_strided_slice %14 {offsets = [16, 0], sizes = [1, 128], strides = [1, 1]} : vector<32x128xf32> to vector<1x128xf32>
    %113 = arith.truncf %112 : vector<1x128xf32> to vector<1x128xbf16>
    %c16 = arith.constant 16 : index
    %c0_61 = arith.constant 0 : index
    %c0_62 = arith.constant 0 : index
    %114 = vector.load %arg5[%c16, %c0_61, %c0_62] : memref<32x128x128xbf16, #tpu.memory_space<vmem>>, vector<1x128x128xbf16>
    %115 = vector.shape_cast %114 : vector<1x128x128xbf16> to vector<128x128xbf16>
    %cst_63 = arith.constant dense<0.000000e+00> : vector<1x128xf32>
    %116 = tpu.matmul %113, %115, %cst_63 {dimension_numbers = #tpu.dot_dimension_numbers<[1], [0], [0], [1], [0, 0, 1, 1], [], []>} : vector<1x128xbf16>, vector<128x128xbf16>, vector<1x128xf32> -> vector<1x128xf32>
    %117 = arith.addf %111, %116 : vector<1x128xf32>
    %118 = vector.extract_strided_slice %14 {offsets = [17, 0], sizes = [1, 128], strides = [1, 1]} : vector<32x128xf32> to vector<1x128xf32>
    %119 = arith.truncf %118 : vector<1x128xf32> to vector<1x128xbf16>
    %c17 = arith.constant 17 : index
    %c0_64 = arith.constant 0 : index
    %c0_65 = arith.constant 0 : index
    %120 = vector.load %arg5[%c17, %c0_64, %c0_65] : memref<32x128x128xbf16, #tpu.memory_space<vmem>>, vector<1x128x128xbf16>
    %121 = vector.shape_cast %120 : vector<1x128x128xbf16> to vector<128x128xbf16>
    %cst_66 = arith.constant dense<0.000000e+00> : vector<1x128xf32>
    %122 = tpu.matmul %119, %121, %cst_66 {dimension_numbers = #tpu.dot_dimension_numbers<[1], [0], [0], [1], [0, 0, 1, 1], [], []>} : vector<1x128xbf16>, vector<128x128xbf16>, vector<1x128xf32> -> vector<1x128xf32>
    %123 = arith.addf %117, %122 : vector<1x128xf32>
    %124 = vector.extract_strided_slice %14 {offsets = [18, 0], sizes = [1, 128], strides = [1, 1]} : vector<32x128xf32> to vector<1x128xf32>
    %125 = arith.truncf %124 : vector<1x128xf32> to vector<1x128xbf16>
    %c18 = arith.constant 18 : index
    %c0_67 = arith.constant 0 : index
    %c0_68 = arith.constant 0 : index
    %126 = vector.load %arg5[%c18, %c0_67, %c0_68] : memref<32x128x128xbf16, #tpu.memory_space<vmem>>, vector<1x128x128xbf16>
    %127 = vector.shape_cast %126 : vector<1x128x128xbf16> to vector<128x128xbf16>
    %cst_69 = arith.constant dense<0.000000e+00> : vector<1x128xf32>
    %128 = tpu.matmul %125, %127, %cst_69 {dimension_numbers = #tpu.dot_dimension_numbers<[1], [0], [0], [1], [0, 0, 1, 1], [], []>} : vector<1x128xbf16>, vector<128x128xbf16>, vector<1x128xf32> -> vector<1x128xf32>
    %129 = arith.addf %123, %128 : vector<1x128xf32>
    %130 = vector.extract_strided_slice %14 {offsets = [19, 0], sizes = [1, 128], strides = [1, 1]} : vector<32x128xf32> to vector<1x128xf32>
    %131 = arith.truncf %130 : vector<1x128xf32> to vector<1x128xbf16>
    %c19 = arith.constant 19 : index
    %c0_70 = arith.constant 0 : index
    %c0_71 = arith.constant 0 : index
    %132 = vector.load %arg5[%c19, %c0_70, %c0_71] : memref<32x128x128xbf16, #tpu.memory_space<vmem>>, vector<1x128x128xbf16>
    %133 = vector.shape_cast %132 : vector<1x128x128xbf16> to vector<128x128xbf16>
    %cst_72 = arith.constant dense<0.000000e+00> : vector<1x128xf32>
    %134 = tpu.matmul %131, %133, %cst_72 {dimension_numbers = #tpu.dot_dimension_numbers<[1], [0], [0], [1], [0, 0, 1, 1], [], []>} : vector<1x128xbf16>, vector<128x128xbf16>, vector<1x128xf32> -> vector<1x128xf32>
    %135 = arith.addf %129, %134 : vector<1x128xf32>
    %136 = vector.extract_strided_slice %14 {offsets = [20, 0], sizes = [1, 128], strides = [1, 1]} : vector<32x128xf32> to vector<1x128xf32>
    %137 = arith.truncf %136 : vector<1x128xf32> to vector<1x128xbf16>
    %c20 = arith.constant 20 : index
    %c0_73 = arith.constant 0 : index
    %c0_74 = arith.constant 0 : index
    %138 = vector.load %arg5[%c20, %c0_73, %c0_74] : memref<32x128x128xbf16, #tpu.memory_space<vmem>>, vector<1x128x128xbf16>
    %139 = vector.shape_cast %138 : vector<1x128x128xbf16> to vector<128x128xbf16>
    %cst_75 = arith.constant dense<0.000000e+00> : vector<1x128xf32>
    %140 = tpu.matmul %137, %139, %cst_75 {dimension_numbers = #tpu.dot_dimension_numbers<[1], [0], [0], [1], [0, 0, 1, 1], [], []>} : vector<1x128xbf16>, vector<128x128xbf16>, vector<1x128xf32> -> vector<1x128xf32>
    %141 = arith.addf %135, %140 : vector<1x128xf32>
    %142 = vector.extract_strided_slice %14 {offsets = [21, 0], sizes = [1, 128], strides = [1, 1]} : vector<32x128xf32> to vector<1x128xf32>
    %143 = arith.truncf %142 : vector<1x128xf32> to vector<1x128xbf16>
    %c21 = arith.constant 21 : index
    %c0_76 = arith.constant 0 : index
    %c0_77 = arith.constant 0 : index
    %144 = vector.load %arg5[%c21, %c0_76, %c0_77] : memref<32x128x128xbf16, #tpu.memory_space<vmem>>, vector<1x128x128xbf16>
    %145 = vector.shape_cast %144 : vector<1x128x128xbf16> to vector<128x128xbf16>
    %cst_78 = arith.constant dense<0.000000e+00> : vector<1x128xf32>
    %146 = tpu.matmul %143, %145, %cst_78 {dimension_numbers = #tpu.dot_dimension_numbers<[1], [0], [0], [1], [0, 0, 1, 1], [], []>} : vector<1x128xbf16>, vector<128x128xbf16>, vector<1x128xf32> -> vector<1x128xf32>
    %147 = arith.addf %141, %146 : vector<1x128xf32>
    %148 = vector.extract_strided_slice %14 {offsets = [22, 0], sizes = [1, 128], strides = [1, 1]} : vector<32x128xf32> to vector<1x128xf32>
    %149 = arith.truncf %148 : vector<1x128xf32> to vector<1x128xbf16>
    %c22 = arith.constant 22 : index
    %c0_79 = arith.constant 0 : index
    %c0_80 = arith.constant 0 : index
    %150 = vector.load %arg5[%c22, %c0_79, %c0_80] : memref<32x128x128xbf16, #tpu.memory_space<vmem>>, vector<1x128x128xbf16>
    %151 = vector.shape_cast %150 : vector<1x128x128xbf16> to vector<128x128xbf16>
    %cst_81 = arith.constant dense<0.000000e+00> : vector<1x128xf32>
    %152 = tpu.matmul %149, %151, %cst_81 {dimension_numbers = #tpu.dot_dimension_numbers<[1], [0], [0], [1], [0, 0, 1, 1], [], []>} : vector<1x128xbf16>, vector<128x128xbf16>, vector<1x128xf32> -> vector<1x128xf32>
    %153 = arith.addf %147, %152 : vector<1x128xf32>
    %154 = vector.extract_strided_slice %14 {offsets = [23, 0], sizes = [1, 128], strides = [1, 1]} : vector<32x128xf32> to vector<1x128xf32>
    %155 = arith.truncf %154 : vector<1x128xf32> to vector<1x128xbf16>
    %c23 = arith.constant 23 : index
    %c0_82 = arith.constant 0 : index
    %c0_83 = arith.constant 0 : index
    %156 = vector.load %arg5[%c23, %c0_82, %c0_83] : memref<32x128x128xbf16, #tpu.memory_space<vmem>>, vector<1x128x128xbf16>
    %157 = vector.shape_cast %156 : vector<1x128x128xbf16> to vector<128x128xbf16>
    %cst_84 = arith.constant dense<0.000000e+00> : vector<1x128xf32>
    %158 = tpu.matmul %155, %157, %cst_84 {dimension_numbers = #tpu.dot_dimension_numbers<[1], [0], [0], [1], [0, 0, 1, 1], [], []>} : vector<1x128xbf16>, vector<128x128xbf16>, vector<1x128xf32> -> vector<1x128xf32>
    %159 = arith.addf %153, %158 : vector<1x128xf32>
    %160 = vector.extract_strided_slice %14 {offsets = [24, 0], sizes = [1, 128], strides = [1, 1]} : vector<32x128xf32> to vector<1x128xf32>
    %161 = arith.truncf %160 : vector<1x128xf32> to vector<1x128xbf16>
    %c24 = arith.constant 24 : index
    %c0_85 = arith.constant 0 : index
    %c0_86 = arith.constant 0 : index
    %162 = vector.load %arg5[%c24, %c0_85, %c0_86] : memref<32x128x128xbf16, #tpu.memory_space<vmem>>, vector<1x128x128xbf16>
    %163 = vector.shape_cast %162 : vector<1x128x128xbf16> to vector<128x128xbf16>
    %cst_87 = arith.constant dense<0.000000e+00> : vector<1x128xf32>
    %164 = tpu.matmul %161, %163, %cst_87 {dimension_numbers = #tpu.dot_dimension_numbers<[1], [0], [0], [1], [0, 0, 1, 1], [], []>} : vector<1x128xbf16>, vector<128x128xbf16>, vector<1x128xf32> -> vector<1x128xf32>
    %165 = arith.addf %159, %164 : vector<1x128xf32>
    %166 = arith.negf %165 : vector<1x128xf32>
    %167 = math.exp %166 : vector<1x128xf32>
    %cst_88 = arith.constant 1.000000e+00 : f32
    %168 = vector.broadcast %cst_88 : f32 to vector<1x128xf32>
    %169 = arith.addf %168, %167 : vector<1x128xf32>
    %170 = arith.divf %168, %169 : vector<1x128xf32>
    %171 = arith.truncf %170 : vector<1x128xf32> to vector<1x128xbf16>
    %c0_89 = arith.constant 0 : index
    %c0_90 = arith.constant 0 : index
    %172 = vector.load %arg7[%c0_89, %c0_90] : memref<128x128xbf16, #tpu.memory_space<vmem>>, vector<128x128xbf16>
    %cst_91 = arith.constant dense<0.000000e+00> : vector<1x128xf32>
    %173 = tpu.matmul %171, %172, %cst_91 {dimension_numbers = #tpu.dot_dimension_numbers<[1], [0], [0], [1], [0, 0, 1, 1], [], []>} : vector<1x128xbf16>, vector<128x128xbf16>, vector<1x128xf32> -> vector<1x128xf32>
    %c0_92 = arith.constant 0 : index
    %c0_93 = arith.constant 0 : index
    %174 = vector.load %arg8[%c0_92, %c0_93] : memref<1x128xf32, #tpu.memory_space<vmem>>, vector<1x128xf32>
    %175 = arith.addf %173, %174 : vector<1x128xf32>
    %176 = arith.negf %175 : vector<1x128xf32>
    %177 = math.exp %176 : vector<1x128xf32>
    %cst_94 = arith.constant 1.000000e+00 : f32
    %178 = vector.broadcast %cst_94 : f32 to vector<1x128xf32>
    %179 = arith.addf %178, %177 : vector<1x128xf32>
    %180 = arith.divf %178, %179 : vector<1x128xf32>
    %181 = arith.truncf %180 : vector<1x128xf32> to vector<1x128xbf16>
    %c0_95 = arith.constant 0 : index
    %c0_96 = arith.constant 0 : index
    %182 = vector.load %arg9[%c0_95, %c0_96] : memref<128x128xbf16, #tpu.memory_space<vmem>>, vector<128x128xbf16>
    %cst_97 = arith.constant dense<0.000000e+00> : vector<1x128xf32>
    %183 = tpu.matmul %181, %182, %cst_97 {dimension_numbers = #tpu.dot_dimension_numbers<[1], [0], [0], [1], [0, 0, 1, 1], [], []>} : vector<1x128xbf16>, vector<128x128xbf16>, vector<1x128xf32> -> vector<1x128xf32>
    %c0_98 = arith.constant 0 : index
    %c0_99 = arith.constant 0 : index
    %184 = vector.load %arg10[%c0_98, %c0_99] : memref<1x128xf32, #tpu.memory_space<vmem>>, vector<1x128xf32>
    %185 = arith.addf %183, %184 : vector<1x128xf32>
    %186 = vector.shape_cast %185 : vector<1x128xf32> to vector<1x128xf32>
    %187 = vector.broadcast %186 : vector<1x128xf32> to vector<8x128xf32>
    %c0_100 = arith.constant 0 : index
    %c0_101 = arith.constant 0 : index
    %c0_102 = arith.constant 0 : index
    %188 = vector.load %arg11[%c0_100, %c0_101, %c0_102] : memref<1x8x128xf32, #tpu.memory_space<vmem>>, vector<1x8x128xf32>
    %189 = vector.shape_cast %188 : vector<1x8x128xf32> to vector<8x128xf32>
    %190 = vector.shape_cast %187 : vector<8x128xf32> to vector<1x8x128xf32>
    tpu.vector_store %arg11[%c0_100, %c0_101, %c0_102], %190 {strides = array<i32>} : memref<1x8x128xf32, #tpu.memory_space<vmem>>, vector<1x8x128xf32>,
    return
  }
  func.func @transform_0(%arg0: i32) -> (i32, i32, i32) {
    %c0_i32 = arith.constant 0 : i32
    %c0_i32_0 = arith.constant 0 : i32
    %c0_i32_1 = arith.constant 0 : i32
    return %arg0, %c0_i32, %c0_i32_0 : i32, i32, i32
  }
  func.func @transform_1(%arg0: i32) -> (i32, i32) {
    %c0_i32 = arith.constant 0 : i32
    %c0_i32_0 = arith.constant 0 : i32
    %c0_i32_1 = arith.constant 0 : i32
    return %c0_i32, %c0_i32_0 : i32, i32
  }
  func.func @transform_2(%arg0: i32) -> (i32, i32) {
    %c0_i32 = arith.constant 0 : i32
    %c0_i32_0 = arith.constant 0 : i32
    %c0_i32_1 = arith.constant 0 : i32
    return %c0_i32, %c0_i32_0 : i32, i32
  }
  func.func @transform_3(%arg0: i32) -> (i32, i32) {
    %c0_i32 = arith.constant 0 : i32
    %c0_i32_0 = arith.constant 0 : i32
    %c0_i32_1 = arith.constant 0 : i32
    return %c0_i32, %c0_i32_0 : i32, i32
  }
  func.func @transform_4(%arg0: i32) -> (i32, i32, i32) {
    %c0_i32 = arith.constant 0 : i32
    %c0_i32_0 = arith.constant 0 : i32
    %c0_i32_1 = arith.constant 0 : i32
    %c0_i32_2 = arith.constant 0 : i32
    return %c0_i32, %c0_i32_0, %c0_i32_1 : i32, i32, i32
  }
  func.func @transform_5(%arg0: i32) -> (i32, i32) {
    %c0_i32 = arith.constant 0 : i32
    %c0_i32_0 = arith.constant 0 : i32
    %c0_i32_1 = arith.constant 0 : i32
    return %c0_i32, %c0_i32_0 : i32, i32
  }
  func.func @transform_6(%arg0: i32) -> (i32, i32) {
    %c0_i32 = arith.constant 0 : i32
    %c0_i32_0 = arith.constant 0 : i32
    %c0_i32_1 = arith.constant 0 : i32
    return %c0_i32, %c0_i32_0 : i32, i32
  }
  func.func @transform_7(%arg0: i32) -> (i32, i32) {
    %c0_i32 = arith.constant 0 : i32
    %c0_i32_0 = arith.constant 0 : i32
    %c0_i32_1 = arith.constant 0 : i32
    return %c0_i32, %c0_i32_0 : i32, i32
  }
  func.func @transform_8(%arg0: i32) -> (i32, i32) {
    %c0_i32 = arith.constant 0 : i32
    %c0_i32_0 = arith.constant 0 : i32
    %c0_i32_1 = arith.constant 0 : i32
    return %c0_i32, %c0_i32_0 : i32, i32
  }
  func.func @transform_9(%arg0: i32) -> (i32, i32) {
    %c0_i32 = arith.constant 0 : i32
    %c0_i32_0 = arith.constant 0 : i32
    %c0_i32_1 = arith.constant 0 : i32
    return %c0_i32, %c0_i32_0 : i32, i32
  }
  func.func @transform_10(%arg0: i32) -> (i32, i32, i32) {
    %c0_i32 = arith.constant 0 : i32
    %c0_i32_0 = arith.constant 0 : i32
    %c0_i32_1 = arith.constant 0 : i32
    return %arg0, %c0_i32, %c0_i32_0 : i32, i32, i32
  }
}

</mosaic_0001>

<bundles_post_ra>
// kernel: forward.2
= control target key start
LH: loop header
LB: loop body
LE: loop exit
PB: predicated region body
PF: predicated region fallthrough
CT: control target
= control target key end

     0   :  { %s4683_s15 = smov 0   ;;  %s5718_s0 = inlined_call_operand.vmem [shape: bf16[2,784,128], index: 0, kind: input, shape index: {}]   ;;  %s5719_s1 = inlined_call_operand.vmem [shape: bf16[128,128], index: 1, kind: input, shape index: {}]   ;;  %s5720_s2 = inlined_call_operand.vmem [shape: f32[1,128], index: 2, kind: input, shape index: {}]   ;;  %s5721_s3 = inlined_call_operand.vmem [shape: bf16[200,784], index: 3, kind: input, shape index: {}]   ;;  %s5722_s4 = inlined_call_operand.vmem [shape: bf16[2,200,128], index: 4, kind: output, shape index: {}]  }
   0x1 LB: > { %s3033_s16 = sadd.s32 4294967295, %s4654_s15   ;;  %p3037_p0 = scmp.ge.s32.totalorder %s4654_s15, 1  ;;  %s4654_s15 = sphi %s4683_s15, %s14_s15  }
   0x2   : > { %p162_p1 = scmp.lt.s32.totalorder %s4654_s15, 3 }
   0x4   : > { %p163_p2 = pnand %p3037_p0, %p162_p1 }
   0x5   : > { %v4070_v0 = vld [vmem:[%s5719_s1] sm:$0xff] (!%p163_p2)   ;;  %v4656_v1 = vmov (!%p163_p2), 0.0   ;;  %v4071_v2 = vld [vmem:[%s5719_s1 + $0x8] sm:$0xff] (!%p163_p2)   ;;  %vm4657_vm0 = vmmov (!%p163_p2), 0   ;;  %p188_p3 = scmp.lt.s32.totalorder (!%p163_p2), %s3033_s16, 1  ;;  %v4072_v3 = vld [vmem:[%s5719_s1 + $0x10] sm:$0xff] (!%p163_p2)  }
   0x6   : > { %166 = sbr.rel (%p163_p2) target bundleno = 1079 (0x437), region = 36  ;;  %3776 = vmatprep.subr.bf16.mxu0 (!%p163_p2), %v4656_v1  ;;  %3792 = vmatprep.mubr.msk.bf16.mxu0 (!%p163_p2), %vm4657_vm0, %v4656_v1  ;;  %v4073_v4 = vld [vmem:[%s5719_s1 + $0x18] sm:$0xff] (!%p163_p2)   ;;  %v4074_v5 = vld [vmem:[%s5719_s1 + $0x20] sm:$0xff] (!%p163_p2)   ;;  %v4075_v6 = vld [vmem:[%s5719_s1 + $0x28] sm:$0xff] (!%p163_p2)   ;;  %vm2268_vm1 = vcmask (!%p163_p2), 130048  }
   0x7   : > { %3777 = vmatpush3.bf16.msra.mxu0 (!%p163_p2), %v4070_v0  ;;  %v4076_v7 = vld [vmem:[%s5719_s1 + $0x30] sm:$0xff] (!%p163_p2)   ;;  %v4077_v8 = vld [vmem:[%s5719_s1 + $0x38] sm:$0xff] (!%p163_p2)   ;;  %v4815_v36 = vld [vmem:[%s5720_s2] ss:$0 sm:$0xff] (!%p163_p2) }
   0x8   : > { %3778 = vmatprep.subr.bf16.mxu0 (!%p163_p2), %v4656_v1 }
   0xb   : > { %3779 = vmatpush3.bf16.msra.mxu0 (!%p163_p2), %v4071_v2 }
   0xc   : > { %3780 = vmatprep.subr.bf16.mxu0 (!%p163_p2), %v4656_v1 }
   0xd   : > { %s5724_s16 = smov (!%p188_p3, %s3033_s16), 1 }
   0xe   : > { %s4058_s23 = smul.u32 392, %s5724_s16 }
   0xf   : > { %3781 = vmatpush3.bf16.msra.mxu0 %v4072_v3  ;;  %s4059_s28 = smul.u32 100, %s5724_s16 }
  0x10   : > { %s4711_s26 = scalar_lea.vmem %s5718_s0, %s4058_s23  ;;  %3782 = vmatprep.subr.bf16.mxu0 %v4656_v1 }
  0x11   : > { %v4078_v9 = vld [vmem:[%s4711_s26] sm:$0xff]   ;;  %v4079_v10 = vld [vmem:[%s4711_s26 + $0x8] sm:$0xff]   ;;  %v4080_v11 = vld [vmem:[%s4711_s26 + $0x10] sm:$0xff]   ;;  %s5677_s30 = scalar_lea.vmem %s5722_s4, %s4059_s28 }
  0x12   : > { %v4081_v12 = vld [vmem:[%s4711_s26 + $0x18] sm:$0xff]   ;;  %v4082_v13 = vld [vmem:[%s4711_s26 + $0x20] sm:$0xff]   ;;  %v4083_v14 = vld [vmem:[%s4711_s26 + $0x28] sm:$0xff]  }
  0x13   : > { %3783 = vmatpush3.bf16.msra.mxu0 %v4073_v4  ;;  %v4084_v15 = vld [vmem:[%s4711_s26 + $0x30] sm:$0xff]   ;;  %v4085_v16 = vld [vmem:[%s4711_s26 + $0x38] sm:$0xff]   ;;  %v4086_v17 = vld [vmem:[%s4711_s26 + $0x40] sm:$0xff]  }
  0x14   : > { %3784 = vmatprep.subr.bf16.mxu0 %v4656_v1  ;;  %v4087_v18 = vld [vmem:[%s4711_s26 + $0x48] sm:$0xff]   ;;  %v4088_v19 = vld [vmem:[%s4711_s26 + $0x50] sm:$0xff]   ;;  %v4089_v20 = vld [vmem:[%s4711_s26 + $0x58] sm:$0xff]  }
  0x15   : > { %v4090_v21 = vld [vmem:[%s4711_s26 + $0x60] sm:$0xff]   ;;  %v4091_v22 = vld [vmem:[%s4711_s26 + $0x68] sm:$0xff]   ;;  %v4092_v23 = vld [vmem:[%s4711_s26 + $0x70] sm:$0xff]  }
  0x16   : > { %v4093_v24 = vld [vmem:[%s4711_s26 + $0x78] sm:$0xff]   ;;  %v4094_v25 = vld [vmem:[%s4711_s26 + $0x80] sm:$0xff]   ;;  %v4095_v26 = vld [vmem:[%s4711_s26 + $0x88] sm:$0xff]  }
  0x17   : > { %3785 = vmatpush3.bf16.msra.mxu0 %v4074_v5  ;;  %v4096_v27 = vld [vmem:[%s4711_s26 + $0x90] sm:$0xff]   ;;  %v4097_v28 = vld [vmem:[%s4711_s26 + $0x98] sm:$0xff]   ;;  %v4098_v29 = vld [vmem:[%s4711_s26 + $0xa0] sm:$0xff]  }
  0x18   : > { %3786 = vmatprep.subr.bf16.mxu0 %v4656_v1  ;;  %v4099_v30 = vld [vmem:[%s4711_s26 + $0xa8] sm:$0xff]   ;;  %v4100_v31 = vld [vmem:[%s4711_s26 + $0xb0] sm:$0xff]   ;;  %v4101_v32 = vld [vmem:[%s4711_s26 + $0xb8] sm:$0xff]  }
  0x19   : > { %v4102_v33 = vld [vmem:[%s4711_s26 + $0xc0] sm:$0xff]   ;;  %v4103_v34 = vld [vmem:[%s4711_s26 + $0xc8] sm:$0xff]   ;;  %v4104_v35 = vld [vmem:[%s4711_s26 + $0xd0] sm:$0xff]  }
  0x1a   : > { %v4105_v40 = vld [vmem:[%s4711_s26 + $0xd8] sm:$0xff]   ;;  %v4106_v49 = vld [vmem:[%s4711_s26 + $0xe0] sm:$0xff]   ;;  %v4107_v61 = vld [vmem:[%s4711_s26 + $0xe8] sm:$0xff]  }
  0x1b   : > { %3787 = vmatpush3.bf16.msra.mxu0 %v4075_v6 }
  0x1c   : > { %3788 = vmatprep.subr.bf16.mxu0 %v4656_v1 }
  0x1f   : > { %3789 = vmatpush3.bf16.msra.mxu0 %v4076_v7 }
  0x20   : > { %3790 = vmatprep.subr.bf16.mxu0 %v4656_v1 }
  0x23   : > { %3791 = vmatpush3.bf16.msra.mxu0 %v4077_v8 }
  0x26   : > { %3793 = vmatmul.mubr.bf16.vlgmr.msra.gmra.mrb[0].mxu0 %v4078_v9 }
  0x27   : > { %3796 = vmatprep.mubr.msk.bf16.mxu0 %vm4657_vm0, %v4656_v1 }
  0x2e   : > { %3797 = vmatmul.mubr.bf16.gmra.mrb[4].mxu0 %v4079_v10 }
  0x2f   : > { %3800 = vmatprep.mubr.msk.bf16.mxu0 %vm4657_vm0, %v4656_v1 }
  0x36   : > { %3801 = vmatmul.mubr.bf16.gmra.mrb[8].mxu0 %v4080_v11  ;;  %v4108_v11 = vld [vmem:[%s4711_s26 + $0xf0] sm:$0xff]  }
  0x37   : > { %3804 = vmatprep.mubr.msk.bf16.mxu0 %vm4657_vm0, %v4656_v1 }
  0x3e   : > { %3805 = vmatmul.mubr.bf16.gmra.mrb[12].mxu0 %v4081_v12 }
  0x3f   : > { %3808 = vmatprep.mubr.msk.bf16.mxu0 %vm4657_vm0, %v4656_v1 }
  0x46   : > { %3809 = vmatmul.mubr.bf16.gmra.mrb[16].mxu0 %v4082_v13 }
  0x47   : > { %3812 = vmatprep.mubr.msk.bf16.mxu0 %vm4657_vm0, %v4656_v1 }
  0x4e   : > { %3813 = vmatmul.mubr.bf16.gmra.mrb[20].mxu0 %v4083_v14 }
  0x4f   : > { %3816 = vmatprep.mubr.msk.bf16.mxu0 %vm4657_vm0, %v4656_v1 }
  0x56   : > { %3817 = vmatmul.mubr.bf16.gmra.mrb[24].mxu0 %v4084_v15 }
  0x57   : > { %3820 = vmatprep.mubr.msk.bf16.mxu0 %vm4657_vm0, %v4656_v1 }
  0x5e   : > { %3821 = vmatmul.mubr.bf16.gmra.mrb[28].mxu0 %v4085_v16 }
  0x5f   : > { %3824 = vmatprep.mubr.msk.bf16.mxu0 %vm4657_vm0, %v4656_v1 }
  0x66   : > { %3825 = vmatmul.mubr.bf16.gmra.mrb[32].mxu0 %v4086_v17 }
  0x67   : > { %3828 = vmatprep.mubr.msk.bf16.mxu0 %vm4657_vm0, %v4656_v1 }
  0x6e   : > { %3829 = vmatmul.mubr.bf16.gmra.mrb[36].mxu0 %v4087_v18 }
  0x6f   : > { %3832 = vmatprep.mubr.msk.bf16.mxu0 %vm4657_vm0, %v4656_v1 }
  0x76   : > { %3833 = vmatmul.mubr.bf16.gmra.mrb[40].mxu0 %v4088_v19 }
  0x77   : > { %3836 = vmatprep.mubr.msk.bf16.mxu0 %vm4657_vm0, %v4656_v1 }
  0x7e   : > { %3837 = vmatmul.mubr.bf16.gmra.mrb[44].mxu0 %v4089_v20 }
  0x7f   : > { %3840 = vmatprep.mubr.msk.bf16.mxu0 %vm4657_vm0, %v4656_v1 }
  0x86   : > { %3841 = vmatmul.mubr.bf16.gmra.mrb[48].mxu0 %v4090_v21 }
  0x87   : > { %3844 = vmatprep.mubr.msk.bf16.mxu0 %vm4657_vm0, %v4656_v1 }
  0x8e   : > { %3845 = vmatmul.mubr.bf16.gmra.mrb[52].mxu0 %v4091_v22 }
  0x8f   : > { %3848 = vmatprep.mubr.msk.bf16.mxu0 %vm4657_vm0, %v4656_v1 }
  0x96   : > { %3849 = vmatmul.mubr.bf16.gmra.mrb[56].mxu0 %v4092_v23 }
  0x97   : > { %3852 = vmatprep.mubr.msk.bf16.mxu0 %vm4657_vm0, %v4656_v1 }
  0x9e   : > { %3853 = vmatmul.mubr.bf16.gmra.mrb[60].mxu0 %v4093_v24 }
  0x9f   : > { %3856 = vmatprep.mubr.msk.bf16.mxu0 %vm4657_vm0, %v4656_v1 }
  0xa6   : > { %3857 = vmatmul.mubr.bf16.gmra.mrb[64].mxu0 %v4094_v25 }
  0xa7   : > { %3860 = vmatprep.mubr.msk.bf16.mxu0 %vm4657_vm0, %v4656_v1 }
  0xae   : > { %3861 = vmatmul.mubr.bf16.gmra.mrb[68].mxu0 %v4095_v26 }
  0xaf   : > { %3864 = vmatprep.mubr.msk.bf16.mxu0 %vm4657_vm0, %v4656_v1 }
  0xb6   : > { %3865 = vmatmul.mubr.bf16.gmra.mrb[72].mxu0 %v4096_v27  ;;  %v4109_v27 = vld [vmem:[%s4711_s26 + $0xf8] sm:$0xff]  }
  0xb7   : > { %3868 = vmatprep.mubr.msk.bf16.mxu0 %vm4657_vm0, %v4656_v1 }
  0xbe   : > { %3869 = vmatmul.mubr.bf16.gmra.mrb[76].mxu0 %v4097_v28 }
  0xbf   : > { %3872 = vmatprep.mubr.msk.bf16.mxu0 %vm4657_vm0, %v4656_v1 }
  0xc6   : > { %3873 = vmatmul.mubr.bf16.gmra.mrb[80].mxu0 %v4098_v29 }
  0xc7   : > { %3876 = vmatprep.mubr.msk.bf16.mxu0 %vm4657_vm0, %v4656_v1 }
  0xce   : > { %3877 = vmatmul.mubr.bf16.gmra.mrb[84].mxu0 %v4099_v30 }
  0xcf   : > { %3880 = vmatprep.mubr.msk.bf16.mxu0 %vm4657_vm0, %v4656_v1 }
  0xd6   : > { %3881 = vmatmul.mubr.bf16.gmra.mrb[88].mxu0 %v4100_v31 }
  0xd7   : > { %3884 = vmatprep.mubr.msk.bf16.mxu0 %vm4657_vm0, %v4656_v1 }
  0xde   : > { %3885 = vmatmul.mubr.bf16.gmra.mrb[92].mxu0 %v4101_v32 }
  0xdf   : > { %3888 = vmatprep.mubr.msk.bf16.mxu0 %vm4657_vm0, %v4656_v1 }
  0xe6   : > { %3889 = vmatmul.mubr.bf16.gmra.mrb[96].mxu0 %v4102_v33 }
  0xe7   : > { %3892 = vmatprep.mubr.msk.bf16.mxu0 %vm4657_vm0, %v4656_v1 }
  0xee   : > { %3893 = vmatmul.mubr.bf16.gmra.mrb[100].mxu0 %v4103_v34 }
  0xef   : > { %3896 = vmatprep.mubr.msk.bf16.mxu0 %vm4657_vm0, %v4656_v1 }
  0xf6   : > { %3897 = vmatmul.mubr.bf16.gmra.mrb[104].mxu0 %v4104_v35 }
  0xf7   : > { %3900 = vmatprep.mubr.msk.bf16.mxu0 %vm4657_vm0, %v4656_v1 }
  0xf9   : > { %v696_v37 = vpop.f32.mrb[0].mxu0 }
  0xfa   : > { %v697_v38 = vadd.f32 %v4815_v36, %v696_v37  ;;  %v3794_v39 = vpop.f32.mrb[1].mxu0 }
  0xfb   : > { %v699_v41 = vpop.f32.mrb[2].mxu0 }
  0xfc   : > { %v3098_v42 = vmul.f32 -1.442695, %v697_v38  ;;  %v700_v43 = vadd.f32 %v4815_v36, %v699_v41  ;;  %v3795_v44 = vpop.f32.mrb[3].mxu0 }
  0xfd   : > { %v4110_v44 = vld [vmem:[%s4711_s26 + $0x100] sm:$0xff]  }
  0xfe   : > { %4254 = vpow2.f32 %v3098_v42  ;;  %v3099_v45 = vmul.f32 -1.442695, %v700_v43  ;;  %3901 = vmatmul.mubr.bf16.gmra.mrb[108].mxu0 %v4105_v40 }
  0xff   : > { %3904 = vmatprep.mubr.msk.bf16.mxu0 %vm4657_vm0, %v4656_v1 }
 0x100   : > { %4256 = vpow2.f32 %v3099_v45 }
 0x101   : > { %v704_v46 = vpop.f32.mrb[4].mxu0 }
 0x102   : > { %v705_v47 = vadd.f32 %v4815_v36, %v704_v46  ;;  %v3798_v48 = vpop.f32.mrb[5].mxu0 }
 0x103   : > { %v707_v50 = vpop.f32.mrb[6].mxu0 }
 0x104   : > { %v3100_v51 = vmul.f32 -1.442695, %v705_v47  ;;  %v708_v52 = vadd.f32 %v4815_v36, %v707_v50  ;;  %v3799_v53 = vpop.f32.mrb[7].mxu0 }
 0x106   : > { %4258 = vpow2.f32 %v3100_v51  ;;  %v3101_v54 = vmul.f32 -1.442695, %v708_v52  ;;  %3905 = vmatmul.mubr.bf16.gmra.mrb[112].mxu0 %v4106_v49 }
 0x107   : > { %3908 = vmatprep.mubr.msk.bf16.mxu0 %vm4657_vm0, %v4656_v1 }
 0x108   : > { %v4255_v55 = vpop.eup %4254  ;;  %4260 = vpow2.f32 %v3101_v54 }
 0x109   : > { %v1381_v56 = vadd.f32 1.0, %v4255_v55  ;;  %v712_v57 = vpop.f32.mrb[8].mxu0 }
 0x10a   : > { %v4257_v58 = vpop.eup %4256  ;;  %v713_v59 = vadd.f32 %v4815_v36, %v712_v57  ;;  %v3802_v60 = vpop.f32.mrb[9].mxu0 }
 0x10b   : > { %v1382_v62 = vadd.f32 1.0, %v4257_v58  ;;  %v715_v63 = vpop.f32.mrb[10].mxu0  ;;  %4262 = vrcp.f32 %v1381_v56  ;;  %v4111_v60 = vld [vmem:[%s4711_s26 + $0x108] sm:$0xff]  }
 0x10c   : > { %v3102_v0 = vmul.f32 -1.442695, %v713_v59  ;;  %v716_v2 = vadd.f32 %v4815_v36, %v715_v63  ;;  %v3803_v3 = vpop.f32.mrb[11].mxu0 }
 0x10d   : > { %4264 = vrcp.f32 %v1382_v62 }
 0x10e   : > { %4266 = vpow2.f32 %v3102_v0  ;;  %v3103_v4 = vmul.f32 -1.442695, %v716_v2  ;;  %3909 = vmatmul.mubr.bf16.gmra.mrb[116].mxu0 %v4107_v61 }
 0x10f   : > { %3912 = vmatprep.mubr.msk.bf16.mxu0 %vm4657_vm0, %v4656_v1 }
 0x110   : > { %v4259_v5 = vpop.eup %4258  ;;  %4268 = vpow2.f32 %v3103_v4 }
 0x111   : > { %v1383_v6 = vadd.f32 1.0, %v4259_v5  ;;  %v720_v7 = vpop.f32.mrb[12].mxu0 }
 0x112   : > { %v4261_v8 = vpop.eup %4260  ;;  %v721_v9 = vadd.f32 %v4815_v36, %v720_v7  ;;  %v3806_v10 = vpop.f32.mrb[13].mxu0 }
 0x113   : > { %v1384_v12 = vadd.f32 1.0, %v4261_v8  ;;  %v723_v13 = vpop.f32.mrb[14].mxu0  ;;  %4270 = vrcp.f32 %v1383_v6 }
 0x114   : > { %v3104_v14 = vmul.f32 -1.442695, %v721_v9  ;;  %v724_v15 = vadd.f32 %v4815_v36, %v723_v13  ;;  %v3807_v16 = vpop.f32.mrb[15].mxu0  ;;  %v4112_v13 = vld [vmem:[%s4711_s26 + $0x110] sm:$0xff]  }
 0x115   : > { %4272 = vrcp.f32 %v1384_v12  ;;  %v4263_v17 = vpop.eup %4262  ;;  %v4128_v16 = vld [vmem:[%s5721_s3 + $0x3c] ss:$28 sps:$4 sm:$0xff]  }
 0x116   : > { %4274 = vpow2.f32 %v3104_v14  ;;  %v3105_v18 = vmul.f32 -1.442695, %v724_v15  ;;  %3913 = vmatmul.mubr.bf16.gmra.mrb[120].mxu0 %v4108_v11  ;;  %2348 = vmatprep.mubr.bf16.mxu1 %v4128_v16 }
 0x117   : > { %v4265_v19 = vpop.eup %4264  ;;  %3916 = vmatprep.mubr.msk.bf16.mxu0 %vm4657_vm0, %v4656_v1 }
 0x118   : > { %v4267_v20 = vpop.eup %4266  ;;  %4276 = vpow2.f32 %v3105_v18  ;;  %v4839_v21 = vpack.c.bf16 %v4265_v19, %v4263_v17 }
 0x119   : > { %v1385_v22 = vadd.f32 1.0, %v4267_v20  ;;  %v728_v23 = vpop.f32.mrb[16].mxu0 }
 0x11a   : > { %v4269_v24 = vpop.eup %4268  ;;  %v729_v25 = vadd.f32 %v4815_v36, %v728_v23  ;;  %v3810_v26 = vpop.f32.mrb[17].mxu0 }
 0x11b   : > { %v1386_v28 = vadd.f32 1.0, %v4269_v24  ;;  %v731_v29 = vpop.f32.mrb[18].mxu0  ;;  %4278 = vrcp.f32 %v1385_v22 }
 0x11c   : > { %v3106_v30 = vmul.f32 -1.442695, %v729_v25  ;;  %v732_v31 = vadd.f32 %v4815_v36, %v731_v29  ;;  %v3811_v32 = vpop.f32.mrb[19].mxu0 }
 0x11d   : > { %4280 = vrcp.f32 %v1386_v28  ;;  %v4271_v33 = vpop.eup %4270 }
 0x11e   : > { %4282 = vpow2.f32 %v3106_v30  ;;  %v3107_v34 = vmul.f32 -1.442695, %v732_v31  ;;  %3917 = vmatmul.mubr.bf16.gmra.mrb[124].mxu0 %v4109_v27  ;;  %v4113_v31 = vld [vmem:[%s4711_s26 + $0x118] sm:$0xff]  }
 0x11f   : > { %v4273_v35 = vpop.eup %4272  ;;  %3920 = vmatprep.mubr.msk.bf16.mxu0 %vm4657_vm0, %v4656_v1 }
 0x120   : > { %v4275_v37 = vpop.eup %4274  ;;  %4284 = vpow2.f32 %v3107_v34  ;;  %v4846_v38 = vpack.c.bf16 %v4273_v35, %v4271_v33 }
 0x121   : > { %v1387_v39 = vadd.f32 1.0, %v4275_v37  ;;  %v736_v40 = vpop.f32.mrb[20].mxu0 }
 0x122   : > { %v4277_v41 = vpop.eup %4276  ;;  %v737_v42 = vadd.f32 %v4815_v36, %v736_v40  ;;  %v3814_v43 = vpop.f32.mrb[21].mxu0 }
 0x123   : > { %v1388_v45 = vadd.f32 1.0, %v4277_v41  ;;  %v739_v46 = vpop.f32.mrb[22].mxu0  ;;  %4286 = vrcp.f32 %v1387_v39 }
 0x124   : > { %v3108_v47 = vmul.f32 -1.442695, %v737_v42  ;;  %v740_v48 = vadd.f32 %v4815_v36, %v739_v46  ;;  %v3815_v49 = vpop.f32.mrb[23].mxu0 }
 0x125   : > { %4288 = vrcp.f32 %v1388_v45  ;;  %v4279_v50 = vpop.eup %4278  ;;  %v4114_v49 = vld [vmem:[%s4711_s26 + $0x120] sm:$0xff]  }
 0x126   : > { %4290 = vpow2.f32 %v3108_v47  ;;  %v3109_v51 = vmul.f32 -1.442695, %v740_v48  ;;  %3921 = vmatmul.mubr.bf16.gmra.mrb[128].mxu0 %v4110_v44 }
 0x127   : > { %v4281_v52 = vpop.eup %4280  ;;  %3924 = vmatprep.mubr.msk.bf16.mxu0 %vm4657_vm0, %v4656_v1 }
 0x128   : > { %v4283_v53 = vpop.eup %4282  ;;  %4292 = vpow2.f32 %v3109_v51  ;;  %v4853_v54 = vpack.c.bf16 %v4281_v52, %v4279_v50 }
 0x129   : > { %v1389_v55 = vadd.f32 1.0, %v4283_v53  ;;  %v744_v56 = vpop.f32.mrb[24].mxu0 }
 0x12a   : > { %v4285_v57 = vpop.eup %4284  ;;  %v745_v58 = vadd.f32 %v4815_v36, %v744_v56  ;;  %v3818_v59 = vpop.f32.mrb[25].mxu0 }
 0x12b   : > { %v1390_v61 = vadd.f32 1.0, %v4285_v57  ;;  %v747_v62 = vpop.f32.mrb[26].mxu0  ;;  %4294 = vrcp.f32 %v1389_v55 }
 0x12c   : > { %v3110_v63 = vmul.f32 -1.442695, %v745_v58  ;;  %v748_v0 = vadd.f32 %v4815_v36, %v747_v62  ;;  %v3819_v2 = vpop.f32.mrb[27].mxu0 }
 0x12d   : > { %4296 = vrcp.f32 %v1390_v61  ;;  %v4287_v3 = vpop.eup %4286 }
 0x12e   : > { %4298 = vpow2.f32 %v3110_v63  ;;  %v3111_v4 = vmul.f32 -1.442695, %v748_v0  ;;  %3925 = vmatmul.mubr.bf16.gmra.mrb[132].mxu0 %v4111_v60 }
 0x12f   : > { %v4289_v5 = vpop.eup %4288  ;;  %3928 = vmatprep.mubr.msk.bf16.mxu0 %vm4657_vm0, %v4656_v1 }
 0x130   : > { %v4291_v6 = vpop.eup %4290  ;;  %4300 = vpow2.f32 %v3111_v4  ;;  %v4860_v7 = vpack.c.bf16 %v4289_v5, %v4287_v3  ;;  %v4115_v3 = vld [vmem:[%s4711_s26 + $0x128] sm:$0xff]  }
 0x131   : > { %v1391_v8 = vadd.f32 1.0, %v4291_v6  ;;  %v752_v9 = vpop.f32.mrb[28].mxu0 }
 0x132   : > { %v4293_v10 = vpop.eup %4292  ;;  %v753_v11 = vadd.f32 %v4815_v36, %v752_v9  ;;  %v3822_v12 = vpop.f32.mrb[29].mxu0 }
 0x133   : > { %v1392_v14 = vadd.f32 1.0, %v4293_v10  ;;  %v755_v15 = vpop.f32.mrb[30].mxu0  ;;  %4302 = vrcp.f32 %v1391_v8 }
 0x134   : > { %v3112_v17 = vmul.f32 -1.442695, %v753_v11  ;;  %v756_v18 = vadd.f32 %v4815_v36, %v755_v15  ;;  %v3823_v19 = vpop.f32.mrb[31].mxu0 }
 0x135   : > { %4304 = vrcp.f32 %v1392_v14  ;;  %v4295_v20 = vpop.eup %4294 }
 0x136   : > { %4306 = vpow2.f32 %v3112_v17  ;;  %v3113_v22 = vmul.f32 -1.442695, %v756_v18  ;;  %3929 = vmatmul.mubr.bf16.gmra.mrb[136].mxu0 %v4112_v13 }
 0x137   : > { %v4297_v23 = vpop.eup %4296  ;;  %3932 = vmatprep.mubr.msk.bf16.mxu0 %vm4657_vm0, %v4656_v1 }
 0x138   : > { %v4299_v24 = vpop.eup %4298  ;;  %4308 = vpow2.f32 %v3113_v22  ;;  %v4870_v25 = vpack.c.bf16 %v4297_v23, %v4295_v20  ;;  %v4116_v20 = vld [vmem:[%s4711_s26 + $0x130] sm:$0xff]  }
 0x139   : > { %v1393_v26 = vadd.f32 1.0, %v4299_v24  ;;  %v760_v27 = vpop.f32.mrb[32].mxu0 }
 0x13a   : > { %v4301_v28 = vpop.eup %4300  ;;  %v761_v29 = vadd.f32 %v4815_v36, %v760_v27  ;;  %v3826_v30 = vpop.f32.mrb[33].mxu0 }
 0x13b   : > { %v1394_v32 = vadd.f32 1.0, %v4301_v28  ;;  %v763_v33 = vpop.f32.mrb[34].mxu0  ;;  %4310 = vrcp.f32 %v1393_v26 }
 0x13c   : > { %v3114_v34 = vmul.f32 -1.442695, %v761_v29  ;;  %v764_v35 = vadd.f32 %v4815_v36, %v763_v33  ;;  %v3827_v37 = vpop.f32.mrb[35].mxu0 }
 0x13d   : > { %4312 = vrcp.f32 %v1394_v32  ;;  %v4303_v39 = vpop.eup %4302 }
 0x13e   : > { %4314 = vpow2.f32 %v3114_v34  ;;  %v3115_v40 = vmul.f32 -1.442695, %v764_v35  ;;  %3933 = vmatmul.mubr.bf16.gmra.mrb[140].mxu0 %v4113_v31 }
 0x13f   : > { %v4305_v41 = vpop.eup %4304  ;;  %3936 = vmatprep.mubr.msk.bf16.mxu0 %vm4657_vm0, %v4656_v1 }
 0x140   : > { %v4307_v42 = vpop.eup %4306  ;;  %4316 = vpow2.f32 %v3115_v40  ;;  %v4877_v43 = vpack.c.bf16 %v4305_v41, %v4303_v39  ;;  %v4117_v40 = vld [vmem:[%s4711_s26 + $0x138] sm:$0xff]  }
 0x141   : > { %v1395_v44 = vadd.f32 1.0, %v4307_v42  ;;  %v768_v45 = vpop.f32.mrb[36].mxu0 }
 0x142   : > { %v4309_v46 = vpop.eup %4308  ;;  %v769_v47 = vadd.f32 %v4815_v36, %v768_v45  ;;  %v3830_v48 = vpop.f32.mrb[37].mxu0 }
 0x143   : > { %v1396_v50 = vadd.f32 1.0, %v4309_v46  ;;  %v771_v51 = vpop.f32.mrb[38].mxu0  ;;  %4318 = vrcp.f32 %v1395_v44 }
 0x144   : > { %v3116_v52 = vmul.f32 -1.442695, %v769_v47  ;;  %v772_v53 = vadd.f32 %v4815_v36, %v771_v51  ;;  %v3831_v55 = vpop.f32.mrb[39].mxu0 }
 0x145   : > { %4320 = vrcp.f32 %v1396_v50  ;;  %v4311_v56 = vpop.eup %4310 }
 0x146   : > { %4322 = vpow2.f32 %v3116_v52  ;;  %v3117_v57 = vmul.f32 -1.442695, %v772_v53  ;;  %3937 = vmatmul.mubr.bf16.gmra.mrb[144].mxu0 %v4114_v49 }
 0x147   : > { %v4313_v58 = vpop.eup %4312  ;;  %3940 = vmatprep.mubr.msk.bf16.mxu0 %vm4657_vm0, %v4656_v1 }
 0x148   : > { %v4315_v59 = vpop.eup %4314  ;;  %4324 = vpow2.f32 %v3117_v57  ;;  %v4884_v60 = vpack.c.bf16 %v4313_v58, %v4311_v56  ;;  %v4118_v57 = vld [vmem:[%s4711_s26 + $0x140] sm:$0xff]  }
 0x149   : > { %v1397_v61 = vadd.f32 1.0, %v4315_v59  ;;  %v776_v62 = vpop.f32.mrb[40].mxu0 }
 0x14a   : > { %v4317_v63 = vpop.eup %4316  ;;  %v777_v0 = vadd.f32 %v4815_v36, %v776_v62  ;;  %v3834_v2 = vpop.f32.mrb[41].mxu0 }
 0x14b   : > { %v1398_v4 = vadd.f32 1.0, %v4317_v63  ;;  %v779_v5 = vpop.f32.mrb[42].mxu0  ;;  %4326 = vrcp.f32 %v1397_v61 }
 0x14c   : > { %v3118_v6 = vmul.f32 -1.442695, %v777_v0  ;;  %v780_v8 = vadd.f32 %v4815_v36, %v779_v5  ;;  %v3835_v9 = vpop.f32.mrb[43].mxu0 }
 0x14d   : > { %4328 = vrcp.f32 %v1398_v4  ;;  %v4319_v10 = vpop.eup %4318 }
 0x14e   : > { %4330 = vpow2.f32 %v3118_v6  ;;  %v3119_v11 = vmul.f32 -1.442695, %v780_v8  ;;  %3941 = vmatmul.mubr.bf16.gmra.mrb[148].mxu0 %v4115_v3 }
 0x14f   : > { %v4321_v12 = vpop.eup %4320  ;;  %3944 = vmatprep.mubr.msk.bf16.mxu0 %vm4657_vm0, %v4656_v1 }
 0x150   : > { %v4323_v13 = vpop.eup %4322  ;;  %4332 = vpow2.f32 %v3119_v11  ;;  %v4891_v14 = vpack.c.bf16 %v4321_v12, %v4319_v10  ;;  %v4119_v11 = vld [vmem:[%s4711_s26 + $0x148] sm:$0xff]  }
 0x151   : > { %v1399_v15 = vadd.f32 1.0, %v4323_v13  ;;  %v784_v16 = vpop.f32.mrb[44].mxu0 }
 0x152   : > { %v4325_v17 = vpop.eup %4324  ;;  %v785_v18 = vadd.f32 %v4815_v36, %v784_v16  ;;  %v3838_v19 = vpop.f32.mrb[45].mxu0 }
 0x153   : > { %v1400_v22 = vadd.f32 1.0, %v4325_v17  ;;  %v787_v23 = vpop.f32.mrb[46].mxu0  ;;  %4334 = vrcp.f32 %v1399_v15 }
 0x154   : > { %v3120_v24 = vmul.f32 -1.442695, %v785_v18  ;;  %v788_v26 = vadd.f32 %v4815_v36, %v787_v23  ;;  %v3839_v27 = vpop.f32.mrb[47].mxu0 }
 0x155   : > { %4336 = vrcp.f32 %v1400_v22  ;;  %v4327_v28 = vpop.eup %4326 }
 0x156   : > { %4338 = vpow2.f32 %v3120_v24  ;;  %v3121_v29 = vmul.f32 -1.442695, %v788_v26  ;;  %3945 = vmatmul.mubr.bf16.gmra.mrb[152].mxu0 %v4116_v20 }
 0x157   : > { %v4329_v30 = vpop.eup %4328  ;;  %3948 = vmatprep.mubr.msk.bf16.mxu0 %vm4657_vm0, %v4656_v1 }
 0x158   : > { %v4331_v31 = vpop.eup %4330  ;;  %4340 = vpow2.f32 %v3121_v29  ;;  %v1783_v32 = vpack.c.bf16 %v4329_v30, %v4327_v28  ;;  %v4120_v29 = vld [vmem:[%s4711_s26 + $0x150] sm:$0xff]  }
 0x159   : > { %v1401_v33 = vadd.f32 1.0, %v4331_v31  ;;  %v792_v34 = vpop.f32.mrb[48].mxu0 }
 0x15a   : > { %v4333_v35 = vpop.eup %4332  ;;  %v793_v37 = vadd.f32 %v4815_v36, %v792_v34  ;;  %v3842_v39 = vpop.f32.mrb[49].mxu0  ;;  %3480 = vmatprep.subr.bf16.mxu0 %v1783_v32  ;;  %4042 = vmatprep.subr.bf16.mxu1 %v1783_v32 }
 0x15b   : > { %v1402_v41 = vadd.f32 1.0, %v4333_v35  ;;  %v795_v42 = vpop.f32.mrb[50].mxu0  ;;  %3481 = vmatpush3.bf16.msra.mxu0 %v4839_v21  ;;  %4050 = vmatpush3.bf16.msra.mxu1 %v4839_v21  ;;  %4342 = vrcp.f32 %v1401_v33 }
 0x15c   : > { %v3122_v44 = vmul.f32 -1.442695, %v793_v37  ;;  %v796_v45 = vadd.f32 %v4815_v36, %v795_v42  ;;  %v3843_v46 = vpop.f32.mrb[51].mxu0 }
 0x15d   : > { %4344 = vrcp.f32 %v1402_v41  ;;  %v4335_v47 = vpop.eup %4334 }
 0x15e   : > { %4346 = vpow2.f32 %v3122_v44  ;;  %v3123_v48 = vmul.f32 -1.442695, %v796_v45  ;;  %3949 = vmatmul.mubr.bf16.gmra.mrb[156].mxu0 %v4117_v40 }
 0x15f   : > { %v4337_v49 = vpop.eup %4336  ;;  %3952 = vmatprep.mubr.msk.bf16.mxu0 %vm4657_vm0, %v4656_v1 }
 0x160   : > { %v4339_v50 = vpop.eup %4338  ;;  %4348 = vpow2.f32 %v3123_v48  ;;  %v1784_v51 = vpack.c.bf16 %v4337_v49, %v4335_v47  ;;  %v4121_v47 = vld [vmem:[%s4711_s26 + $0x158] sm:$0xff]  }
 0x161   : > { %v1403_v52 = vadd.f32 1.0, %v4339_v50  ;;  %v800_v21 = vpop.f32.mrb[52].mxu0 }
 0x162   : > { %v4341_v53 = vpop.eup %4340  ;;  %v801_v55 = vadd.f32 %v4815_v36, %v800_v21  ;;  %v3846_v56 = vpop.f32.mrb[53].mxu0  ;;  %3482 = vmatprep.subr.bf16.mxu0 %v1784_v51  ;;  %4043 = vmatprep.subr.bf16.mxu1 %v1784_v51 }
 0x163   : > { %v1404_v58 = vadd.f32 1.0, %v4341_v53  ;;  %v803_v59 = vpop.f32.mrb[54].mxu0  ;;  %3483 = vmatpush3.bf16.msra.mxu0 %v4846_v38  ;;  %4051 = vmatpush3.bf16.msra.mxu1 %v4846_v38  ;;  %4350 = vrcp.f32 %v1403_v52 }
 0x164   : > { %v3124_v61 = vmul.f32 -1.442695, %v801_v55  ;;  %v804_v62 = vadd.f32 %v4815_v36, %v803_v59  ;;  %v3847_v63 = vpop.f32.mrb[55].mxu0 }
 0x165   : > { %4352 = vrcp.f32 %v1404_v58  ;;  %v4343_v0 = vpop.eup %4342  ;;  %v4122_v63 = vld [vmem:[%s4711_s26 + $0x160] sm:$0xff]  }
 0x166   : > { %4354 = vpow2.f32 %v3124_v61  ;;  %v3125_v2 = vmul.f32 -1.442695, %v804_v62  ;;  %3953 = vmatmul.mubr.bf16.gmra.mrb[160].mxu0 %v4118_v57 }
 0x167   : > { %v4345_v3 = vpop.eup %4344  ;;  %3956 = vmatprep.mubr.msk.bf16.mxu0 %vm4657_vm0, %v4656_v1 }
 0x168   : > { %v4347_v4 = vpop.eup %4346  ;;  %4356 = vpow2.f32 %v3125_v2  ;;  %v1785_v5 = vpack.c.bf16 %v4345_v3, %v4343_v0 }
 0x169   : > { %v1405_v6 = vadd.f32 1.0, %v4347_v4  ;;  %v808_v38 = vpop.f32.mrb[56].mxu0 }
 0x16a   : > { %v4349_v8 = vpop.eup %4348  ;;  %v809_v9 = vadd.f32 %v4815_v36, %v808_v38  ;;  %v3850_v10 = vpop.f32.mrb[57].mxu0  ;;  %3484 = vmatprep.subr.bf16.mxu0 %v1785_v5  ;;  %4044 = vmatprep.subr.bf16.mxu1 %v1785_v5 }
 0x16b   : > { %v1406_v12 = vadd.f32 1.0, %v4349_v8  ;;  %v811_v13 = vpop.f32.mrb[58].mxu0  ;;  %3485 = vmatpush3.bf16.msra.mxu0 %v4853_v54  ;;  %4052 = vmatpush3.bf16.msra.mxu1 %v4853_v54  ;;  %4358 = vrcp.f32 %v1405_v6 }
 0x16c   : > { %v3126_v15 = vmul.f32 -1.442695, %v809_v9  ;;  %v812_v16 = vadd.f32 %v4815_v36, %v811_v13  ;;  %v3851_v17 = vpop.f32.mrb[59].mxu0 }
 0x16d   : > { %4360 = vrcp.f32 %v1406_v12  ;;  %v4351_v18 = vpop.eup %4350 }
 0x16e   : > { %4362 = vpow2.f32 %v3126_v15  ;;  %v3127_v19 = vmul.f32 -1.442695, %v812_v16  ;;  %3957 = vmatmul.mubr.bf16.gmra.mrb[164].mxu0 %v4119_v11  ;;  %v4123_v16 = vld [vmem:[%s4711_s26 + $0x168] sm:$0xff]  }
 0x16f   : > { %v4353_v20 = vpop.eup %4352  ;;  %3960 = vmatprep.mubr.msk.bf16.mxu0 %vm4657_vm0, %v4656_v1 }
 0x170   : > { %v4355_v22 = vpop.eup %4354  ;;  %4364 = vpow2.f32 %v3127_v19  ;;  %v1786_v23 = vpack.c.bf16 %v4353_v20, %v4351_v18 }
 0x171   : > { %v1407_v24 = vadd.f32 1.0, %v4355_v22  ;;  %v816_v54 = vpop.f32.mrb[60].mxu0 }
 0x172   : > { %v4357_v26 = vpop.eup %4356  ;;  %v817_v27 = vadd.f32 %v4815_v36, %v816_v54  ;;  %v3854_v28 = vpop.f32.mrb[61].mxu0  ;;  %3486 = vmatprep.subr.bf16.mxu0 %v1786_v23  ;;  %4045 = vmatprep.subr.bf16.mxu1 %v1786_v23 }
 0x173   : > { %v1408_v30 = vadd.f32 1.0, %v4357_v26  ;;  %v819_v31 = vpop.f32.mrb[62].mxu0  ;;  %3487 = vmatpush3.bf16.msra.mxu0 %v4860_v7  ;;  %4053 = vmatpush3.bf16.msra.mxu1 %v4860_v7  ;;  %4366 = vrcp.f32 %v1407_v24 }
 0x174   : > { %v3128_v32 = vmul.f32 -1.442695, %v817_v27  ;;  %v820_v33 = vadd.f32 %v4815_v36, %v819_v31  ;;  %v3855_v34 = vpop.f32.mrb[63].mxu0 }
 0x175   : > { %4368 = vrcp.f32 %v1408_v30  ;;  %v4359_v35 = vpop.eup %4358 }
 0x176   : > { %4370 = vpow2.f32 %v3128_v32  ;;  %v3129_v37 = vmul.f32 -1.442695, %v820_v33  ;;  %3961 = vmatmul.mubr.bf16.gmra.mrb[168].mxu0 %v4120_v29  ;;  %v4124_v32 = vld [vmem:[%s4711_s26 + $0x170] sm:$0xff]  }
 0x177   : > { %v4361_v39 = vpop.eup %4360  ;;  %3964 = vmatprep.mubr.msk.bf16.mxu0 %vm4657_vm0, %v4656_v1  ;;  %v4126_v33 = vld [vmem:[%s5721_s3 + $0x38] ss:$28 sps:$4 sm:$0xff]  }
 0x178   : > { %v4363_v40 = vpop.eup %4362  ;;  %4372 = vpow2.f32 %v3129_v37  ;;  %v1787_v41 = vpack.c.bf16 %v4361_v39, %v4359_v35  ;;  %v4129_v37 = vld [vmem:[%s5721_s3 + $0x74] ss:$28 sps:$4 sm:$0xff]  }
 0x179   : > { %v1409_v42 = vadd.f32 1.0, %v4363_v40  ;;  %v824_v7 = vpop.f32.mrb[64].mxu0 }
 0x17a   : > { %v4365_v44 = vpop.eup %4364  ;;  %v825_v45 = vadd.f32 %v4815_v36, %v824_v7  ;;  %v3858_v46 = vpop.f32.mrb[65].mxu0  ;;  %3488 = vmatprep.subr.bf16.mxu0 %v1787_v41  ;;  %4046 = vmatprep.subr.bf16.mxu1 %v1787_v41 }
 0x17b   : > { %v1410_v48 = vadd.f32 1.0, %v4365_v44  ;;  %v827_v49 = vpop.f32.mrb[66].mxu0  ;;  %3489 = vmatpush3.bf16.msra.mxu0 %v4870_v25  ;;  %4054 = vmatpush3.bf16.msra.mxu1 %v4870_v25  ;;  %4374 = vrcp.f32 %v1409_v42 }
 0x17c   : > { %v3130_v50 = vmul.f32 -1.442695, %v825_v45  ;;  %v828_v51 = vadd.f32 %v4815_v36, %v827_v49  ;;  %v3859_v52 = vpop.f32.mrb[67].mxu0 }
 0x17d   : > { %4376 = vrcp.f32 %v1410_v48  ;;  %v4367_v21 = vpop.eup %4366  ;;  %v4131_v52 = vld [vmem:[%s5721_s3 + $0x70] ss:$28 sps:$4 sm:$0xff]  }
 0x17e   : > { %4378 = vpow2.f32 %v3130_v50  ;;  %v3131_v53 = vmul.f32 -1.442695, %v828_v51  ;;  %3965 = vmatmul.mubr.bf16.gmra.mrb[172].mxu0 %v4121_v47  ;;  %v4125_v51 = vld [vmem:[%s4711_s26 + $0x178] sm:$0xff]  }
 0x17f   : > { %v4369_v55 = vpop.eup %4368  ;;  %3968 = vmatprep.mubr.msk.bf16.mxu0 %vm4657_vm0, %v4656_v1 }
 0x180   : > { %v4371_v56 = vpop.eup %4370  ;;  %4380 = vpow2.f32 %v3131_v53  ;;  %v1788_v57 = vpack.c.bf16 %v4369_v55, %v4367_v21  ;;  %v4132_v55 = vld [vmem:[%s5721_s3 + $0xac] ss:$28 sps:$4 sm:$0xff]  }
 0x181   : > { %v1411_v58 = vadd.f32 1.0, %v4371_v56  ;;  %v832_v25 = vpop.f32.mrb[68].mxu0 }
 0x182   : > { %v4373_v59 = vpop.eup %4372  ;;  %v833_v61 = vadd.f32 %v4815_v36, %v832_v25  ;;  %v3862_v62 = vpop.f32.mrb[69].mxu0  ;;  %3490 = vmatprep.subr.bf16.mxu0 %v1788_v57  ;;  %4047 = vmatprep.subr.bf16.mxu1 %v1788_v57 }
 0x183   : > { %v1412_v0 = vadd.f32 1.0, %v4373_v59  ;;  %v835_v2 = vpop.f32.mrb[70].mxu0  ;;  %3491 = vmatpush3.bf16.msra.mxu0 %v4877_v43  ;;  %4055 = vmatpush3.bf16.msra.mxu1 %v4877_v43  ;;  %4382 = vrcp.f32 %v1411_v58 }
 0x184   : > { %v3132_v3 = vmul.f32 -1.442695, %v833_v61  ;;  %v836_v4 = vadd.f32 %v4815_v36, %v835_v2  ;;  %v3863_v5 = vpop.f32.mrb[71].mxu0 }
 0x185   : > { %4384 = vrcp.f32 %v1412_v0  ;;  %v4375_v6 = vpop.eup %4374 }
 0x186   : > { %4386 = vpow2.f32 %v3132_v3  ;;  %v3133_v38 = vmul.f32 -1.442695, %v836_v4  ;;  %3969 = vmatmul.mubr.bf16.gmra.mrb[176].mxu0 %v4122_v63 }
 0x187   : > { %v4377_v8 = vpop.eup %4376  ;;  %3972 = vmatprep.mubr.msk.bf16.mxu0 %vm4657_vm0, %v4656_v1 }
 0x188   : > { %v4379_v9 = vpop.eup %4378  ;;  %4388 = vpow2.f32 %v3133_v38  ;;  %v1789_v10 = vpack.c.bf16 %v4377_v8, %v4375_v6  ;;  %v4134_v6 = vld [vmem:[%s5721_s3 + $0xa8] ss:$28 sps:$4 sm:$0xff]  }
 0x189   : > { %v1413_v11 = vadd.f32 1.0, %v4379_v9  ;;  %v840_v43 = vpop.f32.mrb[72].mxu0  ;;  %v4135_v38 = vld [vmem:[%s4711_s26 + $0x180] sm:$0xff]  }
 0x18a   : > { %v4381_v12 = vpop.eup %4380  ;;  %v841_v13 = vadd.f32 %v4815_v36, %v840_v43  ;;  %v3866_v15 = vpop.f32.mrb[73].mxu0  ;;  %3492 = vmatprep.subr.bf16.mxu0 %v1789_v10  ;;  %4048 = vmatprep.subr.bf16.mxu1 %v1789_v10  ;;  %v4136_v10 = vld [vmem:[%s5721_s3 + $0xe4] ss:$28 sps:$4 sm:$0xff]  }
 0x18b   : > { %v1414_v17 = vadd.f32 1.0, %v4381_v12  ;;  %v843_v18 = vpop.f32.mrb[74].mxu0  ;;  %3493 = vmatpush3.bf16.msra.mxu0 %v4884_v60  ;;  %4056 = vmatpush3.bf16.msra.mxu1 %v4884_v60  ;;  %4390 = vrcp.f32 %v1413_v11 }
 0x18c   : > { %v3134_v19 = vmul.f32 -1.442695, %v841_v13  ;;  %v844_v20 = vadd.f32 %v4815_v36, %v843_v18  ;;  %v3867_v22 = vpop.f32.mrb[75].mxu0 }
 0x18d   : > { %4392 = vrcp.f32 %v1414_v17  ;;  %v4383_v23 = vpop.eup %4382 }
 0x18e   : > { %4394 = vpow2.f32 %v3134_v19  ;;  %v3135_v24 = vmul.f32 -1.442695, %v844_v20  ;;  %3973 = vmatmul.mubr.bf16.gmra.mrb[180].mxu0 %v4123_v16 }
 0x18f   : > { %v4385_v54 = vpop.eup %4384  ;;  %3976 = vmatprep.mubr.msk.bf16.mxu0 %vm4657_vm0, %v4656_v1 }
 0x190   : > { %v4387_v26 = vpop.eup %4386  ;;  %4396 = vpow2.f32 %v3135_v24  ;;  %v1790_v27 = vpack.c.bf16 %v4385_v54, %v4383_v23  ;;  %v5004_v23 = vld [vmem:[%s5720_s2] ss:$0 sm:$0xff] }
 0x191   : > { %v1415_v28 = vadd.f32 1.0, %v4387_v26  ;;  %v848_v60 = vpop.f32.mrb[76].mxu0  ;;  %v4138_v26 = vld [vmem:[%s5721_s3 + $0xe0] ss:$28 sps:$4 sm:$0xff]  }
 0x192   : > { %v4389_v29 = vpop.eup %4388  ;;  %v849_v30 = vadd.f32 %v4815_v36, %v848_v60  ;;  %v3870_v31 = vpop.f32.mrb[77].mxu0  ;;  %3494 = vmatprep.subr.bf16.mxu0 %v1790_v27  ;;  %4049 = vmatprep.subr.bf16.mxu1 %v1790_v27  ;;  %v4189_v27 = vld [vmem:[%s5721_s3] ss:$28 sps:$4 sm:$0xff]  }
 0x193   : > { %v1416_v34 = vadd.f32 1.0, %v4389_v29  ;;  %v851_v35 = vpop.f32.mrb[78].mxu0  ;;  %3495 = vmatpush3.bf16.msra.mxu0 %v4891_v14  ;;  %4057 = vmatpush3.bf16.msra.mxu1 %v4891_v14  ;;  %4398 = vrcp.f32 %v1415_v28  ;;  %v4139_v29 = vld [vmem:[%s5721_s3 + $0x11c] ss:$28 sps:$4 sm:$0xff]  }
 0x194   : > { %v3136_v39 = vmul.f32 -1.442695, %v849_v30  ;;  %v852_v40 = vadd.f32 %v4815_v36, %v851_v35  ;;  %v3871_v41 = vpop.f32.mrb[79].mxu0 }
 0x195   : > { %4400 = vrcp.f32 %v1416_v34  ;;  %v4958_v42 = vpop.eup %4390 }
 0x196   : > { %4402 = vpow2.f32 %v3136_v39  ;;  %v3137_v7 = vmul.f32 -1.442695, %v852_v40  ;;  %3977 = vmatmul.mubr.bf16.gmra.mrb[184].mxu0 %v4124_v32  ;;  %2349 = vmatmul.mubr.bf16.vlgmr.msra.gmra.mrb[0].mxu1 %v4126_v33 }
 0x197   : > { %v4960_v44 = vpop.eup %4392  ;;  %3980 = vmatprep.mubr.msk.bf16.mxu0 %vm4657_vm0, %v4656_v1  ;;  %2356 = vmatprep.mubr.bf16.mxu1 %v4129_v37 }
 0x198   : > { %v4395_v14 = vpop.eup %4394  ;;  %4404 = vpow2.f32 %v3137_v7  ;;  %v1791_v45 = vpack.c.bf16 %v4960_v44, %v4958_v42  ;;  %v1771_v44 = vld [vmem:[%s5721_s3 + $0x2a0] sm:$0xff] }
 0x199   : > { %v1417_v46 = vadd.f32 1.0, %v4395_v14  ;;  %v856_v47 = vpop.f32.mrb[80].mxu0 }
 0x19a   : > { %v4397_v48 = vpop.eup %4396  ;;  %v857_v49 = vadd.f32 %v4815_v36, %v856_v47  ;;  %v3874_v50 = vpop.f32.mrb[81].mxu0  ;;  %v4141_v47 = vld [vmem:[%s5721_s3 + $0x118] ss:$28 sps:$4 sm:$0xff]  }
 0x19b   : > { %v1418_v21 = vadd.f32 1.0, %v4397_v48  ;;  %v859_v53 = vpop.f32.mrb[82].mxu0  ;;  %4406 = vrcp.f32 %v1417_v46  ;;  %v4142_v50 = vld [vmem:[%s5721_s3 + $0x154] ss:$28 sps:$4 sm:$0xff]  }
 0x19c   : > { %v3138_v56 = vmul.f32 -1.442695, %v857_v49  ;;  %v860_v57 = vadd.f32 %v4815_v36, %v859_v53  ;;  %v3875_v58 = vpop.f32.mrb[83].mxu0 }
 0x19d   : > { %4408 = vrcp.f32 %v1418_v21  ;;  %v4975_v25 = vpop.eup %4398 }
 0x19e   : > { %4410 = vpow2.f32 %v3138_v56  ;;  %v3139_v59 = vmul.f32 -1.442695, %v860_v57  ;;  %3981 = vmatmul.mubr.bf16.gmra.mrb[188].mxu0 %v4125_v51  ;;  %2357 = vmatmul.mubr.bf16.gmra.mrb[4].mxu1 %v4131_v52 }
 0x19f   : > { %v4977_v61 = vpop.eup %4400  ;;  %2364 = vmatprep.mubr.bf16.mxu1 %v4132_v55  ;;  %3984 = vmatprep.mubr.msk.bf16.mxu0 %vm4657_vm0, %v4656_v1 }
 0x1a0   : > { %v4403_v62 = vpop.eup %4402  ;;  %4412 = vpow2.f32 %v3139_v59  ;;  %v1792_v63 = vpack.c.bf16 %v4977_v61, %v4975_v25 }
 0x1a1   : > { %v1419_v0 = vadd.f32 1.0, %v4403_v62  ;;  %v864_v2 = vpop.f32.mrb[84].mxu0 }
 0x1a2   : > { %v4405_v3 = vpop.eup %4404  ;;  %v865_v4 = vadd.f32 %v4815_v36, %v864_v2  ;;  %v3878_v5 = vpop.f32.mrb[85].mxu0 }
 0x1a3   : > { %v1420_v8 = vadd.f32 1.0, %v4405_v3  ;;  %v867_v9 = vpop.f32.mrb[86].mxu0  ;;  %4414 = vrcp.f32 %v1419_v0 }
 0x1a4   : > { %v3140_v11 = vmul.f32 -1.442695, %v865_v4  ;;  %v868_v43 = vadd.f32 %v4815_v36, %v867_v9  ;;  %v3879_v12 = vpop.f32.mrb[87].mxu0  ;;  %v4191_v36 = vld [vmem:[%s5721_s3 + $0x4] ss:$28 sps:$4 sm:$0xff]  }
 0x1a5   : > { %4416 = vrcp.f32 %v1420_v8  ;;  %v4992_v13 = vpop.eup %4406  ;;  %v4144_v4 = vld [vmem:[%s5721_s3 + $0x150] ss:$28 sps:$4 sm:$0xff]  }
 0x1a6   : > { %4418 = vpow2.f32 %v3140_v11  ;;  %v3141_v15 = vmul.f32 -1.442695, %v868_v43  ;;  %2365 = vmatmul.mubr.bf16.gmra.mrb[8].mxu1 %v4134_v6  ;;  %3985 = vmatmul.mubr.bf16.gmra.mrb[192].mxu0 %v4135_v38  ;;  %v4145_v38 = vld [vmem:[%s5721_s3 + $0x18c] ss:$28 sps:$4 sm:$0xff]  }
 0x1a7   : > { %v4994_v16 = vpop.eup %4408  ;;  %2372 = vmatprep.mubr.bf16.mxu1 %v4136_v10  ;;  %2340 = vmatprep.mubr.bf16.mxu0 %v4191_v36 }
 0x1a8   : > { %v4411_v17 = vpop.eup %4410  ;;  %4420 = vpow2.f32 %v3141_v15  ;;  %v1793_v18 = vpack.c.bf16 %v4994_v16, %v4992_v13 }
 0x1a9   : > { %v1421_v19 = vadd.f32 1.0, %v4411_v17  ;;  %v872_v20 = vpop.f32.mrb[88].mxu0 }
 0x1aa   : > { %v4413_v22 = vpop.eup %4412  ;;  %v873_v24 = vadd.f32 %v5004_v23, %v872_v20  ;;  %v3882_v54 = vpop.f32.mrb[89].mxu0 }
 0x1ab   : > { %v1422_v28 = vadd.f32 1.0, %v4413_v22  ;;  %v875_v60 = vpop.f32.mrb[90].mxu0  ;;  %4422 = vrcp.f32 %v1421_v19  ;;  %v4147_v54 = vld [vmem:[%s5721_s3 + $0x188] ss:$28 sps:$4 sm:$0xff]  }
 0x1ac   : > { %v3142_v30 = vmul.f32 -1.442695, %v873_v24  ;;  %v876_v31 = vadd.f32 %v5004_v23, %v875_v60  ;;  %v3883_v32 = vpop.f32.mrb[91].mxu0 }
 0x1ad   : > { %4424 = vrcp.f32 %v1422_v28  ;;  %v5017_v33 = vpop.eup %4414  ;;  %v4148_v28 = vld [vmem:[%s5721_s3 + $0x1c4] ss:$28 sps:$4 sm:$0xff]  }
 0x1ae   : > { %4426 = vpow2.f32 %v3142_v30  ;;  %v3143_v34 = vmul.f32 -1.442695, %v876_v31  ;;  %2373 = vmatmul.mubr.bf16.gmra.mrb[12].mxu1 %v4138_v26  ;;  %2341 = vmatmul.mubr.bf16.vlgmr.msra.gmra.mrb[196].mxu0 %v4189_v27 }
 0x1af   : > { %v5019_v35 = vpop.eup %4416  ;;  %2380 = vmatprep.mubr.bf16.mxu1 %v4139_v29 }
 0x1b0   : > { %v4419_v37 = vpop.eup %4418  ;;  %4428 = vpow2.f32 %v3143_v34  ;;  %v1794_v39 = vpack.c.bf16 %v5019_v35, %v5017_v33 }
 0x1b1   : > { %v1423_v40 = vadd.f32 1.0, %v4419_v37  ;;  %v880_v41 = vpop.f32.mrb[92].mxu0 }
 0x1b2   : > { %v4421_v7 = vpop.eup %4420  ;;  %v881_v14 = vadd.f32 %v5004_v23, %v880_v41  ;;  %v3886_v46 = vpop.f32.mrb[93].mxu0 }
 0x1b3   : > { %v1424_v48 = vadd.f32 1.0, %v4421_v7  ;;  %v883_v49 = vpop.f32.mrb[94].mxu0  ;;  %4430 = vrcp.f32 %v1423_v40 }
 0x1b4   : > { %v3144_v51 = vmul.f32 -1.442695, %v881_v14  ;;  %v884_v52 = vadd.f32 %v5004_v23, %v883_v49  ;;  %v3887_v21 = vpop.f32.mrb[95].mxu0 }
 0x1b5   : > { %4432 = vrcp.f32 %v1424_v48  ;;  %v5031_v53 = vpop.eup %4422  ;;  %v4150_v48 = vld [vmem:[%s5721_s3 + $0x1c0] ss:$28 sps:$4 sm:$0xff]  }
 0x1b6   : > { %4434 = vpow2.f32 %v3144_v51  ;;  %v3145_v55 = vmul.f32 -1.442695, %v884_v52  ;;  %2381 = vmatmul.mubr.bf16.gmra.mrb[16].mxu1 %v4141_v47  ;;  %v4151_v51 = vld [vmem:[%s5721_s3 + $0x1fc] ss:$28 sps:$4 sm:$0xff]  }
 0x1b7   : > { %v5033_v56 = vpop.eup %4424  ;;  %2388 = vmatprep.mubr.bf16.mxu1 %v4142_v50 }
 0x1b8   : > { %v4427_v57 = vpop.eup %4426  ;;  %4436 = vpow2.f32 %v3145_v55  ;;  %v1795_v58 = vpack.c.bf16 %v5033_v56, %v5031_v53 }
 0x1b9   : > { %v1425_v59 = vadd.f32 1.0, %v4427_v57  ;;  %v888_v62 = vpop.f32.mrb[96].mxu0 }
 0x1ba   : > { %v4429_v0 = vpop.eup %4428  ;;  %v889_v2 = vadd.f32 %v5004_v23, %v888_v62  ;;  %v3890_v3 = vpop.f32.mrb[97].mxu0 }
 0x1bb   : > { %v1426_v5 = vadd.f32 1.0, %v4429_v0  ;;  %v891_v6 = vpop.f32.mrb[98].mxu0  ;;  %4438 = vrcp.f32 %v1425_v59 }
 0x1bc   : > { %v3146_v8 = vmul.f32 -1.442695, %v889_v2  ;;  %v892_v9 = vadd.f32 %v5004_v23, %v891_v6  ;;  %v3891_v10 = vpop.f32.mrb[99].mxu0 }
 0x1bd   : > { %4440 = vrcp.f32 %v1426_v5  ;;  %v5045_v11 = vpop.eup %4430 }
 0x1be   : > { %4442 = vpow2.f32 %v3146_v8  ;;  %v3147_v43 = vmul.f32 -1.442695, %v892_v9  ;;  %2389 = vmatmul.mubr.bf16.gmra.mrb[20].mxu1 %v4144_v4  ;;  %v4153_v8 = vld [vmem:[%s5721_s3 + $0x1f8] ss:$28 sps:$4 sm:$0xff]  }
 0x1bf   : > { %v5047_v12 = vpop.eup %4432  ;;  %2396 = vmatprep.mubr.bf16.mxu1 %v4145_v38 }
 0x1c0   : > { %v4435_v15 = vpop.eup %4434  ;;  %4444 = vpow2.f32 %v3147_v43  ;;  %v1796_v17 = vpack.c.bf16 %v5047_v12, %v5045_v11  ;;  %v4154_v43 = vld [vmem:[%s5721_s3 + $0x234] ss:$28 sps:$4 sm:$0xff]  }
 0x1c1   : > { %v1427_v36 = vadd.f32 1.0, %v4435_v15  ;;  %v896_v19 = vpop.f32.mrb[100].mxu0 }
 0x1c2   : > { %v4437_v20 = vpop.eup %4436  ;;  %v897_v22 = vadd.f32 %v5004_v23, %v896_v19  ;;  %v3894_v24 = vpop.f32.mrb[101].mxu0 }
 0x1c3   : > { %v1428_v26 = vadd.f32 1.0, %v4437_v20  ;;  %v899_v27 = vpop.f32.mrb[102].mxu0  ;;  %4446 = vrcp.f32 %v1427_v36 }
 0x1c4   : > { %v3148_v60 = vmul.f32 -1.442695, %v897_v22  ;;  %v900_v29 = vadd.f32 %v5004_v23, %v899_v27  ;;  %v3895_v30 = vpop.f32.mrb[103].mxu0 }
 0x1c5   : > { %4448 = vrcp.f32 %v1428_v26  ;;  %v5059_v31 = vpop.eup %4438 }
 0x1c6   : > { %4450 = vpow2.f32 %v3148_v60  ;;  %v3149_v32 = vmul.f32 -1.442695, %v900_v29  ;;  %2397 = vmatmul.mubr.bf16.gmra.mrb[24].mxu1 %v4147_v54 }
 0x1c7   : > { %v5061_v34 = vpop.eup %4440  ;;  %2404 = vmatprep.mubr.bf16.mxu1 %v4148_v28 }
 0x1c8   : > { %v4443_v37 = vpop.eup %4442  ;;  %4452 = vpow2.f32 %v3149_v32  ;;  %v1797_v40 = vpack.c.bf16 %v5061_v34, %v5059_v31  ;;  %v4156_v32 = vld [vmem:[%s5721_s3 + $0x230] ss:$28 sps:$4 sm:$0xff]   ;;  %v4162_v34 = vld [vmem:[%s5721_s3 + $0x8] ss:$28 sps:$4 sm:$0xff]  }
 0x1c9   : > { %v1429_v41 = vadd.f32 1.0, %v4443_v37  ;;  %v904_v7 = vpop.f32.mrb[104].mxu0 }
 0x1ca   : > { %v4445_v14 = vpop.eup %4444  ;;  %v905_v46 = vadd.f32 %v5004_v23, %v904_v7  ;;  %v3898_v47 = vpop.f32.mrb[105].mxu0  ;;  %v4157_v7 = vld [vmem:[%s5721_s3 + $0x26c] ss:$28 sps:$4 sm:$0xff]  }
 0x1cb   : > { %v1430_v49 = vadd.f32 1.0, %v4445_v14  ;;  %v907_v50 = vpop.f32.mrb[106].mxu0  ;;  %4454 = vrcp.f32 %v1429_v41 }
 0x1cc   : > { %v3150_v52 = vmul.f32 -1.442695, %v905_v46  ;;  %v908_v21 = vadd.f32 %v5004_v23, %v907_v50  ;;  %v3899_v55 = vpop.f32.mrb[107].mxu0 }
 0x1cd   : > { %4456 = vrcp.f32 %v1430_v49  ;;  %v5073_v57 = vpop.eup %4446 }
 0x1ce   : > { %4458 = vpow2.f32 %v3150_v52  ;;  %v3151_v59 = vmul.f32 -1.442695, %v908_v21  ;;  %2405 = vmatmul.mubr.bf16.gmra.mrb[28].mxu1 %v4150_v48 }
 0x1cf   : > { %v5075_v62 = vpop.eup %4448  ;;  %2412 = vmatprep.mubr.bf16.mxu1 %v4151_v51 }
 0x1d0   : > { %v4451_v0 = vpop.eup %4450  ;;  %4460 = vpow2.f32 %v3151_v59  ;;  %v1798_v2 = vpack.c.bf16 %v5075_v62, %v5073_v57 }
 0x1d1   : > { %v1431_v3 = vadd.f32 1.0, %v4451_v0  ;;  %v912_v4 = vpop.f32.mrb[108].mxu0  ;;  %v4159_v0 = vld [vmem:[%s5721_s3 + $0x268] ss:$28 sps:$4 sm:$0xff]  }
 0x1d2   : > { %v4453_v5 = vpop.eup %4452  ;;  %v913_v6 = vadd.f32 %v5004_v23, %v912_v4  ;;  %v3902_v38 = vpop.f32.mrb[109].mxu0 }
 0x1d3   : > { %v1432_v9 = vadd.f32 1.0, %v4453_v5  ;;  %v915_v10 = vpop.f32.mrb[110].mxu0  ;;  %4462 = vrcp.f32 %v1431_v3  ;;  %v3281_v5 = vcombine.high %v1771_v44, %v1771_v44 }
 0x1d4   : > { %v3152_v15 = vmul.f32 -1.442695, %v913_v6  ;;  %v916_v36 = vadd.f32 %v5004_v23, %v915_v10  ;;  %v3903_v19 = vpop.f32.mrb[111].mxu0 }
 0x1d5   : > { %4464 = vrcp.f32 %v1432_v9  ;;  %v4455_v20 = vpop.eup %4454 }
 0x1d6   : > { %4466 = vpow2.f32 %v3152_v15  ;;  %v3153_v22 = vmul.f32 -1.442695, %v916_v36  ;;  %2413 = vmatmul.mubr.bf16.gmra.mrb[32].mxu1 %v4153_v8 }
 0x1d7   : > { %v4457_v24 = vpop.eup %4456  ;;  %2420 = vmatprep.mubr.bf16.mxu1 %v4154_v43 }
 0x1d8   : > { %v4459_v54 = vpop.eup %4458  ;;  %4468 = vpow2.f32 %v3153_v22  ;;  %v1799_v26 = vpack.c.bf16 %v4457_v24, %v4455_v20  ;;  %v3280_v22 = vcombine.low %v1771_v44, %v1771_v44 }
 0x1d9   : > { %v1433_v27 = vadd.f32 1.0, %v4459_v54  ;;  %v920_v28 = vpop.f32.mrb[112].mxu0 }
 0x1da   : > { %v4461_v60 = vpop.eup %4460  ;;  %v921_v29 = vadd.f32 %v5004_v23, %v920_v28  ;;  %v3906_v30 = vpop.f32.mrb[113].mxu0  ;;  %3574 = vmatprep.subr.bf16.mxu1 %v1799_v26  ;;  %v4164_v26 = vld [vmem:[%s5721_s3 + $0xc] ss:$28 sps:$4 sm:$0xff]  }
 0x1db   : > { %v1434_v37 = vadd.f32 1.0, %v4461_v60  ;;  %v923_v41 = vpop.f32.mrb[114].mxu0  ;;  %3575 = vmatpush3.bf16.msra.mxu1 %v1791_v45  ;;  %4470 = vrcp.f32 %v1433_v27 }
 0x1dc   : > { %v3154_v14 = vmul.f32 -1.442695, %v921_v29  ;;  %v924_v46 = vadd.f32 %v5004_v23, %v923_v41  ;;  %v3907_v47 = vpop.f32.mrb[115].mxu0 }
 0x1dd   : > { %4472 = vrcp.f32 %v1434_v37  ;;  %v4463_v48 = vpop.eup %4462 }
 0x1de   : > { %4474 = vpow2.f32 %v3154_v14  ;;  %v3155_v49 = vmul.f32 -1.442695, %v924_v46  ;;  %2421 = vmatmul.mubr.bf16.gmra.mrb[36].mxu1 %v4156_v32 }
 0x1df   : > { %v4465_v50 = vpop.eup %4464  ;;  %2428 = vmatprep.mubr.bf16.mxu1 %v4157_v7 }
 0x1e0   : > { %v4467_v51 = vpop.eup %4466  ;;  %4476 = vpow2.f32 %v3155_v49  ;;  %v1800_v42 = vpack.c.bf16 %v4465_v50, %v4463_v48 }
 0x1e1   : > { %v1435_v45 = vadd.f32 1.0, %v4467_v51  ;;  %v928_v52 = vpop.f32.mrb[116].mxu0 }
 0x1e2   : > { %v4469_v21 = vpop.eup %4468  ;;  %v929_v55 = vadd.f32 %v5004_v23, %v928_v52  ;;  %v3910_v59 = vpop.f32.mrb[117].mxu0  ;;  %3576 = vmatprep.subr.bf16.mxu1 %v1800_v42 }
 0x1e3   : > { %v1436_v3 = vadd.f32 1.0, %v4469_v21  ;;  %v931_v4 = vpop.f32.mrb[118].mxu0  ;;  %3577 = vmatpush3.bf16.msra.mxu1 %v1792_v63  ;;  %4478 = vrcp.f32 %v1435_v45 }
 0x1e4   : > { %v3156_v6 = vmul.f32 -1.442695, %v929_v55  ;;  %v932_v38 = vadd.f32 %v5004_v23, %v931_v4  ;;  %v3911_v8 = vpop.f32.mrb[119].mxu0 }
 0x1e5   : > { %4480 = vrcp.f32 %v1436_v3  ;;  %v4471_v9 = vpop.eup %4470 }
 0x1e6   : > { %4482 = vpow2.f32 %v3156_v6  ;;  %v3157_v10 = vmul.f32 -1.442695, %v932_v38  ;;  %2429 = vmatmul.mubr.bf16.gmra.mrb[40].mxu1 %v4159_v0 }
 0x1e7   : > { %v4473_v43 = vpop.eup %4472  ;;  %2436 = vmatprep.mubr.bf16.mxu1 %v3281_v5 }
 0x1e8   : > { %v4475_v15 = vpop.eup %4474  ;;  %4484 = vpow2.f32 %v3157_v10  ;;  %v1801_v36 = vpack.c.bf16 %v4473_v43, %v4471_v9 }
 0x1e9   : > { %v1437_v19 = vadd.f32 1.0, %v4475_v15  ;;  %v936_v20 = vpop.f32.mrb[120].mxu0 }
 0x1ea   : > { %v4477_v25 = vpop.eup %4476  ;;  %v937_v61 = vadd.f32 %v5004_v23, %v936_v20  ;;  %v3914_v63 = vpop.f32.mrb[121].mxu0  ;;  %3578 = vmatprep.subr.bf16.mxu1 %v1801_v36 }
 0x1eb   : > { %v1438_v24 = vadd.f32 1.0, %v4477_v25  ;;  %v939_v54 = vpop.f32.mrb[122].mxu0  ;;  %3579 = vmatpush3.bf16.msra.mxu1 %v1793_v18  ;;  %4486 = vrcp.f32 %v1437_v19 }
 0x1ec   : > { %v3158_v27 = vmul.f32 -1.442695, %v937_v61  ;;  %v940_v28 = vadd.f32 %v5004_v23, %v939_v54  ;;  %v3915_v60 = vpop.f32.mrb[123].mxu0 }
 0x1ed   : > { %4488 = vrcp.f32 %v1438_v24  ;;  %v4479_v29 = vpop.eup %4478 }
 0x1ee   : > { %4490 = vpow2.f32 %v3158_v27  ;;  %v3159_v30 = vmul.f32 -1.442695, %v940_v28  ;;  %2437 = vmatmul.mubr.bf16.gmra.mrb[44].mxu1 %v3280_v22 }
 0x1ef   : > { %v4481_v32 = vpop.eup %4480  ;;  %2476 = vmatprep.mubr.bf16.mxu1 %v4164_v26 }
 0x1f0   : > { %v4483_v37 = vpop.eup %4482  ;;  %4492 = vpow2.f32 %v3159_v30  ;;  %v1802_v13 = vpack.c.bf16 %v4481_v32, %v4479_v29 }
 0x1f1   : > { %v1439_v16 = vadd.f32 1.0, %v4483_v37  ;;  %v944_v18 = vpop.f32.mrb[124].mxu0 }
 0x1f2   : > { %v4485_v41 = vpop.eup %4484  ;;  %v945_v7 = vadd.f32 %v5004_v23, %v944_v18  ;;  %v3918_v14 = vpop.f32.mrb[125].mxu0  ;;  %3580 = vmatprep.subr.bf16.mxu1 %v1802_v13 }
 0x1f3   : > { %v1440_v46 = vadd.f32 1.0, %v4485_v41  ;;  %v947_v47 = vpop.f32.mrb[126].mxu0  ;;  %3581 = vmatpush3.bf16.msra.mxu1 %v1794_v39  ;;  %4494 = vrcp.f32 %v1439_v16 }
 0x1f4   : > { %v3160_v48 = vmul.f32 -1.442695, %v945_v7  ;;  %v948_v49 = vadd.f32 %v5004_v23, %v947_v47  ;;  %v3919_v50 = vpop.f32.mrb[127].mxu0 }
 0x1f5   : > { %4496 = vrcp.f32 %v1440_v46  ;;  %v4487_v51 = vpop.eup %4486  ;;  %v4165_v50 = vld [vmem:[%s5721_s3 + $0x44] ss:$28 sps:$4 sm:$0xff]  }
 0x1f6   : > { %4498 = vpow2.f32 %v3160_v48  ;;  %v3161_v42 = vmul.f32 -1.442695, %v948_v49 }
 0x1f7   : > { %v4489_v44 = vpop.eup %4488 }
 0x1f8   : > { %v4491_v45 = vpop.eup %4490  ;;  %4500 = vpow2.f32 %v3161_v42  ;;  %v1803_v52 = vpack.c.bf16 %v4489_v44, %v4487_v51 }
 0x1f9   : > { %v1441_v21 = vadd.f32 1.0, %v4491_v45  ;;  %v952_v55 = vpop.f32.mrb[128].mxu0 }
 0x1fa   : > { %v4493_v59 = vpop.eup %4492  ;;  %v953_v0 = vadd.f32 %v5004_v23, %v952_v55  ;;  %v3922_v33 = vpop.f32.mrb[129].mxu0  ;;  %3582 = vmatprep.subr.bf16.mxu1 %v1803_v52 }
 0x1fb   : > { %v1442_v35 = vadd.f32 1.0, %v4493_v59  ;;  %v955_v39 = vpop.f32.mrb[130].mxu0  ;;  %3583 = vmatpush3.bf16.msra.mxu1 %v1795_v58  ;;  %4502 = vrcp.f32 %v1441_v21 }
 0x1fc   : > { %v3162_v3 = vmul.f32 -1.442695, %v953_v0  ;;  %v956_v4 = vadd.f32 %v5004_v23, %v955_v39  ;;  %v3923_v5 = vpop.f32.mrb[131].mxu0 }
 0x1fd   : > { %4504 = vrcp.f32 %v1442_v35  ;;  %v4495_v6 = vpop.eup %4494  ;;  %v4167_v35 = vld [vmem:[%s5721_s3 + $0x40] ss:$28 sps:$4 sm:$0xff]  }
 0x1fe   : > { %4506 = vpow2.f32 %v3162_v3  ;;  %v3163_v38 = vmul.f32 -1.442695, %v956_v4  ;;  %v4168_v4 = vld [vmem:[%s5721_s3 + $0x7c] ss:$28 sps:$4 sm:$0xff]  }
 0x1ff   : > { %v4497_v8 = vpop.eup %4496 }
 0x200   : > { %v4499_v9 = vpop.eup %4498  ;;  %4508 = vpow2.f32 %v3163_v38  ;;  %v1804_v10 = vpack.c.bf16 %v4497_v8, %v4495_v6 }
 0x201   : > { %v1443_v43 = vadd.f32 1.0, %v4499_v9  ;;  %v960_v15 = vpop.f32.mrb[132].mxu0 }
 0x202   : > { %v4501_v36 = vpop.eup %4500  ;;  %v961_v19 = vadd.f32 %v5004_v23, %v960_v15  ;;  %v3926_v53 = vpop.f32.mrb[133].mxu0  ;;  %3584 = vmatprep.subr.bf16.mxu1 %v1804_v10 }
 0x203   : > { %v1444_v56 = vadd.f32 1.0, %v4501_v36  ;;  %v963_v58 = vpop.f32.mrb[134].mxu0  ;;  %3585 = vmatpush3.bf16.msra.mxu1 %v1796_v17  ;;  %4510 = vrcp.f32 %v1443_v43 }
 0x204   : > { %v3164_v20 = vmul.f32 -1.442695, %v961_v19  ;;  %v964_v25 = vadd.f32 %v5004_v23, %v963_v58  ;;  %v3927_v61 = vpop.f32.mrb[135].mxu0 }
 0x205   : > { %4512 = vrcp.f32 %v1444_v56  ;;  %v4503_v63 = vpop.eup %4502 }
 0x206   : > { %4514 = vpow2.f32 %v3164_v20  ;;  %v3165_v22 = vmul.f32 -1.442695, %v964_v25  ;;  %v4170_v20 = vld [vmem:[%s5721_s3 + $0x78] ss:$28 sps:$4 sm:$0xff]  }
 0x207   : > { %v4505_v24 = vpop.eup %4504 }
 0x208   : > { %v4507_v54 = vpop.eup %4506  ;;  %4516 = vpow2.f32 %v3165_v22  ;;  %v1805_v26 = vpack.c.bf16 %v4505_v24, %v4503_v63  ;;  %v4171_v63 = vld [vmem:[%s5721_s3 + $0xb4] ss:$28 sps:$4 sm:$0xff]  }
 0x209   : > { %v1445_v27 = vadd.f32 1.0, %v4507_v54  ;;  %v968_v28 = vpop.f32.mrb[136].mxu0 }
 0x20a   : > { %v4509_v60 = vpop.eup %4508  ;;  %v969_v29 = vadd.f32 %v5004_v23, %v968_v28  ;;  %v3930_v11 = vpop.f32.mrb[137].mxu0  ;;  %3586 = vmatprep.subr.bf16.mxu1 %v1805_v26 }
 0x20b   : > { %v1446_v12 = vadd.f32 1.0, %v4509_v60  ;;  %v971_v17 = vpop.f32.mrb[138].mxu0  ;;  %3587 = vmatpush3.bf16.msra.mxu1 %v1797_v40  ;;  %4518 = vrcp.f32 %v1445_v27 }
 0x20c   : > { %v3166_v30 = vmul.f32 -1.442695, %v969_v29  ;;  %v972_v32 = vadd.f32 %v5004_v23, %v971_v17  ;;  %v3931_v37 = vpop.f32.mrb[139].mxu0 }
 0x20d   : > { %4520 = vrcp.f32 %v1446_v12  ;;  %v4511_v13 = vpop.eup %4510  ;;  %v4173_v37 = vld [vmem:[%s5721_s3 + $0xb0] ss:$28 sps:$4 sm:$0xff]  }
 0x20e   : > { %4522 = vpow2.f32 %v3166_v30  ;;  %v3167_v16 = vmul.f32 -1.442695, %v972_v32 }
 0x20f   : > { %v4513_v18 = vpop.eup %4512 }
 0x210   : > { %v4515_v41 = vpop.eup %4514  ;;  %4524 = vpow2.f32 %v3167_v16  ;;  %v1806_v7 = vpack.c.bf16 %v4513_v18, %v4511_v13  ;;  %v4174_v18 = vld [vmem:[%s5721_s3 + $0xec] ss:$28 sps:$4 sm:$0xff]  }
 0x211   : > { %v1447_v14 = vadd.f32 1.0, %v4515_v41  ;;  %v976_v46 = vpop.f32.mrb[140].mxu0 }
 0x212   : > { %v4517_v47 = vpop.eup %4516  ;;  %v977_v48 = vadd.f32 %v5004_v23, %v976_v46  ;;  %v3934_v31 = vpop.f32.mrb[141].mxu0  ;;  %3588 = vmatprep.subr.bf16.mxu1 %v1806_v7 }
 0x213   : > { %v1448_v40 = vadd.f32 1.0, %v4517_v47  ;;  %v979_v49 = vpop.f32.mrb[142].mxu0  ;;  %3589 = vmatpush3.bf16.msra.mxu1 %v1798_v2  ;;  %4526 = vrcp.f32 %v1447_v14 }
 0x214   : > { %v3168_v51 = vmul.f32 -1.442695, %v977_v48  ;;  %v980_v42 = vadd.f32 %v5004_v23, %v979_v49  ;;  %v3935_v44 = vpop.f32.mrb[143].mxu0 }
 0x215   : > { %4528 = vrcp.f32 %v1448_v40  ;;  %v5148_v45 = vpop.eup %4518  ;;  %v4176_v44 = vld [vmem:[%s5721_s3 + $0xe8] ss:$28 sps:$4 sm:$0xff]  }
 0x216   : > { %4530 = vpow2.f32 %v3168_v51  ;;  %v3169_v52 = vmul.f32 -1.442695, %v980_v42  ;;  %2477 = vmatmul.mubr.bf16.vlgmr.msra.gmra.mrb[48].mxu1 %v4162_v34 }
 0x217   : > { %v5150_v21 = vpop.eup %4520  ;;  %2484 = vmatprep.mubr.bf16.mxu1 %v4165_v50 }
 0x218   : > { %v4523_v57 = vpop.eup %4522  ;;  %4532 = vpow2.f32 %v3169_v52  ;;  %v1807_v62 = vpack.c.bf16 %v5150_v21, %v5148_v45 }
 0x219   : > { %v1449_v2 = vadd.f32 1.0, %v4523_v57  ;;  %v984_v55 = vpop.f32.mrb[144].mxu0 }
 0x21a   : > { %v4525_v59 = vpop.eup %4524  ;;  %v985_v0 = vadd.f32 %v5004_v23, %v984_v55  ;;  %v3938_v33 = vpop.f32.mrb[145].mxu0 }
 0x21b   : > { %v1450_v39 = vadd.f32 1.0, %v4525_v59  ;;  %v987_v3 = vpop.f32.mrb[146].mxu0  ;;  %4534 = vrcp.f32 %v1449_v2  ;;  %v4177_v2 = vld [vmem:[%s5721_s3 + $0x124] ss:$28 sps:$4 sm:$0xff]  }
 0x21c   : > { %v3170_v5 = vmul.f32 -1.442695, %v985_v0  ;;  %v988_v6 = vadd.f32 %v5004_v23, %v987_v3  ;;  %v3939_v38 = vpop.f32.mrb[147].mxu0 }
 0x21d   : > { %4536 = vrcp.f32 %v1450_v39  ;;  %v5162_v8 = vpop.eup %4526 }
 0x21e   : > { %4538 = vpow2.f32 %v3170_v5  ;;  %v3171_v9 = vmul.f32 -1.442695, %v988_v6  ;;  %2485 = vmatmul.mubr.bf16.gmra.mrb[52].mxu1 %v4167_v35 }
 0x21f   : > { %v5164_v10 = vpop.eup %4528  ;;  %2492 = vmatprep.mubr.bf16.mxu1 %v4168_v4 }
 0x220   : > { %v4531_v43 = vpop.eup %4530  ;;  %4540 = vpow2.f32 %v3171_v9  ;;  %v1808_v15 = vpack.c.bf16 %v5164_v10, %v5162_v8  ;;  %v1772_v10 = vld [vmem:[%s5721_s3 + $0x2a8] sm:$0xff] }
 0x221   : > { %v1451_v36 = vadd.f32 1.0, %v4531_v43  ;;  %v992_v19 = vpop.f32.mrb[148].mxu0 }
 0x222   : > { %v4533_v53 = vpop.eup %4532  ;;  %v993_v56 = vadd.f32 %v5004_v23, %v992_v19  ;;  %v3942_v58 = vpop.f32.mrb[149].mxu0 }
 0x223   : > { %v1452_v25 = vadd.f32 1.0, %v4533_v53  ;;  %v995_v61 = vpop.f32.mrb[150].mxu0  ;;  %4542 = vrcp.f32 %v1451_v36  ;;  %v4179_v36 = vld [vmem:[%s5721_s3 + $0x120] ss:$28 sps:$4 sm:$0xff]  }
 0x224   : > { %v3172_v22 = vmul.f32 -1.442695, %v993_v56  ;;  %v996_v24 = vadd.f32 %v5004_v23, %v995_v61  ;;  %v3943_v54 = vpop.f32.mrb[151].mxu0  ;;  %v4180_v56 = vld [vmem:[%s5721_s3 + $0x15c] ss:$28 sps:$4 sm:$0xff]  }
 0x225   : > { %4544 = vrcp.f32 %v1452_v25  ;;  %v5176_v26 = vpop.eup %4534 }
 0x226   : > { %4546 = vpow2.f32 %v3172_v22  ;;  %v3173_v27 = vmul.f32 -1.442695, %v996_v24  ;;  %2493 = vmatmul.mubr.bf16.gmra.mrb[56].mxu1 %v4170_v20 }
 0x227   : > { %v5178_v28 = vpop.eup %4536  ;;  %2500 = vmatprep.mubr.bf16.mxu1 %v4171_v63 }
 0x228   : > { %v4539_v60 = vpop.eup %4538  ;;  %4548 = vpow2.f32 %v3173_v27  ;;  %v1809_v29 = vpack.c.bf16 %v5178_v28, %v5176_v26 }
 0x229   : > { %v1453_v11 = vadd.f32 1.0, %v4539_v60  ;;  %v1000_v12 = vpop.f32.mrb[152].mxu0 }
 0x22a   : > { %v4541_v17 = vpop.eup %4540  ;;  %v1001_v30 = vadd.f32 %v5004_v23, %v1000_v12  ;;  %v3946_v32 = vpop.f32.mrb[153].mxu0 }
 0x22b   : > { %v1454_v13 = vadd.f32 1.0, %v4541_v17  ;;  %v1003_v16 = vpop.f32.mrb[154].mxu0  ;;  %4550 = vrcp.f32 %v1453_v11 }
 0x22c   : > { %v3174_v41 = vmul.f32 -1.442695, %v1001_v30  ;;  %v1004_v7 = vadd.f32 %v5004_v23, %v1003_v16  ;;  %v3947_v14 = vpop.f32.mrb[155].mxu0  ;;  %v4182_v30 = vld [vmem:[%s5721_s3 + $0x158] ss:$28 sps:$4 sm:$0xff]  }
 0x22d   : > { %4552 = vrcp.f32 %v1454_v13  ;;  %v5190_v46 = vpop.eup %4542  ;;  %v4183_v13 = vld [vmem:[%s5721_s3 + $0x194] ss:$28 sps:$4 sm:$0xff]  }
 0x22e   : > { %4554 = vpow2.f32 %v3174_v41  ;;  %v3175_v47 = vmul.f32 -1.442695, %v1004_v7  ;;  %2501 = vmatmul.mubr.bf16.gmra.mrb[60].mxu1 %v4173_v37 }
 0x22f   : > { %v5192_v48 = vpop.eup %4544  ;;  %2508 = vmatprep.mubr.bf16.mxu1 %v4174_v18 }
 0x230   : > { %v4547_v31 = vpop.eup %4546  ;;  %4556 = vpow2.f32 %v3175_v47  ;;  %v1810_v34 = vpack.c.bf16 %v5192_v48, %v5190_v46 }
 0x231   : > { %v1455_v40 = vadd.f32 1.0, %v4547_v31  ;;  %v1008_v49 = vpop.f32.mrb[156].mxu0 }
 0x232   : > { %v4549_v50 = vpop.eup %4548  ;;  %v1009_v51 = vadd.f32 %v5004_v23, %v1008_v49  ;;  %v3950_v42 = vpop.f32.mrb[157].mxu0 }
 0x233   : > { %v1456_v52 = vadd.f32 1.0, %v4549_v50  ;;  %v1011_v57 = vpop.f32.mrb[158].mxu0  ;;  %4558 = vrcp.f32 %v1455_v40 }
 0x234   : > { %v3176_v55 = vmul.f32 -1.442695, %v1009_v51  ;;  %v1012_v59 = vadd.f32 %v5004_v23, %v1011_v57  ;;  %v3951_v0 = vpop.f32.mrb[159].mxu0 }
 0x235   : > { %4560 = vrcp.f32 %v1456_v52  ;;  %v5204_v33 = vpop.eup %4550  ;;  %v4185_v52 = vld [vmem:[%s5721_s3 + $0x190] ss:$28 sps:$4 sm:$0xff]  }
 0x236   : > { %4562 = vpow2.f32 %v3176_v55  ;;  %v3177_v35 = vmul.f32 -1.442695, %v1012_v59  ;;  %2509 = vmatmul.mubr.bf16.gmra.mrb[64].mxu1 %v4176_v44  ;;  %v4186_v55 = vld [vmem:[%s5721_s3 + $0x1cc] ss:$28 sps:$4 sm:$0xff]  }
 0x237   : > { %v5206_v39 = vpop.eup %4552  ;;  %2516 = vmatprep.mubr.bf16.mxu1 %v4177_v2 }
 0x238   : > { %v4555_v3 = vpop.eup %4554  ;;  %4564 = vpow2.f32 %v3177_v35  ;;  %v1811_v4 = vpack.c.bf16 %v5206_v39, %v5204_v33 }
 0x239   : > { %v1457_v5 = vadd.f32 1.0, %v4555_v3  ;;  %v1016_v6 = vpop.f32.mrb[160].mxu0 }
 0x23a   : > { %v4557_v38 = vpop.eup %4556  ;;  %v1017_v9 = vadd.f32 %v5004_v23, %v1016_v6  ;;  %v3954_v43 = vpop.f32.mrb[161].mxu0 }
 0x23b   : > { %v1458_v19 = vadd.f32 1.0, %v4557_v38  ;;  %v1019_v53 = vpop.f32.mrb[162].mxu0  ;;  %4566 = vrcp.f32 %v1457_v5 }
 0x23c   : > { %v3178_v58 = vmul.f32 -1.442695, %v1017_v9  ;;  %v1020_v20 = vadd.f32 %v5004_v23, %v1019_v53  ;;  %v3955_v25 = vpop.f32.mrb[163].mxu0 }
 0x23d   : > { %4568 = vrcp.f32 %v1458_v19  ;;  %v5218_v61 = vpop.eup %4558 }
 0x23e   : > { %4570 = vpow2.f32 %v3178_v58  ;;  %v3179_v63 = vmul.f32 -1.442695, %v1020_v20  ;;  %2517 = vmatmul.mubr.bf16.gmra.mrb[68].mxu1 %v4179_v36  ;;  %v4188_v58 = vld [vmem:[%s5721_s3 + $0x1c8] ss:$28 sps:$4 sm:$0xff]  }
 0x23f   : > { %v5220_v22 = vpop.eup %4560  ;;  %2524 = vmatprep.mubr.bf16.mxu1 %v4180_v56 }
 0x240   : > { %v4563_v24 = vpop.eup %4562  ;;  %4572 = vpow2.f32 %v3179_v63  ;;  %v1812_v54 = vpack.c.bf16 %v5220_v22, %v5218_v61  ;;  %v4192_v63 = vld [vmem:[%s5721_s3 + $0x204] ss:$28 sps:$4 sm:$0xff]  }
 0x241   : > { %v1459_v27 = vadd.f32 1.0, %v4563_v24  ;;  %v1024_v60 = vpop.f32.mrb[164].mxu0 }
 0x242   : > { %v4565_v11 = vpop.eup %4564  ;;  %v1025_v12 = vadd.f32 %v5004_v23, %v1024_v60  ;;  %v3958_v17 = vpop.f32.mrb[165].mxu0 }
 0x243   : > { %v1460_v32 = vadd.f32 1.0, %v4565_v11  ;;  %v1027_v37 = vpop.f32.mrb[166].mxu0  ;;  %4574 = vrcp.f32 %v1459_v27 }
 0x244   : > { %v3180_v16 = vmul.f32 -1.442695, %v1025_v12  ;;  %v1028_v18 = vadd.f32 %v5004_v23, %v1027_v37  ;;  %v3959_v41 = vpop.f32.mrb[167].mxu0 }
 0x245   : > { %4576 = vrcp.f32 %v1460_v32  ;;  %v5232_v7 = vpop.eup %4566 }
 0x246   : > { %4578 = vpow2.f32 %v3180_v16  ;;  %v3181_v14 = vmul.f32 -1.442695, %v1028_v18  ;;  %2525 = vmatmul.mubr.bf16.gmra.mrb[72].mxu1 %v4182_v30 }
 0x247   : > { %v5234_v47 = vpop.eup %4568  ;;  %2532 = vmatprep.mubr.bf16.mxu1 %v4183_v13 }
 0x248   : > { %v4571_v31 = vpop.eup %4570  ;;  %4580 = vpow2.f32 %v3181_v14  ;;  %v1813_v40 = vpack.c.bf16 %v5234_v47, %v5232_v7  ;;  %v4194_v14 = vld [vmem:[%s5721_s3 + $0x200] ss:$28 sps:$4 sm:$0xff]   ;;  %v4206_v47 = vld [vmem:[%s5721_s3 + $0x4c] ss:$28 sps:$4 sm:$0xff]  }
 0x249   : > { %v1461_v49 = vadd.f32 1.0, %v4571_v31  ;;  %v1032_v50 = vpop.f32.mrb[168].mxu0 }
 0x24a   : > { %v4573_v51 = vpop.eup %4572  ;;  %v1033_v42 = vadd.f32 %v5004_v23, %v1032_v50  ;;  %v3962_v44 = vpop.f32.mrb[169].mxu0  ;;  %v4195_v50 = vld [vmem:[%s5721_s3 + $0x23c] ss:$28 sps:$4 sm:$0xff]  }
 0x24b   : > { %v1462_v57 = vadd.f32 1.0, %v4573_v51  ;;  %v1035_v2 = vpop.f32.mrb[170].mxu0  ;;  %4582 = vrcp.f32 %v1461_v49 }
 0x24c   : > { %v3182_v59 = vmul.f32 -1.442695, %v1033_v42  ;;  %v1036_v0 = vadd.f32 %v5004_v23, %v1035_v2  ;;  %v3963_v35 = vpop.f32.mrb[171].mxu0 }
 0x24d   : > { %4584 = vrcp.f32 %v1462_v57  ;;  %v5246_v3 = vpop.eup %4574 }
 0x24e   : > { %4586 = vpow2.f32 %v3182_v59  ;;  %v3183_v5 = vmul.f32 -1.442695, %v1036_v0  ;;  %2533 = vmatmul.mubr.bf16.gmra.mrb[76].mxu1 %v4185_v52 }
 0x24f   : > { %v5248_v6 = vpop.eup %4576  ;;  %2540 = vmatprep.mubr.bf16.mxu1 %v4186_v55 }
 0x250   : > { %v4579_v38 = vpop.eup %4578  ;;  %4588 = vpow2.f32 %v3183_v5  ;;  %v1814_v9 = vpack.c.bf16 %v5248_v6, %v5246_v3  ;;  %v4197_v5 = vld [vmem:[%s5721_s3 + $0x238] ss:$28 sps:$4 sm:$0xff]   ;;  %v4208_v3 = vld [vmem:[%s5721_s3 + $0x48] ss:$28 sps:$4 sm:$0xff]  }
 0x251   : > { %v1463_v43 = vadd.f32 1.0, %v4579_v38  ;;  %v1040_v36 = vpop.f32.mrb[172].mxu0 }
 0x252   : > { %v4581_v19 = vpop.eup %4580  ;;  %v1041_v53 = vadd.f32 %v5004_v23, %v1040_v36  ;;  %v3966_v56 = vpop.f32.mrb[173].mxu0  ;;  %v4198_v36 = vld [vmem:[%s5721_s3 + $0x274] ss:$28 sps:$4 sm:$0xff]  }
 0x253   : > { %v1464_v20 = vadd.f32 1.0, %v4581_v19  ;;  %v1043_v25 = vpop.f32.mrb[174].mxu0  ;;  %4590 = vrcp.f32 %v1463_v43 }
 0x254   : > { %v3184_v24 = vmul.f32 -1.442695, %v1041_v53  ;;  %v1044_v27 = vadd.f32 %v5004_v23, %v1043_v25  ;;  %v3967_v60 = vpop.f32.mrb[175].mxu0 }
 0x255   : > { %4592 = vrcp.f32 %v1464_v20  ;;  %v4583_v11 = vpop.eup %4582 }
 0x256   : > { %4594 = vpow2.f32 %v3184_v24  ;;  %v3185_v12 = vmul.f32 -1.442695, %v1044_v27  ;;  %2541 = vmatmul.mubr.bf16.gmra.mrb[80].mxu1 %v4188_v58 }
 0x257   : > { %v4585_v17 = vpop.eup %4584  ;;  %2548 = vmatprep.mubr.bf16.mxu1 %v4192_v63 }
 0x258   : > { %v4587_v30 = vpop.eup %4586  ;;  %4596 = vpow2.f32 %v3185_v12  ;;  %v1815_v32 = vpack.c.bf16 %v4585_v17, %v4583_v11  ;;  %v4200_v17 = vld [vmem:[%s5721_s3 + $0x270] ss:$28 sps:$4 sm:$0xff]  }
 0x259   : > { %v1465_v37 = vadd.f32 1.0, %v4587_v30  ;;  %v1048_v13 = vpop.f32.mrb[176].mxu0 }
 0x25a   : > { %v4589_v16 = vpop.eup %4588  ;;  %v1049_v18 = vadd.f32 %v5004_v23, %v1048_v13  ;;  %v3970_v41 = vpop.f32.mrb[177].mxu0  ;;  %3668 = vmatprep.subr.bf16.mxu1 %v1815_v32  ;;  %v5273_v23 = vld [vmem:[%s5720_s2] ss:$0 sm:$0xff]  ;;  %v3283_v13 = vcombine.high %v1772_v10, %v1772_v10 }
 0x25b   : > { %v1466_v31 = vadd.f32 1.0, %v4589_v16  ;;  %v1051_v49 = vpop.f32.mrb[178].mxu0  ;;  %3669 = vmatpush3.bf16.msra.mxu1 %v1807_v62  ;;  %4598 = vrcp.f32 %v1465_v37 }
 0x25c   : > { %v3186_v51 = vmul.f32 -1.442695, %v1049_v18  ;;  %v1052_v42 = vadd.f32 %v5273_v23, %v1051_v49  ;;  %v3971_v44 = vpop.f32.mrb[179].mxu0 }
 0x25d   : > { %4600 = vrcp.f32 %v1466_v31  ;;  %v4591_v52 = vpop.eup %4590 }
 0x25e   : > { %4602 = vpow2.f32 %v3186_v51  ;;  %v3187_v57 = vmul.f32 -1.442695, %v1052_v42  ;;  %2549 = vmatmul.mubr.bf16.gmra.mrb[84].mxu1 %v4194_v14 }
 0x25f   : > { %v4593_v45 = vpop.eup %4592  ;;  %2556 = vmatprep.mubr.bf16.mxu1 %v4195_v50 }
 0x260   : > { %v4595_v21 = vpop.eup %4594  ;;  %4604 = vpow2.f32 %v3187_v57  ;;  %v1816_v62 = vpack.c.bf16 %v4593_v45, %v4591_v52 }
 0x261   : > { %v1467_v2 = vadd.f32 1.0, %v4595_v21  ;;  %v1056_v55 = vpop.f32.mrb[180].mxu0 }
 0x262   : > { %v4597_v59 = vpop.eup %4596  ;;  %v1057_v0 = vadd.f32 %v5273_v23, %v1056_v55  ;;  %v3974_v35 = vpop.f32.mrb[181].mxu0  ;;  %3670 = vmatprep.subr.bf16.mxu1 %v1816_v62 }
 0x263   : > { %v1468_v38 = vadd.f32 1.0, %v4597_v59  ;;  %v1059_v43 = vpop.f32.mrb[182].mxu0  ;;  %3671 = vmatpush3.bf16.msra.mxu1 %v1808_v15  ;;  %4606 = vrcp.f32 %v1467_v2  ;;  %v3282_v2 = vcombine.low %v1772_v10, %v1772_v10  ;;  %v4205_v35 = vld [vmem:[%s5721_s3 + $0x14] ss:$28 sps:$4 sm:$0xff]  }
 0x264   : > { %v3188_v19 = vmul.f32 -1.442695, %v1057_v0  ;;  %v1060_v53 = vadd.f32 %v5273_v23, %v1059_v43  ;;  %v3975_v56 = vpop.f32.mrb[183].mxu0 }
 0x265   : > { %4608 = vrcp.f32 %v1468_v38  ;;  %v4599_v58 = vpop.eup %4598 }
 0x266   : > { %4610 = vpow2.f32 %v3188_v19  ;;  %v3189_v20 = vmul.f32 -1.442695, %v1060_v53  ;;  %2557 = vmatmul.mubr.bf16.gmra.mrb[88].mxu1 %v4197_v5 }
 0x267   : > { %v4601_v25 = vpop.eup %4600  ;;  %2564 = vmatprep.mubr.bf16.mxu1 %v4198_v36 }
 0x268   : > { %v4603_v63 = vpop.eup %4602  ;;  %4612 = vpow2.f32 %v3189_v20  ;;  %v1817_v8 = vpack.c.bf16 %v4601_v25, %v4599_v58 }
 0x269   : > { %v1469_v15 = vadd.f32 1.0, %v4603_v63  ;;  %v1064_v24 = vpop.f32.mrb[184].mxu0  ;;  %v3502_v27 = vpop.f32.mrb[0].mxu1 }
 0x26a   : > { %v4605_v60 = vpop.eup %4604  ;;  %v1065_v11 = vadd.f32 %v5273_v23, %v1064_v24  ;;  %v3978_v12 = vpop.f32.mrb[185].mxu0  ;;  %3672 = vmatprep.subr.bf16.mxu1 %v1817_v8 }
 0x26b   : > { %v3503_v30 = vpop.f32.mrb[1].mxu1  ;;  %v1470_v32 = vadd.f32 1.0, %v4605_v60  ;;  %v1067_v37 = vpop.f32.mrb[186].mxu0  ;;  %3673 = vmatpush3.bf16.msra.mxu1 %v1809_v29  ;;  %4614 = vrcp.f32 %v1469_v15 }
 0x26c   : > { %v5297_v16 = vadd.f32 %v3503_v30, %v3502_v27  ;;  %v3505_v18 = vpop.f32.mrb[2].mxu1  ;;  %v3190_v41 = vmul.f32 -1.442695, %v1065_v11  ;;  %v1068_v14 = vadd.f32 %v5273_v23, %v1067_v37  ;;  %v3979_v31 = vpop.f32.mrb[187].mxu0 }
 0x26d   : > { %v3506_v49 = vpop.f32.mrb[3].mxu1  ;;  %4616 = vrcp.f32 %v1470_v32  ;;  %v4607_v51 = vpop.eup %4606 }
 0x26e   : > { %v5300_v50 = vadd.f32 %v3506_v49, %v3505_v18  ;;  %4618 = vpow2.f32 %v3190_v41  ;;  %v3191_v42 = vmul.f32 -1.442695, %v1068_v14  ;;  %2565 = vmatmul.mubr.bf16.gmra.mrb[92].mxu1 %v4200_v17 }
 0x26f   : > { %v4609_v44 = vpop.eup %4608  ;;  %2572 = vmatprep.mubr.bf16.mxu1 %v3283_v13 }
 0x270   : > { %v4611_v26 = vpop.eup %4610  ;;  %4620 = vpow2.f32 %v3191_v42  ;;  %v1818_v28 = vpack.c.bf16 %v4609_v44, %v4607_v51 }
 0x271   : > { %v1471_v29 = vadd.f32 1.0, %v4611_v26  ;;  %v1072_v52 = vpop.f32.mrb[188].mxu0  ;;  %v3508_v57 = vpop.f32.mrb[4].mxu1 }
 0x272   : > { %v4613_v45 = vpop.eup %4612  ;;  %v1073_v21 = vadd.f32 %v5273_v23, %v1072_v52  ;;  %v3982_v62 = vpop.f32.mrb[189].mxu0  ;;  %3674 = vmatprep.subr.bf16.mxu1 %v1818_v28 }
 0x273   : > { %v3509_v55 = vpop.f32.mrb[5].mxu1  ;;  %v1472_v59 = vadd.f32 1.0, %v4613_v45  ;;  %v1075_v0 = vpop.f32.mrb[190].mxu0  ;;  %3675 = vmatpush3.bf16.msra.mxu1 %v1810_v34  ;;  %4622 = vrcp.f32 %v1471_v29 }
 0x274   : > { %v5309_v5 = vadd.f32 %v3509_v55, %v3508_v57  ;;  %v3511_v38 = vpop.f32.mrb[6].mxu1  ;;  %v3192_v43 = vmul.f32 -1.442695, %v1073_v21  ;;  %v1076_v36 = vadd.f32 %v5273_v23, %v1075_v0  ;;  %v3983_v19 = vpop.f32.mrb[191].mxu0 }
 0x275   : > { %v3512_v53 = vpop.f32.mrb[7].mxu1  ;;  %4624 = vrcp.f32 %v1472_v59  ;;  %v4615_v58 = vpop.eup %4614 }
 0x276   : > { %v5312_v56 = vadd.f32 %v3512_v53, %v3511_v38  ;;  %4626 = vpow2.f32 %v3192_v43  ;;  %v3193_v46 = vmul.f32 -1.442695, %v1076_v36  ;;  %2573 = vmatmul.mubr.bf16.gmra.mrb[96].mxu1 %v3282_v2 }
 0x277   : > { %v4617_v48 = vpop.eup %4616  ;;  %2612 = vmatprep.mubr.bf16.mxu1 %v4205_v35 }
 0x278   : > { %v4619_v34 = vpop.eup %4618  ;;  %4628 = vpow2.f32 %v3193_v46  ;;  %v1819_v20 = vpack.c.bf16 %v4617_v48, %v4615_v58 }
 0x279   : > { %v1473_v25 = vadd.f32 1.0, %v4619_v34  ;;  %v1080_v63 = vpop.f32.mrb[192].mxu0  ;;  %v3514_v8 = vpop.f32.mrb[8].mxu1 }
 0x27a   : > { %v4621_v10 = vpop.eup %4620  ;;  %3676 = vmatprep.subr.bf16.mxu1 %v1819_v20  ;;  %v1081_v15 = vadd.f32 %v5273_v23, %v1080_v63  ;;  %v3986_v24 = vpop.f32.mrb[193].mxu0 }
 0x27b   : > { %v3515_v27 = vpop.f32.mrb[9].mxu1  ;;  %v1474_v60 = vadd.f32 1.0, %v4621_v10  ;;  %3677 = vmatpush3.bf16.msra.mxu1 %v1811_v4  ;;  %v1083_v11 = vpop.f32.mrb[194].mxu0  ;;  %4630 = vrcp.f32 %v1473_v25  ;;  %v4203_v25 = vld [vmem:[%s5721_s3 + $0x10] ss:$28 sps:$4 sm:$0xff]  }
 0x27c   : > { %v5318_v12 = vadd.f32 %v3515_v27, %v3514_v8  ;;  %v3517_v17 = vpop.f32.mrb[10].mxu1  ;;  %v3194_v30 = vmul.f32 -1.442695, %v1081_v15  ;;  %v1084_v32 = vadd.f32 %v5273_v23, %v1083_v11  ;;  %v3987_v37 = vpop.f32.mrb[195].mxu0 }
 0x27d   : > { %v3518_v13 = vpop.f32.mrb[11].mxu1  ;;  %4632 = vrcp.f32 %v1474_v60  ;;  %v4623_v41 = vpop.eup %4622 }
 0x27e   : > { %v5321_v18 = vadd.f32 %v3518_v13, %v3517_v17  ;;  %4634 = vpow2.f32 %v3194_v30  ;;  %v3195_v14 = vmul.f32 -1.442695, %v1084_v32  ;;  %v4211_v13 = vld [vmem:[%s5721_s3 + $0x80] ss:$28 sps:$4 sm:$0xff]  }
 0x27f   : > { %v4625_v31 = vpop.eup %4624 }
 0x280   : > { %v4627_v49 = vpop.eup %4626  ;;  %v1820_v33 = vpack.c.bf16 %v4625_v31, %v4623_v41  ;;  %4636 = vpow2.f32 %v3195_v14  ;;  %v4212_v14 = vld [vmem:[%s5721_s3 + $0xbc] ss:$28 sps:$4 sm:$0xff]  }
 0x281   : > { %v1475_v39 = vadd.f32 1.0, %v4627_v49  ;;  %v3520_v4 = vpop.f32.mrb[12].mxu1  ;;  %v3496_v51 = vpop.f32.mrb[196].mxu0 }
 0x282   : > { %v4629_v42 = vpop.eup %4628  ;;  %3678 = vmatprep.subr.bf16.mxu1 %v1820_v33  ;;  %v3521_v44 = vpop.f32.mrb[13].mxu1 }
 0x283   : > { %v3497_v26 = vpop.f32.mrb[197].mxu0  ;;  %v1476_v23 = vadd.f32 1.0, %v4629_v42  ;;  %3679 = vmatpush3.bf16.msra.mxu1 %v1812_v54  ;;  %v5326_v28 = vadd.f32 %v3521_v44, %v3520_v4  ;;  %v3523_v29 = vpop.f32.mrb[14].mxu1  ;;  %4638 = vrcp.f32 %v1475_v39  ;;  %v4215_v44 = vld [vmem:[%s5721_s3 + $0xf4] ss:$28 sps:$4 sm:$0xff]  }
 0x284   : > { %v5328_v52 = vadd.f32 %v3497_v26, %v3496_v51  ;;  %v3499_v57 = vpop.f32.mrb[198].mxu0  ;;  %v3524_v45 = vpop.f32.mrb[15].mxu1  ;;  %v4214_v51 = vld [vmem:[%s5721_s3 + $0xb8] ss:$28 sps:$4 sm:$0xff]  }
 0x285   : > { %v3500_v21 = vpop.f32.mrb[199].mxu0  ;;  %4640 = vrcp.f32 %v1476_v23  ;;  %v5330_v62 = vadd.f32 %v3524_v45, %v3523_v29  ;;  %v4631_v55 = vpop.eup %4630 }
 0x286   : > { %v5332_v2 = vadd.f32 %v3500_v21, %v3499_v57  ;;  %v4217_v21 = vld [vmem:[%s5721_s3 + $0xf0] ss:$28 sps:$4 sm:$0xff]  }
 0x287   : > { %v4633_v59 = vpop.eup %4632 }
 0x288   : > { %v4635_v0 = vpop.eup %4634  ;;  %v1821_v35 = vpack.c.bf16 %v4633_v59, %v4631_v55  ;;  %v4218_v59 = vld [vmem:[%s5721_s3 + $0x12c] ss:$28 sps:$4 sm:$0xff]  }
 0x289   : > { %v1477_v61 = vadd.f32 1.0, %v4635_v0  ;;  %v3526_v22 = vpop.f32.mrb[16].mxu1 }
 0x28a   : > { %v4637_v54 = vpop.eup %4636  ;;  %3680 = vmatprep.subr.bf16.mxu1 %v1821_v35  ;;  %v3527_v38 = vpop.f32.mrb[17].mxu1 }
 0x28b   : > { %3681 = vmatpush3.bf16.msra.mxu1 %v1813_v40  ;;  %4642 = vrcp.f32 %v1477_v61  ;;  %v1478_v43 = vadd.f32 1.0, %v4637_v54  ;;  %v5337_v36 = vadd.f32 %v3527_v38, %v3526_v22  ;;  %v3529_v19 = vpop.f32.mrb[18].mxu1  ;;  %v4220_v38 = vld [vmem:[%s5721_s3 + $0x128] ss:$28 sps:$4 sm:$0xff]  }
 0x28c   : > { %v3530_v53 = vpop.f32.mrb[19].mxu1 }
 0x28d   : > { %4644 = vrcp.f32 %v1478_v43  ;;  %v5339_v58 = vadd.f32 %v3530_v53, %v3529_v19  ;;  %v4639_v46 = vpop.eup %4638  ;;  %v4221_v19 = vld [vmem:[%s5721_s3 + $0x164] ss:$28 sps:$4 sm:$0xff]  }
 0x28f   : > { %v4641_v48 = vpop.eup %4640 }
 0x290   : > { %v1822_v34 = vpack.c.bf16 %v4641_v48, %v4639_v46 }
 0x291   : > { %v3532_v20 = vpop.f32.mrb[20].mxu1 }
 0x292   : > { %3682 = vmatprep.subr.bf16.mxu1 %v1822_v34  ;;  %v3533_v7 = vpop.f32.mrb[21].mxu1 }
 0x293   : > { %3683 = vmatpush3.bf16.msra.mxu1 %v1814_v9  ;;  %v5350_v40 = vadd.f32 %v3533_v7, %v3532_v20  ;;  %v3535_v63 = vpop.f32.mrb[22].mxu1  ;;  %v4209_v9 = vld [vmem:[%s5721_s3 + $0x84] ss:$28 sps:$4 sm:$0xff]  }
 0x294   : > { %3988 = vmatprep.subr.bf16.mxu1 %v4656_v1  ;;  %v3536_v8 = vpop.f32.mrb[23].mxu1 }
 0x295   : > { %v4643_v10 = vpop.eup %4642  ;;  %v5353_v15 = vadd.f32 %v3536_v8, %v3535_v63 }
 0x296   : > { %2613 = vmatmul.mubr.bf16.vlgmr.msra.gmra.mrb[100].mxu1 %v4203_v25  ;;  %v4223_v25 = vld [vmem:[%s5721_s3 + $0x160] ss:$28 sps:$4 sm:$0xff]  }
 0x297   : > { %v4645_v24 = vpop.eup %4644  ;;  %2620 = vmatprep.mubr.bf16.mxu1 %v4206_v47  ;;  %v4224_v47 = vld [vmem:[%s5721_s3 + $0x19c] ss:$28 sps:$4 sm:$0xff]  }
 0x298   : > { %v1823_v27 = vpack.c.bf16 %v4645_v24, %v4643_v10  ;;  %v4226_v24 = vld [vmem:[%s5721_s3 + $0x198] ss:$28 sps:$4 sm:$0xff]  }
 0x299   : > { %v3538_v60 = vpop.f32.mrb[24].mxu1 }
 0x29a   : > { %3989 = vmatpush3.bf16.msra.mxu1 %v1823_v27  ;;  %v3539_v6 = vpop.f32.mrb[25].mxu1  ;;  %v4227_v27 = vld [vmem:[%s5721_s3 + $0x1d4] ss:$28 sps:$4 sm:$0xff]  }
 0x29b   : > { %v5361_v11 = vadd.f32 %v3539_v6, %v3538_v60  ;;  %v3541_v17 = vpop.f32.mrb[26].mxu1  ;;  %v4229_v60 = vld [vmem:[%s5721_s3 + $0x1d0] ss:$28 sps:$4 sm:$0xff]   ;;  %v4232_v6 = vld [vmem:[%s5721_s3 + $0x208] ss:$28 sps:$4 sm:$0xff]  }
 0x29c   : > { %v3542_v30 = vpop.f32.mrb[27].mxu1 }
 0x29d   : > { %v5363_v32 = vadd.f32 %v3542_v30, %v3541_v17  ;;  %v4235_v17 = vld [vmem:[%s5721_s3 + $0x240] ss:$28 sps:$4 sm:$0xff]  }
 0x29e   : > { %2621 = vmatmul.mubr.bf16.gmra.mrb[104].mxu1 %v4208_v3  ;;  %v4230_v3 = vld [vmem:[%s5721_s3 + $0x20c] ss:$28 sps:$4 sm:$0xff]   ;;  %v4236_v30 = vld [vmem:[%s5721_s3 + $0x27c] ss:$28 sps:$4 sm:$0xff]  }
 0x29f   : > { %2628 = vmatprep.mubr.bf16.mxu1 %v4209_v9  ;;  %v4233_v9 = vld [vmem:[%s5721_s3 + $0x244] ss:$28 sps:$4 sm:$0xff]  }
 0x2a1   : > { %v3544_v37 = vpop.f32.mrb[28].mxu1 }
 0x2a2   : > { %v3545_v41 = vpop.f32.mrb[29].mxu1 }
 0x2a3   : > { %v5371_v31 = vadd.f32 %v3545_v41, %v3544_v37  ;;  %v3547_v49 = vpop.f32.mrb[30].mxu1  ;;  %v1773_v37 = vld [vmem:[%s5721_s3 + $0x2b0] sm:$0xff] }
 0x2a4   : > { %v3548_v33 = vpop.f32.mrb[31].mxu1 }
 0x2a5   : > { %v5373_v39 = vadd.f32 %v3548_v33, %v3547_v49 }
 0x2a6   : > { %2629 = vmatmul.mubr.bf16.gmra.mrb[108].mxu1 %v4211_v13 }
 0x2a7   : > { %2636 = vmatprep.mubr.bf16.mxu1 %v4212_v14  ;;  %v4238_v14 = vld [vmem:[%s5721_s3 + $0x278] ss:$28 sps:$4 sm:$0xff]  }
 0x2a9   : > { %v3550_v4 = vpop.f32.mrb[32].mxu1 }
 0x2aa   : > { %v3551_v42 = vpop.f32.mrb[33].mxu1 }
 0x2ab   : > { %v5381_v26 = vadd.f32 %v3551_v42, %v3550_v4  ;;  %v3553_v23 = vpop.f32.mrb[34].mxu1  ;;  %v3285_v4 = vcombine.high %v1773_v37, %v1773_v37 }
 0x2ac   : > { %v3554_v29 = vpop.f32.mrb[35].mxu1 }
 0x2ad   : > { %v5383_v57 = vadd.f32 %v3554_v29, %v3553_v23 }
 0x2ae   : > { %2637 = vmatmul.mubr.bf16.gmra.mrb[112].mxu1 %v4214_v51 }
 0x2af   : > { %2644 = vmatprep.mubr.bf16.mxu1 %v4215_v44 }
 0x2b1   : > { %v3556_v45 = vpop.f32.mrb[36].mxu1 }
 0x2b2   : > { %v3557_v55 = vpop.f32.mrb[37].mxu1 }
 0x2b3   : > { %v5391_v0 = vadd.f32 %v3557_v55, %v3556_v45  ;;  %v3559_v35 = vpop.f32.mrb[38].mxu1 }
 0x2b4   : > { %v3560_v61 = vpop.f32.mrb[39].mxu1 }
 0x2b5   : > { %v5393_v22 = vadd.f32 %v3560_v61, %v3559_v35 }
 0x2b6   : > { %2645 = vmatmul.mubr.bf16.gmra.mrb[116].mxu1 %v4217_v21  ;;  %v3284_v21 = vcombine.low %v1773_v37, %v1773_v37 }
 0x2b7   : > { %2652 = vmatprep.mubr.bf16.mxu1 %v4218_v59 }
 0x2b9   : > { %v3562_v54 = vpop.f32.mrb[40].mxu1 }
 0x2ba   : > { %v3563_v43 = vpop.f32.mrb[41].mxu1 }
 0x2bb   : > { %v5401_v53 = vadd.f32 %v3563_v43, %v3562_v54  ;;  %v3565_v46 = vpop.f32.mrb[42].mxu1  ;;  %v4241_v43 = vld [vmem:[%s5721_s3 + $0x18] ss:$28 sps:$4 sm:$0xff]  }
 0x2bc   : > { %v3566_v48 = vpop.f32.mrb[43].mxu1 }
 0x2bd   : > { %v5403_v34 = vadd.f32 %v3566_v48, %v3565_v46 }
 0x2be   : > { %2653 = vmatmul.mubr.bf16.gmra.mrb[120].mxu1 %v4220_v38 }
 0x2bf   : > { %2660 = vmatprep.mubr.bf16.mxu1 %v4221_v19 }
 0x2c1   : > { %v3568_v20 = vpop.f32.mrb[44].mxu1 }
 0x2c2   : > { %v3569_v7 = vpop.f32.mrb[45].mxu1 }
 0x2c3   : > { %v5411_v63 = vadd.f32 %v3569_v7, %v3568_v20  ;;  %v3571_v8 = vpop.f32.mrb[46].mxu1 }
 0x2c4   : > { %v3572_v10 = vpop.f32.mrb[47].mxu1 }
 0x2c6   : > { %2661 = vmatmul.mubr.bf16.gmra.mrb[124].mxu1 %v4223_v25 }
 0x2c7   : > { %2668 = vmatprep.mubr.bf16.mxu1 %v4224_v47  ;;  %v4242_v47 = vld [vmem:[%s5721_s3 + $0x50] ss:$28 sps:$4 sm:$0xff]  }
 0x2ce   : > { %2669 = vmatmul.mubr.bf16.gmra.mrb[128].mxu1 %v4226_v24 }
 0x2cf   : > { %2676 = vmatprep.mubr.bf16.mxu1 %v4227_v27 }
 0x2d6   : > { %2677 = vmatmul.mubr.bf16.gmra.mrb[132].mxu1 %v4229_v60 }
 0x2d7   : > { %2684 = vmatprep.mubr.bf16.mxu1 %v4230_v3 }
 0x2de   : > { %2685 = vmatmul.mubr.bf16.gmra.mrb[136].mxu1 %v4232_v6  ;;  %v4243_v6 = vld [vmem:[%s5721_s3 + $0x88] ss:$28 sps:$4 sm:$0xff]  }
 0x2df   : > { %2692 = vmatprep.mubr.bf16.mxu1 %v4233_v9 }
 0x2e6   : > { %2693 = vmatmul.mubr.bf16.gmra.mrb[140].mxu1 %v4235_v17 }
 0x2e7   : > { %2700 = vmatprep.mubr.bf16.mxu1 %v4236_v30 }
 0x2e9   : > { %v3590_v13 = vpop.f32.mrb[48].mxu1 }
 0x2ea   : > { %v3591_v41 = vpop.f32.mrb[49].mxu1 }
 0x2eb   : > { %v3592_v49 = vadd.f32 %v3591_v41, %v3590_v13  ;;  %v3593_v33 = vpop.f32.mrb[50].mxu1 }
 0x2ec   : > { %v3594_v51 = vpop.f32.mrb[51].mxu1 }
 0x2ed   : > { %v3595_v42 = vadd.f32 %v3594_v51, %v3593_v33  ;;  %v5444_v44 = vadd.f32 %v3592_v49, %v5328_v52 }
 0x2ee   : > { %2701 = vmatmul.mubr.bf16.gmra.mrb[144].mxu1 %v4238_v14  ;;  %v4244_v14 = vld [vmem:[%s5721_s3 + $0xc0] ss:$28 sps:$4 sm:$0xff]  }
 0x2ef   : > { %2708 = vmatprep.mubr.bf16.mxu1 %v3285_v4  ;;  %v5447_v23 = vadd.f32 %v3595_v42, %v5332_v2 }
 0x2f1   : > { %v3596_v29 = vpop.f32.mrb[52].mxu1 }
 0x2f2   : > { %v3597_v45 = vpop.f32.mrb[53].mxu1 }
 0x2f3   : > { %v3598_v55 = vadd.f32 %v3597_v45, %v3596_v29  ;;  %v3599_v59 = vpop.f32.mrb[54].mxu1  ;;  %v4245_v45 = vld [vmem:[%s5721_s3 + $0xf8] ss:$28 sps:$4 sm:$0xff]  }
 0x2f4   : > { %v3600_v35 = vpop.f32.mrb[55].mxu1 }
 0x2f5   : > { %v5450_v61 = vadd.f32 %v3598_v55, %v5297_v16  ;;  %v3601_v54 = vadd.f32 %v3600_v35, %v3599_v59 }
 0x2f6   : > { %2709 = vmatmul.mubr.bf16.gmra.mrb[148].mxu1 %v3284_v21 }
 0x2f7   : > { %v5453_v38 = vadd.f32 %v3601_v54, %v5300_v50  ;;  %3990 = vmatprep.mubr.msk.bf16.mxu1 %vm4657_vm0, %v4656_v1 }
 0x2f9   : > { %v3602_v52 = vpop.f32.mrb[56].mxu1 }
 0x2fa   : > { %v3603_v2 = vpop.f32.mrb[57].mxu1 }
 0x2fb   : > { %v3604_v19 = vadd.f32 %v3603_v2, %v3602_v52  ;;  %v3605_v46 = vpop.f32.mrb[58].mxu1  ;;  %v4246_v2 = vld [vmem:[%s5721_s3 + $0x130] ss:$28 sps:$4 sm:$0xff]  }
 0x2fc   : > { %v3606_v48 = vpop.f32.mrb[59].mxu1 }
 0x2fd   : > { %v5461_v16 = vadd.f32 %v3604_v19, %v5309_v5  ;;  %v3607_v20 = vadd.f32 %v3606_v48, %v3605_v46 }
 0x2fe   : > { %3991 = vmatmul.mubr.msk.bf16.vlgmr.msra.gmra.mrb[152].mxu1 %vm2268_vm1, %v4241_v43 }
 0x2ff   : > { %v5465_v50 = vadd.f32 %v3607_v20, %v5312_v56  ;;  %3994 = vmatprep.mubr.msk.bf16.mxu1 %vm4657_vm0, %v4656_v1 }
 0x301   : > { %v3608_v25 = vpop.f32.mrb[60].mxu1 }
 0x302   : > { %v3609_v7 = vpop.f32.mrb[61].mxu1 }
 0x303   : > { %v3610_v8 = vadd.f32 %v3609_v7, %v3608_v25  ;;  %v3611_v10 = vpop.f32.mrb[62].mxu1  ;;  %v4247_v7 = vld [vmem:[%s5721_s3 + $0x168] ss:$28 sps:$4 sm:$0xff]  }
 0x304   : > { %v3612_v24 = vpop.f32.mrb[63].mxu1 }
 0x305   : > { %v5473_v5 = vadd.f32 %v3610_v8, %v5318_v12  ;;  %v3613_v27 = vadd.f32 %v3612_v24, %v3611_v10 }
 0x306   : > { %3995 = vmatmul.mubr.msk.bf16.gmra.mrb[156].mxu1 %vm2268_vm1, %v4242_v47 }
 0x307   : > { %v5477_v56 = vadd.f32 %v3613_v27, %v5321_v18  ;;  %3998 = vmatprep.mubr.msk.bf16.mxu1 %vm4657_vm0, %v4656_v1 }
 0x309   : > { %v3614_v60 = vpop.f32.mrb[64].mxu1 }
 0x30a   : > { %v3615_v3 = vpop.f32.mrb[65].mxu1 }
 0x30b   : > { %v3616_v9 = vadd.f32 %v3615_v3, %v3614_v60  ;;  %v3617_v17 = vpop.f32.mrb[66].mxu1  ;;  %v4248_v3 = vld [vmem:[%s5721_s3 + $0x1a0] ss:$28 sps:$4 sm:$0xff]  }
 0x30c   : > { %v3618_v30 = vpop.f32.mrb[67].mxu1 }
 0x30d   : > { %v5485_v12 = vadd.f32 %v3616_v9, %v5326_v28  ;;  %v3619_v37 = vadd.f32 %v3618_v30, %v3617_v17 }
 0x30e   : > { %3999 = vmatmul.mubr.msk.bf16.gmra.mrb[160].mxu1 %vm2268_vm1, %v4243_v6 }
 0x30f   : > { %v5489_v18 = vadd.f32 %v3619_v37, %v5330_v62  ;;  %4002 = vmatprep.mubr.msk.bf16.mxu1 %vm4657_vm0, %v4656_v1 }
 0x311   : > { %v3620_v13 = vpop.f32.mrb[68].mxu1 }
 0x312   : > { %v3621_v41 = vpop.f32.mrb[69].mxu1 }
 0x313   : > { %v3622_v49 = vadd.f32 %v3621_v41, %v3620_v13  ;;  %v3623_v33 = vpop.f32.mrb[70].mxu1  ;;  %v4249_v41 = vld [vmem:[%s5721_s3 + $0x1d8] ss:$28 sps:$4 sm:$0xff]  }
 0x314   : > { %v3624_v4 = vpop.f32.mrb[71].mxu1 }
 0x315   : > { %v5497_v28 = vadd.f32 %v3622_v49, %v5337_v36  ;;  %v3625_v51 = vadd.f32 %v3624_v4, %v3623_v33 }
 0x316   : > { %4003 = vmatmul.mubr.msk.bf16.gmra.mrb[164].mxu1 %vm2268_vm1, %v4244_v14 }
 0x317   : > { %v5501_v62 = vadd.f32 %v3625_v51, %v5339_v58  ;;  %4006 = vmatprep.mubr.msk.bf16.mxu1 %vm4657_vm0, %v4656_v1 }
 0x319   : > { %v3626_v42 = vpop.f32.mrb[72].mxu1 }
 0x31a   : > { %v3627_v29 = vpop.f32.mrb[73].mxu1 }
 0x31b   : > { %v3628_v21 = vadd.f32 %v3627_v29, %v3626_v42  ;;  %v3629_v55 = vpop.f32.mrb[74].mxu1  ;;  %v4250_v29 = vld [vmem:[%s5721_s3 + $0x210] ss:$28 sps:$4 sm:$0xff]  }
 0x31c   : > { %v3630_v59 = vpop.f32.mrb[75].mxu1 }
 0x31d   : > { %v5509_v36 = vadd.f32 %v3628_v21, %v5350_v40  ;;  %v3631_v35 = vadd.f32 %v3630_v59, %v3629_v55 }
 0x31e   : > { %4007 = vmatmul.mubr.msk.bf16.gmra.mrb[168].mxu1 %vm2268_vm1, %v4245_v45 }
 0x31f   : > { %v5513_v58 = vadd.f32 %v3631_v35, %v5353_v15  ;;  %4010 = vmatprep.mubr.msk.bf16.mxu1 %vm4657_vm0, %v4656_v1 }
 0x321   : > { %v3632_v54 = vpop.f32.mrb[76].mxu1 }
 0x322   : > { %v3633_v52 = vpop.f32.mrb[77].mxu1 }
 0x323   : > { %v3634_v43 = vadd.f32 %v3633_v52, %v3632_v54  ;;  %v3635_v19 = vpop.f32.mrb[78].mxu1  ;;  %v4251_v52 = vld [vmem:[%s5721_s3 + $0x248] ss:$28 sps:$4 sm:$0xff]  }
 0x324   : > { %v3636_v46 = vpop.f32.mrb[79].mxu1 }
 0x325   : > { %v5521_v40 = vadd.f32 %v3634_v43, %v5361_v11  ;;  %v3637_v48 = vadd.f32 %v3636_v46, %v3635_v19  ;;  %v4253_v46 = vld [vmem:[%s5721_s3 + $0x2b8] ss:$0 sps:$4 sm:$0xff]  }
 0x326   : > { %4011 = vmatmul.mubr.msk.bf16.gmra.mrb[172].mxu1 %vm2268_vm1, %v4246_v2 }
 0x327   : > { %v5525_v15 = vadd.f32 %v3637_v48, %v5363_v32  ;;  %4014 = vmatprep.mubr.msk.bf16.mxu1 %vm4657_vm0, %v4656_v1 }
 0x329   : > { %v3638_v20 = vpop.f32.mrb[80].mxu1 }
 0x32a   : > { %v3639_v25 = vpop.f32.mrb[81].mxu1 }
 0x32b   : > { %v3640_v47 = vadd.f32 %v3639_v25, %v3638_v20  ;;  %v3641_v8 = vpop.f32.mrb[82].mxu1 }
 0x32c   : > { %v3642_v10 = vpop.f32.mrb[83].mxu1 }
 0x32d   : > { %v5533_v11 = vadd.f32 %v3640_v47, %v5371_v31  ;;  %v3643_v24 = vadd.f32 %v3642_v10, %v3641_v8 }
 0x32e   : > { %4015 = vmatmul.mubr.msk.bf16.gmra.mrb[176].mxu1 %vm2268_vm1, %v4247_v7 }
 0x32f   : > { %v5537_v32 = vadd.f32 %v3643_v24, %v5373_v39  ;;  %4018 = vmatprep.mubr.msk.bf16.mxu1 %vm4657_vm0, %v4656_v1 }
 0x331   : > { %v3644_v27 = vpop.f32.mrb[84].mxu1 }
 0x332   : > { %v3645_v60 = vpop.f32.mrb[85].mxu1 }
 0x333   : > { %v3646_v6 = vadd.f32 %v3645_v60, %v3644_v27  ;;  %v3647_v9 = vpop.f32.mrb[86].mxu1 }
 0x334   : > { %v3648_v17 = vpop.f32.mrb[87].mxu1 }
 0x335   : > { %v5545_v31 = vadd.f32 %v3646_v6, %v5381_v26  ;;  %v3649_v30 = vadd.f32 %v3648_v17, %v3647_v9 }
 0x336   : > { %4019 = vmatmul.mubr.msk.bf16.gmra.mrb[180].mxu1 %vm2268_vm1, %v4248_v3 }
 0x337   : > { %v5549_v39 = vadd.f32 %v3649_v30, %v5383_v57  ;;  %4022 = vmatprep.mubr.msk.bf16.mxu1 %vm4657_vm0, %v4656_v1 }
 0x339   : > { %v3650_v37 = vpop.f32.mrb[88].mxu1 }
 0x33a   : > { %v3651_v13 = vpop.f32.mrb[89].mxu1 }
 0x33b   : > { %v3652_v14 = vadd.f32 %v3651_v13, %v3650_v37  ;;  %v3653_v49 = vpop.f32.mrb[90].mxu1 }
 0x33c   : > { %v3654_v33 = vpop.f32.mrb[91].mxu1 }
 0x33d   : > { %v5557_v26 = vadd.f32 %v3652_v14, %v5391_v0  ;;  %v3655_v4 = vadd.f32 %v3654_v33, %v3653_v49 }
 0x33e   : > { %4023 = vmatmul.mubr.msk.bf16.gmra.mrb[184].mxu1 %vm2268_vm1, %v4249_v41 }
 0x33f   : > { %v5561_v57 = vadd.f32 %v3655_v4, %v5393_v22  ;;  %4026 = vmatprep.mubr.msk.bf16.mxu1 %vm4657_vm0, %v4656_v1 }
 0x341   : > { %v3656_v51 = vpop.f32.mrb[92].mxu1 }
 0x342   : > { %v3657_v42 = vpop.f32.mrb[93].mxu1 }
 0x343   : > { %v3658_v45 = vadd.f32 %v3657_v42, %v3656_v51  ;;  %v3659_v21 = vpop.f32.mrb[94].mxu1 }
 0x344   : > { %v3660_v55 = vpop.f32.mrb[95].mxu1 }
 0x345   : > { %v5569_v0 = vadd.f32 %v3658_v45, %v5401_v53  ;;  %v3661_v59 = vadd.f32 %v3660_v55, %v3659_v21 }
 0x346   : > { %4027 = vmatmul.mubr.msk.bf16.gmra.mrb[188].mxu1 %vm2268_vm1, %v4250_v29 }
 0x347   : > { %v5573_v22 = vadd.f32 %v3661_v59, %v5403_v34  ;;  %4030 = vmatprep.mubr.msk.bf16.mxu1 %vm4657_vm0, %v4656_v1  ;;  %v4252_v34 = vld [vmem:[%s5721_s3 + $0x280] ss:$28 sps:$4 sm:$0xff]  }
 0x349   : > { %v3662_v35 = vpop.f32.mrb[96].mxu1 }
 0x34a   : > { %v3663_v54 = vpop.f32.mrb[97].mxu1 }
 0x34b   : > { %v3664_v2 = vadd.f32 %v3663_v54, %v3662_v35  ;;  %v3665_v43 = vpop.f32.mrb[98].mxu1 }
 0x34c   : > { %v3666_v19 = vpop.f32.mrb[99].mxu1 }
 0x34d   : > { %v5581_v53 = vadd.f32 %v3664_v2, %v5411_v63 }
 0x34e   : > { %4031 = vmatmul.mubr.msk.bf16.gmra.mrb[192].mxu1 %vm2268_vm1, %v4251_v52 }
 0x34f   : > { %4034 = vmatprep.mubr.msk.bf16.mxu1 %vm4657_vm0, %v4656_v1 }
 0x356   : > { %4035 = vmatmul.mubr.msk.bf16.gmra.mrb[196].mxu1 %vm2268_vm1, %v4252_v34 }
 0x357   : > { %4038 = vmatprep.mubr.msk.bf16.mxu1 %vm4657_vm0, %v4656_v1 }
 0x35e   : > { %4039 = vmatmul.mubr.msk.bf16.gmra.mrb[200].mxu1 %vm2268_vm1, %v4253_v46 }
 0x369   : > { %v3684_v63 = vpop.f32.mrb[100].mxu1 }
 0x36a   : > { %v3685_v48 = vpop.f32.mrb[101].mxu1 }
 0x36b   : > { %v3686_v20 = vadd.f32 %v3685_v48, %v3684_v63  ;;  %v3687_v25 = vpop.f32.mrb[102].mxu1 }
 0x36c   : > { %v3688_v7 = vpop.f32.mrb[103].mxu1 }
 0x36d   : > { %v3689_v47 = vadd.f32 %v3688_v7, %v3687_v25  ;;  %v5597_v8 = vadd.f32 %v3686_v20, %v5444_v44 }
 0x36f   : > { %v5600_v10 = vadd.f32 %v3689_v47, %v5447_v23 }
 0x371   : > { %v3690_v24 = vpop.f32.mrb[104].mxu1 }
 0x372   : > { %v3691_v1 = vpop.f32.mrb[105].mxu1 }
 0x373   : > { %v3692_v27 = vadd.f32 %v3691_v1, %v3690_v24  ;;  %v3693_v60 = vpop.f32.mrb[106].mxu1 }
 0x374   : > { %v3694_v3 = vpop.f32.mrb[107].mxu1 }
 0x375   : > { %v3695_v6 = vadd.f32 %v3694_v3, %v3693_v60  ;;  %v5603_v9 = vadd.f32 %v3692_v27, %v5450_v61 }
 0x377   : > { %v5606_v17 = vadd.f32 %v3695_v6, %v5453_v38 }
 0x379   : > { %v3696_v30 = vpop.f32.mrb[108].mxu1 }
 0x37a   : > { %v3697_v37 = vpop.f32.mrb[109].mxu1 }
 0x37b   : > { %v3698_v13 = vadd.f32 %v3697_v37, %v3696_v30  ;;  %v3699_v44 = vpop.f32.mrb[110].mxu1 }
 0x37c   : > { %v3700_v41 = vpop.f32.mrb[111].mxu1 }
 0x37d   : > { %v3701_v14 = vadd.f32 %v3700_v41, %v3699_v44  ;;  %v5609_v23 = vadd.f32 %v3698_v13, %v5461_v16 }
 0x37f   : > { %v5612_v49 = vadd.f32 %v3701_v14, %v5465_v50 }
 0x381   : > { %v3702_v33 = vpop.f32.mrb[112].mxu1 }
 0x382   : > { %v3703_v4 = vpop.f32.mrb[113].mxu1 }
 0x383   : > { %v3704_v51 = vadd.f32 %v3703_v4, %v3702_v33  ;;  %v3705_v61 = vpop.f32.mrb[114].mxu1 }
 0x384   : > { %v3706_v42 = vpop.f32.mrb[115].mxu1 }
 0x385   : > { %v3707_v29 = vadd.f32 %v3706_v42, %v3705_v61  ;;  %v5615_v38 = vadd.f32 %v3704_v51, %v5473_v5 }
 0x387   : > { %v5618_v45 = vadd.f32 %v3707_v29, %v5477_v56 }
 0x389   : > { %v3708_v21 = vpop.f32.mrb[116].mxu1 }
 0x38a   : > { %v3709_v55 = vpop.f32.mrb[117].mxu1 }
 0x38b   : > { %v3710_v59 = vadd.f32 %v3709_v55, %v3708_v21  ;;  %v3711_v16 = vpop.f32.mrb[118].mxu1 }
 0x38c   : > { %v3712_v35 = vpop.f32.mrb[119].mxu1 }
 0x38d   : > { %v3713_v54 = vadd.f32 %v3712_v35, %v3711_v16  ;;  %v5621_v50 = vadd.f32 %v3710_v59, %v5485_v12 }
 0x38f   : > { %v5624_v52 = vadd.f32 %v3713_v54, %v5489_v18 }
 0x391   : > { %v3714_v2 = vpop.f32.mrb[120].mxu1 }
 0x392   : > { %v3715_v43 = vpop.f32.mrb[121].mxu1 }
 0x393   : > { %v3716_v19 = vadd.f32 %v3715_v43, %v3714_v2  ;;  %v3717_v5 = vpop.f32.mrb[122].mxu1 }
 0x394   : > { %v3718_v34 = vpop.f32.mrb[123].mxu1 }
 0x395   : > { %v3719_v46 = vadd.f32 %v3718_v34, %v3717_v5  ;;  %v5627_v56 = vadd.f32 %v3716_v19, %v5497_v28 }
 0x397   : > { %v5630_v63 = vadd.f32 %v3719_v46, %v5501_v62 }
 0x399   : > { %v3720_v48 = vpop.f32.mrb[124].mxu1 }
 0x39a   : > { %v3721_v20 = vpop.f32.mrb[125].mxu1 }
 0x39b   : > { %v3722_v25 = vadd.f32 %v3721_v20, %v3720_v48  ;;  %v3723_v12 = vpop.f32.mrb[126].mxu1 }
 0x39c   : > { %v3724_v7 = vpop.f32.mrb[127].mxu1 }
 0x39d   : > { %v3725_v47 = vadd.f32 %v3724_v7, %v3723_v12  ;;  %v5633_v18 = vadd.f32 %v3722_v25, %v5509_v36 }
 0x39f   : > { %v5636_v24 = vadd.f32 %v3725_v47, %v5513_v58 }
 0x3a1   : > { %v3726_v1 = vpop.f32.mrb[128].mxu1 }
 0x3a2   : > { %v3727_v27 = vpop.f32.mrb[129].mxu1 }
 0x3a3   : > { %v3728_v60 = vadd.f32 %v3727_v27, %v3726_v1  ;;  %v3729_v28 = vpop.f32.mrb[130].mxu1 }
 0x3a4   : > { %v3730_v3 = vpop.f32.mrb[131].mxu1 }
 0x3a5   : > { %v3731_v6 = vadd.f32 %v3730_v3, %v3729_v28  ;;  %v5639_v62 = vadd.f32 %v3728_v60, %v5521_v40 }
 0x3a7   : > { %v5642_v30 = vadd.f32 %v3731_v6, %v5525_v15 }
 0x3a9   : > { %v3732_v37 = vpop.f32.mrb[132].mxu1 }
 0x3aa   : > { %v3733_v13 = vpop.f32.mrb[133].mxu1 }
 0x3ab   : > { %v3734_v44 = vadd.f32 %v3733_v13, %v3732_v37  ;;  %v3735_v36 = vpop.f32.mrb[134].mxu1 }
 0x3ac   : > { %v3736_v41 = vpop.f32.mrb[135].mxu1 }
 0x3ad   : > { %v3737_v14 = vadd.f32 %v3736_v41, %v3735_v36  ;;  %v5645_v58 = vadd.f32 %v3734_v44, %v5533_v11 }
 0x3af   : > { %v5648_v33 = vadd.f32 %v3737_v14, %v5537_v32 }
 0x3b1   : > { %v3738_v4 = vpop.f32.mrb[136].mxu1 }
 0x3b2   : > { %v3739_v51 = vpop.f32.mrb[137].mxu1 }
 0x3b3   : > { %v3740_v61 = vadd.f32 %v3739_v51, %v3738_v4  ;;  %v3741_v40 = vpop.f32.mrb[138].mxu1 }
 0x3b4   : > { %v3742_v42 = vpop.f32.mrb[139].mxu1 }
 0x3b5   : > { %v3743_v29 = vadd.f32 %v3742_v42, %v3741_v40  ;;  %v5651_v15 = vadd.f32 %v3740_v61, %v5545_v31 }
 0x3b7   : > { %v5654_v21 = vadd.f32 %v3743_v29, %v5549_v39 }
 0x3b9   : > { %v3744_v55 = vpop.f32.mrb[140].mxu1 }
 0x3ba   : > { %v3745_v59 = vpop.f32.mrb[141].mxu1 }
 0x3bb   : > { %v3746_v16 = vadd.f32 %v3745_v59, %v3744_v55  ;;  %v3747_v11 = vpop.f32.mrb[142].mxu1 }
 0x3bc   : > { %v3748_v35 = vpop.f32.mrb[143].mxu1 }
 0x3bd   : > { %v3749_v54 = vadd.f32 %v3748_v35, %v3747_v11  ;;  %v5657_v32 = vadd.f32 %v3746_v16, %v5557_v26 }
 0x3bf   : > { %v5660_v2 = vadd.f32 %v3749_v54, %v5561_v57 }
 0x3c1   : > { %v3750_v43 = vpop.f32.mrb[144].mxu1 }
 0x3c2   : > { %v3751_v19 = vpop.f32.mrb[145].mxu1 }
 0x3c3   : > { %v3752_v31 = vadd.f32 %v3751_v19, %v3750_v43  ;;  %v3753_v5 = vpop.f32.mrb[146].mxu1 }
 0x3c4   : > { %v3754_v34 = vpop.f32.mrb[147].mxu1 }
 0x3c5   : > { %v3755_v39 = vadd.f32 %v3754_v34, %v3753_v5  ;;  %v5663_v46 = vadd.f32 %v3752_v31, %v5569_v0 }
 0x3c7   : > { %v5666_v48 = vadd.f32 %v3755_v39, %v5573_v22 }
 0x3c9   : > { %v3756_v20 = vpop.f32.mrb[148].mxu1 }
 0x3ca   : > { %v3757_v25 = vpop.f32.mrb[149].mxu1 }
 0x3cb   : > { %v3758_v26 = vadd.f32 %v3757_v25, %v3756_v20  ;;  %v3759_v12 = vpop.f32.mrb[150].mxu1 }
 0x3cc   : > { %v3760_v7 = vpop.f32.mrb[151].mxu1 }
 0x3cd   : > { %v5669_v57 = vadd.f32 %v3758_v26, %v5581_v53 }
 0x3d1   : > { %v2750_v47 = vpop.f32.mrb[152].mxu1 }
 0x3d2   : > { %v2751_v1 = vadd.f32 %v2750_v47, %v5597_v8  ;;  %v3992_v27 = vpop.f32.mrb[153].mxu1 }
 0x3d3   : > { %v2753_v60 = vpop.f32.mrb[154].mxu1 }
 0x3d4   : > { %v2754_v0 = vadd.f32 %v2753_v60, %v5600_v10  ;;  %v3993_v28 = vpop.f32.mrb[155].mxu1 }
 0x3d6   : > { %v3355_v22 = vpack.c.bf16 %v2754_v0, %v2751_v1 }
 0x3d8   : > { %3356 = vst [vmem:[%s5677_s30] sm:$0xff] %v3355_v22  }
 0x3d9   : > { %v2758_v53 = vpop.f32.mrb[156].mxu1 }
 0x3da   : > { %v2759_v3 = vadd.f32 %v2758_v53, %v5603_v9  ;;  %v3996_v6 = vpop.f32.mrb[157].mxu1 }
 0x3db   : > { %v2761_v8 = vpop.f32.mrb[158].mxu1 }
 0x3dc   : > { %v2762_v37 = vadd.f32 %v2761_v8, %v5606_v17  ;;  %v3997_v13 = vpop.f32.mrb[159].mxu1 }
 0x3de   : > { %v3360_v10 = vpack.c.bf16 %v2762_v37, %v2759_v3 }
 0x3e0   : > { %3412 = vst [vmem:[%s5677_s30 + $0x8] sm:$0xff] %v3360_v10  }
 0x3e1   : > { %v2766_v44 = vpop.f32.mrb[160].mxu1 }
 0x3e2   : > { %v2767_v36 = vadd.f32 %v2766_v44, %v5609_v23  ;;  %v4000_v41 = vpop.f32.mrb[161].mxu1 }
 0x3e3   : > { %v2769_v14 = vpop.f32.mrb[162].mxu1 }
 0x3e4   : > { %v2770_v4 = vadd.f32 %v2769_v14, %v5612_v49  ;;  %v4001_v51 = vpop.f32.mrb[163].mxu1 }
 0x3e6   : > { %v3365_v61 = vpack.c.bf16 %v2770_v4, %v2767_v36 }
 0x3e8   : > { %3413 = vst [vmem:[%s5677_s30 + $0x10] sm:$0xff] %v3365_v61  }
 0x3e9   : > { %v2774_v9 = vpop.f32.mrb[164].mxu1 }
 0x3ea   : > { %v2775_v40 = vadd.f32 %v2774_v9, %v5615_v38  ;;  %v4004_v42 = vpop.f32.mrb[165].mxu1 }
 0x3eb   : > { %v2777_v17 = vpop.f32.mrb[166].mxu1 }
 0x3ec   : > { %v2778_v29 = vadd.f32 %v2777_v17, %v5618_v45  ;;  %v4005_v55 = vpop.f32.mrb[167].mxu1 }
 0x3ee   : > { %v3370_v59 = vpack.c.bf16 %v2778_v29, %v2775_v40 }
 0x3f0   : > { %3414 = vst [vmem:[%s5677_s30 + $0x18] sm:$0xff] %v3370_v59  }
 0x3f1   : > { %v2782_v23 = vpop.f32.mrb[168].mxu1 }
 0x3f2   : > { %v2783_v16 = vadd.f32 %v2782_v23, %v5621_v50  ;;  %v4008_v11 = vpop.f32.mrb[169].mxu1 }
 0x3f3   : > { %v2785_v49 = vpop.f32.mrb[170].mxu1 }
 0x3f4   : > { %v2786_v35 = vadd.f32 %v2785_v49, %v5624_v52  ;;  %v4009_v54 = vpop.f32.mrb[171].mxu1 }
 0x3f6   : > { %v3375_v43 = vpack.c.bf16 %v2786_v35, %v2783_v16 }
 0x3f8   : > { %3415 = vst [vmem:[%s5677_s30 + $0x20] sm:$0xff] %v3375_v43  }
 0x3f9   : > { %v2790_v38 = vpop.f32.mrb[172].mxu1 }
 0x3fa   : > { %v2791_v19 = vadd.f32 %v2790_v38, %v5627_v56  ;;  %v4012_v31 = vpop.f32.mrb[173].mxu1 }
 0x3fb   : > { %v2793_v45 = vpop.f32.mrb[174].mxu1 }
 0x3fc   : > { %v2794_v5 = vadd.f32 %v2793_v45, %v5630_v63  ;;  %v4013_v34 = vpop.f32.mrb[175].mxu1 }
 0x3fe   : > { %v3380_v39 = vpack.c.bf16 %v2794_v5, %v2791_v19 }
 0x400   : > { %3416 = vst [vmem:[%s5677_s30 + $0x28] sm:$0xff] %v3380_v39  }
 0x401   : > { %v2798_v50 = vpop.f32.mrb[176].mxu1 }
 0x402   : > { %v2799_v20 = vadd.f32 %v2798_v50, %v5633_v18  ;;  %v4016_v25 = vpop.f32.mrb[177].mxu1 }
 0x403   : > { %v2801_v52 = vpop.f32.mrb[178].mxu1 }
 0x404   : > { %v2802_v26 = vadd.f32 %v2801_v52, %v5636_v24  ;;  %v4017_v12 = vpop.f32.mrb[179].mxu1 }
 0x406   : > { %v3385_v7 = vpack.c.bf16 %v2802_v26, %v2799_v20 }
 0x408   : > { %3417 = vst [vmem:[%s5677_s30 + $0x30] sm:$0xff] %v3385_v7  }
 0x409   : > { %v2806_v56 = vpop.f32.mrb[180].mxu1 }
 0x40a   : > { %v2807_v47 = vadd.f32 %v2806_v56, %v5639_v62  ;;  %v4020_v1 = vpop.f32.mrb[181].mxu1 }
 0x40b   : > { %v2809_v63 = vpop.f32.mrb[182].mxu1 }
 0x40c   : > { %v2810_v27 = vadd.f32 %v2809_v63, %v5642_v30  ;;  %v4021_v60 = vpop.f32.mrb[183].mxu1 }
 0x40e   : > { %v3390_v0 = vpack.c.bf16 %v2810_v27, %v2807_v47 }
 0x410   : > { %3418 = vst [vmem:[%s5677_s30 + $0x38] sm:$0xff] %v3390_v0  }
 0x411   : > { %v2814_v18 = vpop.f32.mrb[184].mxu1 }
 0x412   : > { %v2815_v28 = vadd.f32 %v2814_v18, %v5645_v58  ;;  %v4024_v22 = vpop.f32.mrb[185].mxu1 }
 0x413   : > { %v2817_v24 = vpop.f32.mrb[186].mxu1 }
 0x414   : > { %v2818_v53 = vadd.f32 %v2817_v24, %v5648_v33  ;;  %v4025_v3 = vpop.f32.mrb[187].mxu1 }
 0x416   : > { %v3395_v6 = vpack.c.bf16 %v2818_v53, %v2815_v28 }
 0x418   : > { %3419 = vst [vmem:[%s5677_s30 + $0x40] sm:$0xff] %v3395_v6  }
 0x419   : > { %v2822_v62 = vpop.f32.mrb[188].mxu1 }
 0x41a   : > { %v2823_v8 = vadd.f32 %v2822_v62, %v5651_v15  ;;  %v4028_v37 = vpop.f32.mrb[189].mxu1 }
 0x41b   : > { %v2825_v30 = vpop.f32.mrb[190].mxu1 }
 0x41c   : > { %v2826_v13 = vadd.f32 %v2825_v30, %v5654_v21  ;;  %v4029_v10 = vpop.f32.mrb[191].mxu1 }
 0x41e   : > { %v3400_v44 = vpack.c.bf16 %v2826_v13, %v2823_v8 }
 0x420   : > { %3420 = vst [vmem:[%s5677_s30 + $0x48] sm:$0xff] %v3400_v44  }
 0x421   : > { %v2830_v58 = vpop.f32.mrb[192].mxu1 }
 0x422   : > { %v2831_v36 = vadd.f32 %v2830_v58, %v5657_v32  ;;  %v4032_v41 = vpop.f32.mrb[193].mxu1 }
 0x423   : > { %v2833_v33 = vpop.f32.mrb[194].mxu1 }
 0x424   : > { %v2834_v14 = vadd.f32 %v2833_v33, %v5660_v2  ;;  %v4033_v4 = vpop.f32.mrb[195].mxu1 }
 0x426   : > { %v3405_v51 = vpack.c.bf16 %v2834_v14, %v2831_v36 }
 0x428   : > { %3421 = vst [vmem:[%s5677_s30 + $0x50] sm:$0xff] %v3405_v51  }
 0x429   : > { %v2838_v15 = vpop.f32.mrb[196].mxu1 }
 0x42a   : > { %v2839_v61 = vadd.f32 %v2838_v15, %v5663_v46  ;;  %v4036_v9 = vpop.f32.mrb[197].mxu1 }
 0x42b   : > { %v2841_v21 = vpop.f32.mrb[198].mxu1 }
 0x42c   : > { %v2842_v40 = vadd.f32 %v2841_v21, %v5666_v48  ;;  %v4037_v42 = vpop.f32.mrb[199].mxu1 }
 0x42e   : > { %v3410_v17 = vpack.c.bf16 %v2842_v40, %v2839_v61 }
 0x430   : > { %3422 = vst [vmem:[%s5677_s30 + $0x58] sm:$0xff] %v3410_v17  }
 0x431   : > { %v2846_v29 = vpop.f32.mrb[200].mxu1 }
 0x432   : > { %v2847_v32 = vadd.f32 %v2846_v29, %v5669_v57  ;;  %v4040_v55 = vpop.f32.mrb[201].mxu1 }
 0x433   : > { %v2849_v59 = vpop.f32.mrb[202].mxu1 }
 0x434   : > { %v3351_v2 = vpack.c.bf16 %v2847_v32, %v2847_v32  ;;  %v4041_v23 = vpop.f32.mrb[203].mxu1 }
 0x436   : > { %2977 = vst [vmem:[%s5677_s30 + $0x60] sm:$0xf] %v3351_v2 }
 0x437 PF: > { %s14_s15 = sadd.s32 1, %s4654_s15  }
 0x438   : > { %p11_p4 = scmp.ge.s32.totalorder %s14_s15, 4  }
 0x43a   :  { %13 = sbr.rel (!%p11_p4) target bundleno = 1 (0x1), region = 66 }

// kernel: forward.3
= control target key start
LH: loop header
LB: loop body
LE: loop exit
PB: predicated region body
PF: predicated region fallthrough
CT: control target
= control target key end

     0   :  { %s5820_s13 = smov 0   ;;  %s6904_s0 = inlined_call_operand.vmem [shape: bf16[2,104,256], index: 0, kind: input, shape index: {}]   ;;  %s6905_s1 = inlined_call_operand.vmem [shape: bf16[256,128], index: 1, kind: input, shape index: {}]   ;;  %s6906_s2 = inlined_call_operand.vmem [shape: f32[1,128], index: 2, kind: input, shape index: {}]   ;;  %s6907_s3 = inlined_call_operand.vmem [shape: bf16[32,104], index: 3, kind: input, shape index: {}]   ;;  %s6908_s4 = inlined_call_operand.vmem [shape: bf16[32,128,128], index: 4, kind: input, shape index: {}]   ;;  %s6909_s5 = inlined_call_operand.vmem [shape: f32[1,128], index: 5, kind: input, shape index: {}]   ;;  %s6910_s6 = inlined_call_operand.vmem [shape: bf16[128,128], index: 6, kind: input, shape index: {}]   ;;  %s6911_s7 = inlined_call_operand.vmem [shape: f32[1,128], index: 7, kind: input, shape index: {}]   ;;  %s6912_s8 = inlined_call_operand.vmem [shape: bf16[128,128], index: 8, kind: input, shape index: {}]   ;;  %s6913_s9 = inlined_call_operand.vmem [shape: f32[1,128], index: 9, kind: input, shape index: {}]   ;;  %s6914_s10 = inlined_call_operand.vmem [shape: f32[2,8,128], index: 10, kind: output, shape index: {}]  }
   0x1 LB: > { %s3808_s14 = sadd.s32 4294967295, %s5761_s13   ;;  %p3812_p0 = scmp.ge.s32.totalorder %s5761_s13, 1  ;;  %s5761_s13 = sphi %s5820_s13, %s20_s13  }
   0x2   : > { %p312_p1 = scmp.lt.s32.totalorder %s5761_s13, 3 }
   0x4   : > { %p313_p2 = pnand %p3812_p0, %p312_p1 }
   0x5   : > { %v5441_v0 = vld [vmem:[%s6905_s1 + $0x40] sm:$0xff] (!%p313_p2)   ;;  %v5443_v2 = vld [vmem:[%s6905_s1 + $0x48] sm:$0xff] (!%p313_p2)   ;;  %p349_p3 = scmp.lt.s32.totalorder (!%p313_p2), %s3808_s14, 1  ;;  %v5445_v4 = vld [vmem:[%s6905_s1 + $0x50] sm:$0xff] (!%p313_p2)   ;;  %vm761_vm0 = vcmask (!%p313_p2), 850944   ;;  %v5763_v33 = vmov (!%p313_p2), 0.0  }
   0x6   : > { %316 = sbr.rel (%p313_p2) target bundleno = 1673 (0x689), region = 60  ;;  %v5442_v1 = vld [vmem:[%s6905_s1] sm:$0xff] (!%p313_p2)   ;;  %4467 = vmatprep.subr.bf16.mxu0 (!%p313_p2), %v5441_v0  ;;  %v5444_v3 = vld [vmem:[%s6905_s1 + $0x8] sm:$0xff] (!%p313_p2)   ;;  %v5446_v5 = vld [vmem:[%s6905_s1 + $0x10] sm:$0xff] (!%p313_p2)   ;;  %vm768_vm1 = vcmask (!%p313_p2), 1043456   ;;  %vm5764_vm2 = vmmov (!%p313_p2), 0  }
   0x7   : > { %4468 = vmatpush3.bf16.msra.mxu0 (!%p313_p2), %v5442_v1  ;;  %v5447_v6 = vld [vmem:[%s6905_s1 + $0x58] sm:$0xff] (!%p313_p2)   ;;  %v5449_v8 = vld [vmem:[%s6905_s1 + $0x60] sm:$0xff] (!%p313_p2)   ;;  %v5451_v10 = vld [vmem:[%s6905_s1 + $0x68] sm:$0xff] (!%p313_p2)  }
   0x8   : > { %4469 = vmatprep.subr.bf16.mxu0 (!%p313_p2), %v5443_v2  ;;  %v5448_v7 = vld [vmem:[%s6905_s1 + $0x18] sm:$0xff] (!%p313_p2)   ;;  %v5450_v9 = vld [vmem:[%s6905_s1 + $0x20] sm:$0xff] (!%p313_p2)   ;;  %v5452_v12 = vld [vmem:[%s6905_s1 + $0x28] sm:$0xff] (!%p313_p2)  }
   0x9   : > { %v5453_v13 = vld [vmem:[%s6905_s1 + $0x70] sm:$0xff] (!%p313_p2)   ;;  %v5455_v15 = vld [vmem:[%s6905_s1 + $0x78] sm:$0xff] (!%p313_p2)   ;;  %v5477_v31 = vld [vmem:[%s6907_s3] sm:$0xff] (!%p313_p2)  }
   0xa   : > { %v5454_v14 = vld [vmem:[%s6905_s1 + $0x30] sm:$0xff] (!%p313_p2)   ;;  %v5456_v16 = vld [vmem:[%s6905_s1 + $0x38] sm:$0xff] (!%p313_p2)   ;;  %4791 = vmatprep.mubr.msk.bf16.mxu1 (!%p313_p2), %vm761_vm0, %v5477_v31  ;;  %v5479_v32 = vld [vmem:[%s6908_s4] sm:$0xff] (!%p313_p2)  }
   0xb   : > { %4470 = vmatpush3.bf16.msra.mxu0 (!%p313_p2), %v5444_v3  ;;  %v5480_v34 = vld [vmem:[%s6908_s4 + $0x8] sm:$0xff] (!%p313_p2)   ;;  %v5482_v35 = vld [vmem:[%s6908_s4 + $0x10] sm:$0xff] (!%p313_p2)   ;;  %v5484_v36 = vld [vmem:[%s6908_s4 + $0x18] sm:$0xff] (!%p313_p2)  }
   0xc   : > { %4471 = vmatprep.subr.bf16.mxu0 (!%p313_p2), %v5445_v4  ;;  %v5486_v37 = vld [vmem:[%s6908_s4 + $0x20] sm:$0xff] (!%p313_p2)   ;;  %v5488_v38 = vld [vmem:[%s6908_s4 + $0x28] sm:$0xff] (!%p313_p2)   ;;  %v5490_v39 = vld [vmem:[%s6908_s4 + $0x30] sm:$0xff] (!%p313_p2)  }
   0xd   : > { %s6916_s14 = smov (!%p349_p3, %s3808_s14), 1  ;;  %v5933_v41 = vld [vmem:[%s6906_s2] ss:$0 sm:$0xff] }
   0xe   : > { %s5430_s29 = smul.u32 104, %s6916_s14  ;;  %s3814_s27 = sshll.u32 %s6916_s14, 3 }
   0xf   : > { %4472 = vmatpush3.bf16.msra.mxu0 %v5446_v5  ;;  %s357_s30 = scalar_lea.vmem %s6914_s10, %s3814_s27 }
  0x10   : > { %4473 = vmatprep.subr.bf16.mxu0 %v5447_v6  ;;  %s5861_s18 = scalar_lea.vmem %s6904_s0, %s5430_s29 }
  0x11   : > { %v5459_v11 = vld [vmem:[%s5861_s18 + $0x4] ss:$8 sps:$4 sm:$0xff]   ;;  %v5457_v17 = vld [vmem:[%s5861_s18] ss:$8 sps:$4 sm:$0xff]   ;;  %v5460_v18 = vld [vmem:[%s5861_s18 + $0x14] ss:$8 sps:$4 sm:$0xff]  }
  0x12   : > { %606 = vmatprep.mubr.bf16.mxu0 %v5459_v11  ;;  %v5462_v19 = vld [vmem:[%s5861_s18 + $0x10] ss:$8 sps:$4 sm:$0xff]   ;;  %v5463_v20 = vld [vmem:[%s5861_s18 + $0x24] ss:$8 sps:$4 sm:$0xff]   ;;  %v5465_v21 = vld [vmem:[%s5861_s18 + $0x20] ss:$8 sps:$4 sm:$0xff]  }
  0x13   : > { %4474 = vmatpush3.bf16.msra.mxu0 %v5448_v7  ;;  %v5466_v22 = vld [vmem:[%s5861_s18 + $0x34] ss:$8 sps:$4 sm:$0xff]   ;;  %v5468_v23 = vld [vmem:[%s5861_s18 + $0x30] ss:$8 sps:$4 sm:$0xff]   ;;  %v5469_v24 = vld [vmem:[%s5861_s18 + $0x44] ss:$8 sps:$4 sm:$0xff]  }
  0x14   : > { %4475 = vmatprep.subr.bf16.mxu0 %v5449_v8  ;;  %v5471_v25 = vld [vmem:[%s5861_s18 + $0x40] ss:$8 sps:$4 sm:$0xff]   ;;  %v5472_v26 = vld [vmem:[%s5861_s18 + $0x54] ss:$8 sps:$4 sm:$0xff]   ;;  %v5474_v28 = vld [vmem:[%s5861_s18 + $0x50] ss:$8 sps:$4 sm:$0xff]  }
  0x15   : > { %v371_v27 = vld [vmem:[%s5861_s18 + $0x60] sm:$0xff] }
  0x16   : > { %v3829_v29 = vcombine.high %v371_v27, %v371_v27  ;;  %v3828_v30 = vcombine.low %v371_v27, %v371_v27 }
  0x17   : > { %4476 = vmatpush3.bf16.msra.mxu0 %v5450_v9 }
  0x18   : > { %4477 = vmatprep.subr.bf16.mxu0 %v5451_v10 }
  0x1b   : > { %4478 = vmatpush3.bf16.msra.mxu0 %v5452_v12 }
  0x1c   : > { %4479 = vmatprep.subr.bf16.mxu0 %v5453_v13 }
  0x1f   : > { %4480 = vmatpush3.bf16.msra.mxu0 %v5454_v14 }
  0x20   : > { %4481 = vmatprep.subr.bf16.mxu0 %v5455_v15 }
  0x23   : > { %4482 = vmatpush3.bf16.msra.mxu0 %v5456_v16 }
  0x24   : > { %4795 = vmatprep.subr.bf16.mxu0 %v5763_v33 }
  0x26   : > { %607 = vmatmul.mubr.bf16.vlgmr.msra.gmra.mrb[0].mxu0 %v5457_v17 }
  0x27   : > { %614 = vmatprep.mubr.bf16.mxu0 %v5460_v18  ;;  %4796 = vmatpush3.bf16.msra.mxu0 %v5479_v32 }
  0x28   : > { %4797 = vmatprep.subr.bf16.mxu0 %v5763_v33 }
  0x2b   : > { %4798 = vmatpush3.bf16.msra.mxu0 %v5480_v34 }
  0x2c   : > { %4799 = vmatprep.subr.bf16.mxu0 %v5763_v33 }
  0x2e   : > { %615 = vmatmul.mubr.bf16.gmra.mrb[4].mxu0 %v5462_v19 }
  0x2f   : > { %622 = vmatprep.mubr.bf16.mxu0 %v5463_v20  ;;  %4800 = vmatpush3.bf16.msra.mxu0 %v5482_v35 }
  0x30   : > { %4801 = vmatprep.subr.bf16.mxu0 %v5763_v33 }
  0x33   : > { %4802 = vmatpush3.bf16.msra.mxu0 %v5484_v36 }
  0x34   : > { %4803 = vmatprep.subr.bf16.mxu0 %v5763_v33 }
  0x36   : > { %623 = vmatmul.mubr.bf16.gmra.mrb[8].mxu0 %v5465_v21 }
  0x37   : > { %630 = vmatprep.mubr.bf16.mxu0 %v5466_v22  ;;  %4804 = vmatpush3.bf16.msra.mxu0 %v5486_v37 }
  0x38   : > { %4805 = vmatprep.subr.bf16.mxu0 %v5763_v33 }
  0x3b   : > { %4806 = vmatpush3.bf16.msra.mxu0 %v5488_v38 }
  0x3c   : > { %4807 = vmatprep.subr.bf16.mxu0 %v5763_v33 }
  0x3e   : > { %631 = vmatmul.mubr.bf16.gmra.mrb[12].mxu0 %v5468_v23 }
  0x3f   : > { %638 = vmatprep.mubr.bf16.mxu0 %v5469_v24  ;;  %4808 = vmatpush3.bf16.msra.mxu0 %v5490_v39 }
  0x40   : > { %4809 = vmatprep.subr.bf16.mxu0 %v5763_v33 }
  0x46   : > { %639 = vmatmul.mubr.bf16.gmra.mrb[16].mxu0 %v5471_v25 }
  0x47   : > { %646 = vmatprep.mubr.bf16.mxu0 %v5472_v26 }
  0x4e   : > { %647 = vmatmul.mubr.bf16.gmra.mrb[20].mxu0 %v5474_v28 }
  0x4f   : > { %654 = vmatprep.mubr.bf16.mxu0 %v3829_v29 }
  0x56   : > { %655 = vmatmul.mubr.bf16.gmra.mrb[24].mxu0 %v3828_v30 }
  0x57   : > { %4811 = vmatprep.mubr.msk.bf16.mxu0 %vm5764_vm2, %v5763_v33 }
  0xf9   : > { %v4483_v40 = vpop.f32.mrb[0].mxu0 }
  0xfa   : > { %v4484_v42 = vpop.f32.mrb[1].mxu0 }
  0xfb   : > { %v4485_v43 = vadd.f32 %v4484_v42, %v4483_v40  ;;  %v4486_v44 = vpop.f32.mrb[2].mxu0 }
  0xfc   : > { %v4487_v45 = vpop.f32.mrb[3].mxu0 }
  0xfd   : > { %v609_v46 = vadd.f32 %v4485_v43, %v5933_v41  ;;  %v4488_v47 = vadd.f32 %v4487_v45, %v4486_v44 }
  0xff   : > { %v3846_v48 = vmul.f32 -1.442695, %v609_v46  ;;  %v612_v49 = vadd.f32 %v4488_v47, %v5933_v41 }
 0x101   : > { %5695 = vpow2.f32 %v3846_v48  ;;  %v3847_v50 = vmul.f32 -1.442695, %v612_v49  ;;  %v4489_v51 = vpop.f32.mrb[4].mxu0 }
 0x102   : > { %v4490_v52 = vpop.f32.mrb[5].mxu0 }
 0x103   : > { %5697 = vpow2.f32 %v3847_v50  ;;  %v4491_v53 = vadd.f32 %v4490_v52, %v4489_v51  ;;  %v4492_v54 = vpop.f32.mrb[6].mxu0 }
 0x104   : > { %v4493_v55 = vpop.f32.mrb[7].mxu0 }
 0x105   : > { %v617_v56 = vadd.f32 %v4491_v53, %v5933_v41  ;;  %v4494_v57 = vadd.f32 %v4493_v55, %v4492_v54 }
 0x107   : > { %v3848_v58 = vmul.f32 -1.442695, %v617_v56  ;;  %v620_v59 = vadd.f32 %v4494_v57, %v5933_v41 }
 0x109   : > { %5699 = vpow2.f32 %v3848_v58  ;;  %v3849_v60 = vmul.f32 -1.442695, %v620_v59  ;;  %v4495_v61 = vpop.f32.mrb[8].mxu0 }
 0x10a   : > { %v4496_v62 = vpop.f32.mrb[9].mxu0 }
 0x10b   : > { %v5696_v63 = vpop.eup %5695  ;;  %5701 = vpow2.f32 %v3849_v60  ;;  %v4497_v0 = vadd.f32 %v4496_v62, %v4495_v61  ;;  %v4498_v1 = vpop.f32.mrb[10].mxu0 }
 0x10c   : > { %v701_v2 = vadd.f32 1.0, %v5696_v63  ;;  %v4499_v3 = vpop.f32.mrb[11].mxu0 }
 0x10d   : > { %v5698_v4 = vpop.eup %5697  ;;  %v625_v5 = vadd.f32 %v4497_v0, %v5933_v41  ;;  %v4500_v6 = vadd.f32 %v4499_v3, %v4498_v1 }
 0x10e   : > { %v702_v7 = vadd.f32 1.0, %v5698_v4  ;;  %5703 = vrcp.f32 %v701_v2 }
 0x10f   : > { %v3850_v8 = vmul.f32 -1.442695, %v625_v5  ;;  %v628_v9 = vadd.f32 %v4500_v6, %v5933_v41 }
 0x110   : > { %5705 = vrcp.f32 %v702_v7 }
 0x111   : > { %5707 = vpow2.f32 %v3850_v8  ;;  %v3851_v10 = vmul.f32 -1.442695, %v628_v9  ;;  %v4501_v11 = vpop.f32.mrb[12].mxu0 }
 0x112   : > { %v4502_v12 = vpop.f32.mrb[13].mxu0 }
 0x113   : > { %v5700_v13 = vpop.eup %5699  ;;  %5709 = vpow2.f32 %v3851_v10  ;;  %v4503_v14 = vadd.f32 %v4502_v12, %v4501_v11  ;;  %v4504_v15 = vpop.f32.mrb[14].mxu0 }
 0x114   : > { %v703_v16 = vadd.f32 1.0, %v5700_v13  ;;  %v4505_v17 = vpop.f32.mrb[15].mxu0 }
 0x115   : > { %v5702_v18 = vpop.eup %5701  ;;  %v633_v19 = vadd.f32 %v4503_v14, %v5933_v41  ;;  %v4506_v20 = vadd.f32 %v4505_v17, %v4504_v15 }
 0x116   : > { %v704_v21 = vadd.f32 1.0, %v5702_v18  ;;  %5711 = vrcp.f32 %v703_v16 }
 0x117   : > { %v3852_v22 = vmul.f32 -1.442695, %v633_v19  ;;  %v636_v23 = vadd.f32 %v4506_v20, %v5933_v41 }
 0x118   : > { %5713 = vrcp.f32 %v704_v21  ;;  %v5704_v24 = vpop.eup %5703 }
 0x119   : > { %5715 = vpow2.f32 %v3852_v22  ;;  %v3853_v25 = vmul.f32 -1.442695, %v636_v23  ;;  %v4507_v26 = vpop.f32.mrb[16].mxu0 }
 0x11a   : > { %v5706_v27 = vpop.eup %5705  ;;  %v4508_v28 = vpop.f32.mrb[17].mxu0 }
 0x11b   : > { %v5708_v29 = vpop.eup %5707  ;;  %5717 = vpow2.f32 %v3853_v25  ;;  %v4509_v30 = vadd.f32 %v4508_v28, %v4507_v26  ;;  %v4510_v31 = vpop.f32.mrb[18].mxu0  ;;  %v744_v32 = vpack.c.bf16 %v5706_v27, %v5704_v24  ;;  %v5478_v28 = vld [vmem:[%s6907_s3 + $0x8] sm:$0xff]  }
 0x11c   : > { %v705_v34 = vadd.f32 1.0, %v5708_v29  ;;  %v4511_v35 = vpop.f32.mrb[19].mxu0  ;;  %v5481_v29 = vld [vmem:[%s6908_s4 + $0x2c0] sm:$0xff]  }
 0x11d   : > { %v5710_v36 = vpop.eup %5709  ;;  %v641_v37 = vadd.f32 %v4509_v30, %v5933_v41  ;;  %v4512_v38 = vadd.f32 %v4511_v35, %v4510_v31  ;;  %4777 = vmatprep.subr.bf16.mxu1 %v744_v32  ;;  %v5483_v30 = vld [vmem:[%s6908_s4 + $0x2c8] sm:$0xff]   ;;  %v5485_v31 = vld [vmem:[%s6908_s4 + $0x2d0] sm:$0xff]  }
 0x11e   : > { %v706_v39 = vadd.f32 1.0, %v5710_v36  ;;  %4778 = vmatpush3.bf16.msra.mxu1 %v744_v32  ;;  %5719 = vrcp.f32 %v705_v34  ;;  %v5487_v32 = vld [vmem:[%s6908_s4 + $0x2d8] sm:$0xff]   ;;  %v5489_v34 = vld [vmem:[%s6908_s4 + $0x2e0] sm:$0xff]   ;;  %v5491_v35 = vld [vmem:[%s6908_s4 + $0x2e8] sm:$0xff]  }
 0x11f   : > { %v3854_v40 = vmul.f32 -1.442695, %v641_v37  ;;  %v644_v42 = vadd.f32 %v4512_v38, %v5933_v41  ;;  %v5492_v36 = vld [vmem:[%s6908_s4 + $0x38] sm:$0xff]   ;;  %v5493_v37 = vld [vmem:[%s6908_s4 + $0x2f0] sm:$0xff]  }
 0x120   : > { %5721 = vrcp.f32 %v706_v39  ;;  %v5712_v43 = vpop.eup %5711  ;;  %4810 = vmatpush3.bf16.msra.mxu0 %v5492_v36  ;;  %v5495_v38 = vld [vmem:[%s6908_s4 + $0x2f8] sm:$0xff]  }
 0x121   : > { %5723 = vpow2.f32 %v3854_v40  ;;  %v3855_v44 = vmul.f32 -1.442695, %v644_v42  ;;  %v4513_v45 = vpop.f32.mrb[20].mxu0  ;;  %4815 = vmatprep.subr.bf16.mxu0 %v5763_v33  ;;  %v5494_v42 = vld [vmem:[%s6908_s4 + $0x40] sm:$0xff]  }
 0x122   : > { %v5714_v46 = vpop.eup %5713  ;;  %v4514_v47 = vpop.f32.mrb[21].mxu0 }
 0x123   : > { %v5716_v48 = vpop.eup %5715  ;;  %5725 = vpow2.f32 %v3855_v44  ;;  %v4515_v49 = vadd.f32 %v4514_v47, %v4513_v45  ;;  %v4516_v50 = vpop.f32.mrb[22].mxu0  ;;  %v745_v51 = vpack.c.bf16 %v5714_v46, %v5712_v43  ;;  %v5496_v47 = vld [vmem:[%s6908_s4 + $0x48] sm:$0xff]  }
 0x124   : > { %v707_v52 = vadd.f32 1.0, %v5716_v48  ;;  %v4517_v53 = vpop.f32.mrb[23].mxu0 }
 0x125   : > { %v5718_v54 = vpop.eup %5717  ;;  %v649_v55 = vadd.f32 %v4515_v49, %v5933_v41  ;;  %v4518_v56 = vadd.f32 %v4517_v53, %v4516_v50  ;;  %4779 = vmatprep.subr.bf16.mxu1 %v745_v51  ;;  %v5497_v49 = vld [vmem:[%s6908_s4 + $0x300] sm:$0xff]   ;;  %v5500_v53 = vld [vmem:[%s6908_s4 + $0x58] sm:$0xff]  }
 0x126   : > { %v708_v57 = vadd.f32 1.0, %v5718_v54  ;;  %4780 = vmatpush3.bf16.msra.mxu1 %v745_v51  ;;  %5727 = vrcp.f32 %v707_v52  ;;  %v5498_v51 = vld [vmem:[%s6908_s4 + $0x50] sm:$0xff]   ;;  %v5499_v52 = vld [vmem:[%s6908_s4 + $0x308] sm:$0xff]  }
 0x127   : > { %v3856_v58 = vmul.f32 -1.442695, %v649_v55  ;;  %v652_v59 = vadd.f32 %v4518_v56, %v5933_v41  ;;  %v5501_v54 = vld [vmem:[%s6908_s4 + $0x310] sm:$0xff]   ;;  %v5502_v55 = vld [vmem:[%s6908_s4 + $0x60] sm:$0xff]   ;;  %v5503_v56 = vld [vmem:[%s6908_s4 + $0x318] sm:$0xff]  }
 0x128   : > { %5729 = vrcp.f32 %v708_v57  ;;  %v5720_v60 = vpop.eup %5719  ;;  %v5504_v57 = vld [vmem:[%s6908_s4 + $0x68] sm:$0xff]  }
 0x129   : > { %5731 = vpow2.f32 %v3856_v58  ;;  %v3857_v61 = vmul.f32 -1.442695, %v652_v59  ;;  %v4519_v62 = vpop.f32.mrb[24].mxu0  ;;  %v5505_v58 = vld [vmem:[%s6908_s4 + $0x320] sm:$0xff]   ;;  %v5506_v59 = vld [vmem:[%s6908_s4 + $0x70] sm:$0xff]  }
 0x12a   : > { %v5722_v63 = vpop.eup %5721  ;;  %v4520_v0 = vpop.f32.mrb[25].mxu0 }
 0x12b   : > { %v5724_v1 = vpop.eup %5723  ;;  %5733 = vpow2.f32 %v3857_v61  ;;  %v4521_v2 = vadd.f32 %v4520_v0, %v4519_v62  ;;  %v4522_v3 = vpop.f32.mrb[26].mxu0  ;;  %v746_v4 = vpack.c.bf16 %v5722_v63, %v5720_v60  ;;  %v5507_v60 = vld [vmem:[%s6908_s4 + $0x328] sm:$0xff]   ;;  %v5508_v61 = vld [vmem:[%s6908_s4 + $0x78] sm:$0xff]   ;;  %v5509_v62 = vld [vmem:[%s6908_s4 + $0x330] sm:$0xff]  }
 0x12c   : > { %v709_v5 = vadd.f32 1.0, %v5724_v1  ;;  %v4523_v6 = vpop.f32.mrb[27].mxu0  ;;  %v5510_v63 = vld [vmem:[%s6908_s4 + $0x80] sm:$0xff]   ;;  %v5511_v1 = vld [vmem:[%s6908_s4 + $0x338] sm:$0xff]  }
 0x12d   : > { %v5726_v7 = vpop.eup %5725  ;;  %v657_v8 = vadd.f32 %v4521_v2, %v5933_v41  ;;  %4781 = vmatprep.subr.bf16.mxu1 %v746_v4  ;;  %v5512_v2 = vld [vmem:[%s6908_s4 + $0x88] sm:$0xff]   ;;  %v5513_v3 = vld [vmem:[%s6908_s4 + $0x340] sm:$0xff]  }
 0x12e   : > { %v710_v9 = vadd.f32 1.0, %v5726_v7  ;;  %4782 = vmatpush3.bf16.msra.mxu1 %v746_v4  ;;  %5735 = vrcp.f32 %v709_v5  ;;  %v5514_v5 = vld [vmem:[%s6908_s4 + $0x90] sm:$0xff]   ;;  %v5515_v6 = vld [vmem:[%s6908_s4 + $0x348] sm:$0xff]   ;;  %v5516_v7 = vld [vmem:[%s6908_s4 + $0x98] sm:$0xff]  }
 0x12f   : > { %v3858_v10 = vmul.f32 -1.442695, %v657_v8  ;;  %v5517_v8 = vld [vmem:[%s6908_s4 + $0x350] sm:$0xff]  }
 0x130   : > { %5737 = vrcp.f32 %v710_v9  ;;  %v5728_v11 = vpop.eup %5727  ;;  %v5518_v9 = vld [vmem:[%s6908_s4 + $0xa0] sm:$0xff]  }
 0x131   : > { %5739 = vpow2.f32 %v3858_v10  ;;  %v5519_v10 = vld [vmem:[%s6908_s4 + $0x358] sm:$0xff]  }
 0x132   : > { %v5730_v12 = vpop.eup %5729 }
 0x133   : > { %v5732_v13 = vpop.eup %5731  ;;  %v747_v14 = vpack.c.bf16 %v5730_v12, %v5728_v11  ;;  %v5520_v11 = vld [vmem:[%s6908_s4 + $0xa8] sm:$0xff]   ;;  %v5521_v12 = vld [vmem:[%s6908_s4 + $0x360] sm:$0xff]  }
 0x134   : > { %v711_v15 = vadd.f32 1.0, %v5732_v13  ;;  %v5522_v13 = vld [vmem:[%s6908_s4 + $0xb0] sm:$0xff]  }
 0x135   : > { %v5734_v16 = vpop.eup %5733  ;;  %4783 = vmatprep.subr.bf16.mxu1 %v747_v14 }
 0x136   : > { %v712_v17 = vadd.f32 1.0, %v5734_v16  ;;  %4784 = vmatpush3.bf16.msra.mxu1 %v747_v14  ;;  %5741 = vrcp.f32 %v711_v15  ;;  %v5523_v14 = vld [vmem:[%s6908_s4 + $0x368] sm:$0xff]   ;;  %v5524_v15 = vld [vmem:[%s6908_s4 + $0xb8] sm:$0xff]   ;;  %v5525_v16 = vld [vmem:[%s6908_s4 + $0x370] sm:$0xff]  }
 0x138   : > { %5743 = vrcp.f32 %v712_v17  ;;  %v5736_v18 = vpop.eup %5735  ;;  %v5526_v17 = vld [vmem:[%s6908_s4 + $0xc0] sm:$0xff]  }
 0x13a   : > { %v5738_v41 = vpop.eup %5737 }
 0x13b   : > { %v5740_v19 = vpop.eup %5739  ;;  %v748_v20 = vpack.c.bf16 %v5738_v41, %v5736_v18  ;;  %v5527_v41 = vld [vmem:[%s6908_s4 + $0x378] sm:$0xff]  }
 0x13c   : > { %v713_v21 = vadd.f32 1.0, %v5740_v19  ;;  %v5528_v19 = vld [vmem:[%s6908_s4 + $0xc8] sm:$0xff]  }
 0x13d   : > { %4785 = vmatprep.subr.bf16.mxu1 %v748_v20 }
 0x13e   : > { %5745 = vrcp.f32 %v713_v21  ;;  %4786 = vmatpush3.bf16.msra.mxu1 %v748_v20  ;;  %v5529_v20 = vld [vmem:[%s6908_s4 + $0x380] sm:$0xff]  }
 0x140   : > { %v5742_v22 = vpop.eup %5741 }
 0x142   : > { %v5744_v23 = vpop.eup %5743 }
 0x143   : > { %v749_v24 = vpack.c.bf16 %v5744_v23, %v5742_v22  ;;  %v5530_v22 = vld [vmem:[%s6908_s4 + $0xd0] sm:$0xff]   ;;  %v5531_v23 = vld [vmem:[%s6908_s4 + $0x388] sm:$0xff]  }
 0x145   : > { %4787 = vmatprep.subr.bf16.mxu1 %v749_v24 }
 0x146   : > { %4788 = vmatpush3.bf16.msra.mxu1 %v749_v24  ;;  %v5532_v24 = vld [vmem:[%s6908_s4 + $0xd8] sm:$0xff]  }
 0x148   : > { %v5746_v25 = vpop.eup %5745 }
 0x149   : > { %v750_v26 = vpack.c.bf16 %v5746_v25, %v5746_v25  ;;  %v5533_v25 = vld [vmem:[%s6908_s4 + $0x390] sm:$0xff]  }
 0x14b   : > { %5429 = vmatprep.subr.msk.bf16.mxu1 %vm768_vm1, %v750_v26  ;;  %v770_v27 = vsel %vm768_vm1, %v750_v26, 0  ;;  %v5534_v26 = vld [vmem:[%s6908_s4 + $0xe0] sm:$0xff]  }
 0x14c   : > { %4790 = vmatpush3.bf16.msra.mxu1 %v770_v27  ;;  %v5535_v27 = vld [vmem:[%s6908_s4 + $0x398] sm:$0xff]  }
 0x14d   : > { %5015 = vmatprep.subr.bf16.mxu1 %v5763_v33 }
 0x14f   : > { %4792 = vmatmul.mubr.msk.bf16.vlgmr.msra.gmra.mrb[0].mxu1 %vm761_vm0, %v5478_v28  ;;  %v5536_v28 = vld [vmem:[%s6908_s4 + $0xe8] sm:$0xff]  }
 0x150   : > { %5016 = vmatpush3.bf16.msra.mxu1 %v5481_v29  ;;  %5031 = vmatprep.mubr.msk.bf16.mxu1 %vm5764_vm2, %v5763_v33  ;;  %v5537_v29 = vld [vmem:[%s6908_s4 + $0x3a0] sm:$0xff]  }
 0x151   : > { %5017 = vmatprep.subr.bf16.mxu1 %v5763_v33 }
 0x154   : > { %5018 = vmatpush3.bf16.msra.mxu1 %v5483_v30  ;;  %v5538_v30 = vld [vmem:[%s6908_s4 + $0xf0] sm:$0xff]  }
 0x155   : > { %5019 = vmatprep.subr.bf16.mxu1 %v5763_v33 }
 0x158   : > { %5020 = vmatpush3.bf16.msra.mxu1 %v5485_v31  ;;  %v5539_v31 = vld [vmem:[%s6908_s4 + $0x3a8] sm:$0xff]  }
 0x159   : > { %5021 = vmatprep.subr.bf16.mxu1 %v5763_v33 }
 0x15c   : > { %5022 = vmatpush3.bf16.msra.mxu1 %v5487_v32  ;;  %v5540_v32 = vld [vmem:[%s6908_s4 + $0xf8] sm:$0xff]  }
 0x15d   : > { %5023 = vmatprep.subr.bf16.mxu1 %v5763_v33 }
 0x160   : > { %5024 = vmatpush3.bf16.msra.mxu1 %v5489_v34  ;;  %v5541_v34 = vld [vmem:[%s6908_s4 + $0x3b0] sm:$0xff]  }
 0x161   : > { %5025 = vmatprep.subr.bf16.mxu1 %v5763_v33 }
 0x164   : > { %5026 = vmatpush3.bf16.msra.mxu1 %v5491_v35  ;;  %v5542_v35 = vld [vmem:[%s6908_s4 + $0x100] sm:$0xff]  }
 0x165   : > { %5027 = vmatprep.subr.bf16.mxu1 %v5763_v33 }
 0x168   : > { %5028 = vmatpush3.bf16.msra.mxu1 %v5493_v37  ;;  %v5543_v37 = vld [vmem:[%s6908_s4 + $0x3b8] sm:$0xff]  }
 0x169   : > { %5029 = vmatprep.subr.bf16.mxu1 %v5763_v33 }
 0x16c   : > { %5030 = vmatpush3.bf16.msra.mxu1 %v5495_v38  ;;  %v5544_v38 = vld [vmem:[%s6908_s4 + $0x108] sm:$0xff]  }
 0x16d   : > { %5035 = vmatprep.subr.bf16.mxu1 %v5763_v33 }
 0x222   : > { %v5993_v39 = vpop.f32.mrb[0].mxu1 }
 0x223   : > { %v806_v40 = vpop.f32.mrb[1].mxu1 }
 0x224   : > { %v5998_v43 = vpack.c.bf16 %v806_v40, %v806_v40  ;;  %v6000_v44 = vpop.f32.mrb[2].mxu1  ;;  %v5545_v40 = vld [vmem:[%s6908_s4 + $0x3c0] sm:$0xff]  }
 0x225   : > { %v809_v45 = vpop.f32.mrb[3].mxu1 }
 0x226   : > { %v6002_v46 = vpack.c.bf16 %v809_v45, %v809_v45  ;;  %4812 = vmatmul.mubr.bf16.vlgmr.msra.gmra.mrb[28].mxu0 %v5998_v43  ;;  %v6072_v0 = vshrl.u32 %v5998_v43, 16  ;;  %v1056_v18 = vrot.slane %v5998_v43, 1  ;;  %v5546_v45 = vld [vmem:[%s6908_s4 + $0x110] sm:$0xff]  }
 0x227   : > { %4816 = vmatpush3.bf16.msra.mxu0 %v5494_v42  ;;  %4831 = vmatprep.mubr.msk.bf16.mxu0 %vm5764_vm2, %v5763_v33 }
 0x228   : > { %v6011_v48 = vshrl.u32 %v6002_v46, 16  ;;  %4817 = vmatprep.subr.bf16.mxu0 %v5763_v33  ;;  %v2138_v4 = vrot.slane %v6002_v46, 2  ;;  %v1164_v36 = vrot.slane %v6072_v0, 1  ;;  %v2354_v42 = vrot.slane %v6002_v46, 3 }
 0x22a   : > { %v2030_v50 = vrot.slane %v6011_v48, 1  ;;  %v2246_v21 = vrot.slane %v6011_v48, 2 }
 0x22b   : > { %4818 = vmatpush3.bf16.msra.mxu0 %v5496_v47  ;;  %v5547_v47 = vld [vmem:[%s6908_s4 + $0x3c8] sm:$0xff]  }
 0x22c   : > { %5032 = vmatmul.mubr.bf16.vlgmr.msra.gmra.mrb[4].mxu1 %v2030_v50  ;;  %4819 = vmatprep.subr.bf16.mxu0 %v5763_v33  ;;  %v5549_v50 = vld [vmem:[%s6908_s4 + $0x3d0] sm:$0xff]  }
 0x22d   : > { %5036 = vmatpush3.bf16.msra.mxu1 %v5497_v49  ;;  %5051 = vmatprep.mubr.msk.bf16.mxu1 %vm5764_vm2, %v5763_v33  ;;  %v5548_v49 = vld [vmem:[%s6908_s4 + $0x118] sm:$0xff]  }
 0x22e   : > { %5037 = vmatprep.subr.bf16.mxu1 %v5763_v33 }
 0x22f   : > { %4820 = vmatpush3.bf16.msra.mxu0 %v5498_v51  ;;  %v5550_v51 = vld [vmem:[%s6908_s4 + $0x120] sm:$0xff]  }
 0x230   : > { %4821 = vmatprep.subr.bf16.mxu0 %v5763_v33 }
 0x231   : > { %5038 = vmatpush3.bf16.msra.mxu1 %v5499_v52  ;;  %v5551_v52 = vld [vmem:[%s6908_s4 + $0x3d8] sm:$0xff]  }
 0x232   : > { %5039 = vmatprep.subr.bf16.mxu1 %v5763_v33 }
 0x233   : > { %4822 = vmatpush3.bf16.msra.mxu0 %v5500_v53  ;;  %v5552_v53 = vld [vmem:[%s6908_s4 + $0x128] sm:$0xff]  }
 0x234   : > { %4823 = vmatprep.subr.bf16.mxu0 %v5763_v33 }
 0x235   : > { %5040 = vmatpush3.bf16.msra.mxu1 %v5501_v54  ;;  %v5553_v54 = vld [vmem:[%s6908_s4 + $0x3e0] sm:$0xff]  }
 0x236   : > { %5041 = vmatprep.subr.bf16.mxu1 %v5763_v33 }
 0x237   : > { %4824 = vmatpush3.bf16.msra.mxu0 %v5502_v55  ;;  %v5554_v55 = vld [vmem:[%s6908_s4 + $0x130] sm:$0xff]  }
 0x238   : > { %4825 = vmatprep.subr.bf16.mxu0 %v5763_v33 }
 0x239   : > { %5042 = vmatpush3.bf16.msra.mxu1 %v5503_v56  ;;  %v5555_v56 = vld [vmem:[%s6908_s4 + $0x3e8] sm:$0xff]  }
 0x23a   : > { %5043 = vmatprep.subr.bf16.mxu1 %v5763_v33 }
 0x23b   : > { %4826 = vmatpush3.bf16.msra.mxu0 %v5504_v57  ;;  %v5556_v57 = vld [vmem:[%s6908_s4 + $0x138] sm:$0xff]  }
 0x23c   : > { %4827 = vmatprep.subr.bf16.mxu0 %v5763_v33 }
 0x23d   : > { %5044 = vmatpush3.bf16.msra.mxu1 %v5505_v58  ;;  %v5557_v58 = vld [vmem:[%s6908_s4 + $0x3f0] sm:$0xff]  }
 0x23e   : > { %5045 = vmatprep.subr.bf16.mxu1 %v5763_v33 }
 0x23f   : > { %4828 = vmatpush3.bf16.msra.mxu0 %v5506_v59  ;;  %v5558_v59 = vld [vmem:[%s6908_s4 + $0x140] sm:$0xff]  }
 0x240   : > { %4829 = vmatprep.subr.bf16.mxu0 %v5763_v33 }
 0x241   : > { %5046 = vmatpush3.bf16.msra.mxu1 %v5507_v60  ;;  %v1272_v60 = vrot.slane %v5998_v43, 2 }
 0x242   : > { %5047 = vmatprep.subr.bf16.mxu1 %v5763_v33 }
 0x243   : > { %4830 = vmatpush3.bf16.msra.mxu0 %v5508_v61  ;;  %v5559_v61 = vld [vmem:[%s6908_s4 + $0x3f8] sm:$0xff]  }
 0x244   : > { %4835 = vmatprep.subr.bf16.mxu0 %v5763_v33 }
 0x245   : > { %5048 = vmatpush3.bf16.msra.mxu1 %v5509_v62  ;;  %v5560_v62 = vld [vmem:[%s6908_s4 + $0x148] sm:$0xff]  }
 0x246   : > { %4832 = vmatmul.mubr.bf16.vlgmr.msra.gmra.mrb[28].mxu0 %v6072_v0  ;;  %5049 = vmatprep.subr.bf16.mxu1 %v5763_v33 }
 0x247   : > { %4836 = vmatpush3.bf16.msra.mxu0 %v5510_v63  ;;  %4851 = vmatprep.mubr.msk.bf16.mxu0 %vm5764_vm2, %v5763_v33  ;;  %v5561_v63 = vld [vmem:[%s6908_s4 + $0x400] sm:$0xff]  }
 0x248   : > { %4837 = vmatprep.subr.bf16.mxu0 %v5763_v33 }
 0x249   : > { %5050 = vmatpush3.bf16.msra.mxu1 %v5511_v1  ;;  %v2462_v1 = vrot.slane %v6011_v48, 3 }
 0x24a   : > { %5055 = vmatprep.subr.bf16.mxu1 %v5763_v33 }
 0x24b   : > { %4838 = vmatpush3.bf16.msra.mxu0 %v5512_v2  ;;  %v5562_v2 = vld [vmem:[%s6908_s4 + $0x150] sm:$0xff]  }
 0x24c   : > { %5052 = vmatmul.mubr.bf16.vlgmr.msra.gmra.mrb[4].mxu1 %v2138_v4  ;;  %4839 = vmatprep.subr.bf16.mxu0 %v5763_v33  ;;  %v5564_v4 = vld [vmem:[%s6908_s4 + $0x158] sm:$0xff]  }
 0x24d   : > { %5056 = vmatpush3.bf16.msra.mxu1 %v5513_v3  ;;  %5071 = vmatprep.mubr.msk.bf16.mxu1 %vm5764_vm2, %v5763_v33  ;;  %v5563_v3 = vld [vmem:[%s6908_s4 + $0x408] sm:$0xff]  }
 0x24e   : > { %5057 = vmatprep.subr.bf16.mxu1 %v5763_v33 }
 0x24f   : > { %4840 = vmatpush3.bf16.msra.mxu0 %v5514_v5  ;;  %v5565_v5 = vld [vmem:[%s6908_s4 + $0x410] sm:$0xff]  }
 0x250   : > { %4841 = vmatprep.subr.bf16.mxu0 %v5763_v33 }
 0x251   : > { %5058 = vmatpush3.bf16.msra.mxu1 %v5515_v6  ;;  %v5566_v6 = vld [vmem:[%s6908_s4 + $0x160] sm:$0xff]  }
 0x252   : > { %5059 = vmatprep.subr.bf16.mxu1 %v5763_v33 }
 0x253   : > { %4842 = vmatpush3.bf16.msra.mxu0 %v5516_v7  ;;  %v5567_v7 = vld [vmem:[%s6908_s4 + $0x418] sm:$0xff]  }
 0x254   : > { %4843 = vmatprep.subr.bf16.mxu0 %v5763_v33 }
 0x255   : > { %5060 = vmatpush3.bf16.msra.mxu1 %v5517_v8  ;;  %v5568_v8 = vld [vmem:[%s6908_s4 + $0x168] sm:$0xff]  }
 0x256   : > { %5061 = vmatprep.subr.bf16.mxu1 %v5763_v33 }
 0x257   : > { %4844 = vmatpush3.bf16.msra.mxu0 %v5518_v9  ;;  %v5569_v9 = vld [vmem:[%s6908_s4 + $0x420] sm:$0xff]  }
 0x258   : > { %4845 = vmatprep.subr.bf16.mxu0 %v5763_v33 }
 0x259   : > { %5062 = vmatpush3.bf16.msra.mxu1 %v5519_v10  ;;  %v5570_v10 = vld [vmem:[%s6908_s4 + $0x170] sm:$0xff]  }
 0x25a   : > { %5063 = vmatprep.subr.bf16.mxu1 %v5763_v33 }
 0x25b   : > { %4846 = vmatpush3.bf16.msra.mxu0 %v5520_v11  ;;  %v5571_v11 = vld [vmem:[%s6908_s4 + $0x428] sm:$0xff]  }
 0x25c   : > { %4847 = vmatprep.subr.bf16.mxu0 %v5763_v33 }
 0x25d   : > { %5064 = vmatpush3.bf16.msra.mxu1 %v5521_v12  ;;  %v5572_v12 = vld [vmem:[%s6908_s4 + $0x178] sm:$0xff]  }
 0x25e   : > { %5065 = vmatprep.subr.bf16.mxu1 %v5763_v33 }
 0x25f   : > { %4848 = vmatpush3.bf16.msra.mxu0 %v5522_v13  ;;  %v5573_v13 = vld [vmem:[%s6908_s4 + $0x430] sm:$0xff]  }
 0x260   : > { %4849 = vmatprep.subr.bf16.mxu0 %v5763_v33 }
 0x261   : > { %5066 = vmatpush3.bf16.msra.mxu1 %v5523_v14  ;;  %v5574_v14 = vld [vmem:[%s6908_s4 + $0x180] sm:$0xff]  }
 0x262   : > { %5067 = vmatprep.subr.bf16.mxu1 %v5763_v33 }
 0x263   : > { %4850 = vmatpush3.bf16.msra.mxu0 %v5524_v15  ;;  %v1380_v15 = vrot.slane %v6072_v0, 2 }
 0x264   : > { %4855 = vmatprep.subr.bf16.mxu0 %v5763_v33 }
 0x265   : > { %5068 = vmatpush3.bf16.msra.mxu1 %v5525_v16  ;;  %v5575_v16 = vld [vmem:[%s6908_s4 + $0x438] sm:$0xff]  }
 0x266   : > { %4852 = vmatmul.mubr.bf16.vlgmr.msra.gmra.mrb[28].mxu0 %v1056_v18  ;;  %5069 = vmatprep.subr.bf16.mxu1 %v5763_v33  ;;  %v5577_v18 = vld [vmem:[%s6908_s4 + $0x440] sm:$0xff]  }
 0x267   : > { %4856 = vmatpush3.bf16.msra.mxu0 %v5526_v17  ;;  %4871 = vmatprep.mubr.msk.bf16.mxu0 %vm5764_vm2, %v5763_v33  ;;  %v5576_v17 = vld [vmem:[%s6908_s4 + $0x188] sm:$0xff]  }
 0x268   : > { %4857 = vmatprep.subr.bf16.mxu0 %v5763_v33 }
 0x269   : > { %5070 = vmatpush3.bf16.msra.mxu1 %v5527_v41  ;;  %v6371_v41 = vpack.c.bf16 %v5993_v39, %v5993_v39  ;;  %v5580_v39 = vld [vmem:[%s6908_s4 + $0x198] sm:$0xff]  }
 0x26a   : > { %5075 = vmatprep.subr.bf16.mxu1 %v5763_v33 }
 0x26b   : > { %4858 = vmatpush3.bf16.msra.mxu0 %v5528_v19  ;;  %v5578_v19 = vld [vmem:[%s6908_s4 + $0x190] sm:$0xff]  }
 0x26c   : > { %5072 = vmatmul.mubr.bf16.vlgmr.msra.gmra.mrb[4].mxu1 %v2246_v21  ;;  %4859 = vmatprep.subr.bf16.mxu0 %v5763_v33  ;;  %v5581_v21 = vld [vmem:[%s6908_s4 + $0x450] sm:$0xff]  }
 0x26d   : > { %5076 = vmatpush3.bf16.msra.mxu1 %v5529_v20  ;;  %5091 = vmatprep.mubr.msk.bf16.mxu1 %vm5764_vm2, %v5763_v33  ;;  %v5579_v20 = vld [vmem:[%s6908_s4 + $0x448] sm:$0xff]  }
 0x26e   : > { %5077 = vmatprep.subr.bf16.mxu1 %v5763_v33 }
 0x26f   : > { %4860 = vmatpush3.bf16.msra.mxu0 %v5530_v22  ;;  %v5582_v22 = vld [vmem:[%s6908_s4 + $0x1a0] sm:$0xff]  }
 0x270   : > { %4861 = vmatprep.subr.bf16.mxu0 %v5763_v33 }
 0x271   : > { %5078 = vmatpush3.bf16.msra.mxu1 %v5531_v23  ;;  %v5583_v23 = vld [vmem:[%s6908_s4 + $0x458] sm:$0xff]  }
 0x272   : > { %5079 = vmatprep.subr.bf16.mxu1 %v5763_v33 }
 0x273   : > { %4862 = vmatpush3.bf16.msra.mxu0 %v5532_v24  ;;  %v5584_v24 = vld [vmem:[%s6908_s4 + $0x1a8] sm:$0xff]  }
 0x274   : > { %4863 = vmatprep.subr.bf16.mxu0 %v5763_v33 }
 0x275   : > { %5080 = vmatpush3.bf16.msra.mxu1 %v5533_v25  ;;  %v5585_v25 = vld [vmem:[%s6908_s4 + $0x460] sm:$0xff]  }
 0x276   : > { %5081 = vmatprep.subr.bf16.mxu1 %v5763_v33 }
 0x277   : > { %4864 = vmatpush3.bf16.msra.mxu0 %v5534_v26  ;;  %v5586_v26 = vld [vmem:[%s6908_s4 + $0x1b0] sm:$0xff]  }
 0x278   : > { %4865 = vmatprep.subr.bf16.mxu0 %v5763_v33 }
 0x279   : > { %5082 = vmatpush3.bf16.msra.mxu1 %v5535_v27  ;;  %v5587_v27 = vld [vmem:[%s6908_s4 + $0x468] sm:$0xff]  }
 0x27a   : > { %5083 = vmatprep.subr.bf16.mxu1 %v5763_v33 }
 0x27b   : > { %4866 = vmatpush3.bf16.msra.mxu0 %v5536_v28  ;;  %v5588_v28 = vld [vmem:[%s6908_s4 + $0x1b8] sm:$0xff]  }
 0x27c   : > { %4867 = vmatprep.subr.bf16.mxu0 %v5763_v33 }
 0x27d   : > { %5084 = vmatpush3.bf16.msra.mxu1 %v5537_v29  ;;  %v5589_v29 = vld [vmem:[%s6908_s4 + $0x470] sm:$0xff]  }
 0x27e   : > { %5085 = vmatprep.subr.bf16.mxu1 %v5763_v33 }
 0x27f   : > { %4868 = vmatpush3.bf16.msra.mxu0 %v5538_v30  ;;  %v5590_v30 = vld [vmem:[%s6908_s4 + $0x1c0] sm:$0xff]  }
 0x280   : > { %4869 = vmatprep.subr.bf16.mxu0 %v5763_v33 }
 0x281   : > { %5086 = vmatpush3.bf16.msra.mxu1 %v5539_v31  ;;  %v1488_v31 = vrot.slane %v5998_v43, 3  ;;  %v5593_v43 = vld [vmem:[%s6908_s4 + $0x480] sm:$0xff]  }
 0x282   : > { %5087 = vmatprep.subr.bf16.mxu1 %v5763_v33 }
 0x283   : > { %4870 = vmatpush3.bf16.msra.mxu0 %v5540_v32  ;;  %v5591_v32 = vld [vmem:[%s6908_s4 + $0x478] sm:$0xff]  }
 0x284   : > { %4875 = vmatprep.subr.bf16.mxu0 %v5763_v33 }
 0x285   : > { %5088 = vmatpush3.bf16.msra.mxu1 %v5541_v34  ;;  %v5592_v34 = vld [vmem:[%s6908_s4 + $0x1c8] sm:$0xff]  }
 0x286   : > { %4872 = vmatmul.mubr.bf16.vlgmr.msra.gmra.mrb[28].mxu0 %v1164_v36  ;;  %5089 = vmatprep.subr.bf16.mxu1 %v5763_v33  ;;  %v5594_v36 = vld [vmem:[%s6908_s4 + $0x1d0] sm:$0xff]  }
 0x287   : > { %4876 = vmatpush3.bf16.msra.mxu0 %v5542_v35  ;;  %4891 = vmatprep.mubr.msk.bf16.mxu0 %vm5764_vm2, %v5763_v33  ;;  %v6444_v35 = vshrl.u32 %v6371_v41, 16 }
 0x288   : > { %4877 = vmatprep.subr.bf16.mxu0 %v5763_v33 }
 0x289   : > { %5090 = vmatpush3.bf16.msra.mxu1 %v5543_v37  ;;  %v5595_v37 = vld [vmem:[%s6908_s4 + $0x488] sm:$0xff]  }
 0x28a   : > { %5095 = vmatprep.subr.bf16.mxu1 %v5763_v33 }
 0x28b   : > { %4878 = vmatpush3.bf16.msra.mxu0 %v5544_v38  ;;  %v5596_v38 = vld [vmem:[%s6908_s4 + $0x1d8] sm:$0xff]  }
 0x28c   : > { %5092 = vmatmul.mubr.bf16.vlgmr.msra.gmra.mrb[4].mxu1 %v2354_v42  ;;  %4879 = vmatprep.subr.bf16.mxu0 %v5763_v33  ;;  %v5598_v42 = vld [vmem:[%s6908_s4 + $0x1e0] sm:$0xff]  }
 0x28d   : > { %5096 = vmatpush3.bf16.msra.mxu1 %v5545_v40  ;;  %5111 = vmatprep.mubr.msk.bf16.mxu1 %vm5764_vm2, %v5763_v33  ;;  %v5597_v40 = vld [vmem:[%s6908_s4 + $0x490] sm:$0xff]  }
 0x28e   : > { %5097 = vmatprep.subr.bf16.mxu1 %v5763_v33 }
 0x28f   : > { %4880 = vmatpush3.bf16.msra.mxu0 %v5546_v45  ;;  %v5599_v45 = vld [vmem:[%s6908_s4 + $0x498] sm:$0xff]  }
 0x290   : > { %4881 = vmatprep.subr.bf16.mxu0 %v5763_v33 }
 0x291   : > { %5098 = vmatpush3.bf16.msra.mxu1 %v5547_v47  ;;  %v5600_v47 = vld [vmem:[%s6908_s4 + $0x1e8] sm:$0xff]  }
 0x292   : > { %5099 = vmatprep.subr.bf16.mxu1 %v5763_v33 }
 0x293   : > { %4882 = vmatpush3.bf16.msra.mxu0 %v5548_v49  ;;  %v5601_v49 = vld [vmem:[%s6908_s4 + $0x4a0] sm:$0xff]  }
 0x294   : > { %4883 = vmatprep.subr.bf16.mxu0 %v5763_v33 }
 0x295   : > { %5100 = vmatpush3.bf16.msra.mxu1 %v5549_v50  ;;  %v5602_v50 = vld [vmem:[%s6908_s4 + $0x1f0] sm:$0xff]  }
 0x296   : > { %5101 = vmatprep.subr.bf16.mxu1 %v5763_v33 }
 0x297   : > { %4884 = vmatpush3.bf16.msra.mxu0 %v5550_v51  ;;  %v5603_v51 = vld [vmem:[%s6908_s4 + $0x4a8] sm:$0xff]  }
 0x298   : > { %4885 = vmatprep.subr.bf16.mxu0 %v5763_v33 }
 0x299   : > { %5102 = vmatpush3.bf16.msra.mxu1 %v5551_v52  ;;  %v5604_v52 = vld [vmem:[%s6908_s4 + $0x1f8] sm:$0xff]  }
 0x29a   : > { %5103 = vmatprep.subr.bf16.mxu1 %v5763_v33 }
 0x29b   : > { %4886 = vmatpush3.bf16.msra.mxu0 %v5552_v53  ;;  %v5605_v53 = vld [vmem:[%s6908_s4 + $0x4b0] sm:$0xff]  }
 0x29c   : > { %4887 = vmatprep.subr.bf16.mxu0 %v5763_v33 }
 0x29d   : > { %5104 = vmatpush3.bf16.msra.mxu1 %v5553_v54  ;;  %v5606_v54 = vld [vmem:[%s6908_s4 + $0x200] sm:$0xff]  }
 0x29e   : > { %5105 = vmatprep.subr.bf16.mxu1 %v5763_v33 }
 0x29f   : > { %4888 = vmatpush3.bf16.msra.mxu0 %v5554_v55  ;;  %v1596_v55 = vrot.slane %v6072_v0, 3  ;;  %v5609_v0 = vld [vmem:[%s6908_s4 + $0x4c0] sm:$0xff]  }
 0x2a0   : > { %4889 = vmatprep.subr.bf16.mxu0 %v5763_v33 }
 0x2a1   : > { %5106 = vmatpush3.bf16.msra.mxu1 %v5555_v56  ;;  %v5607_v56 = vld [vmem:[%s6908_s4 + $0x4b8] sm:$0xff]  }
 0x2a2   : > { %5107 = vmatprep.subr.bf16.mxu1 %v5763_v33 }
 0x2a3   : > { %4890 = vmatpush3.bf16.msra.mxu0 %v5556_v57  ;;  %v5608_v57 = vld [vmem:[%s6908_s4 + $0x208] sm:$0xff]  }
 0x2a4   : > { %4895 = vmatprep.subr.bf16.mxu0 %v5763_v33 }
 0x2a5   : > { %5108 = vmatpush3.bf16.msra.mxu1 %v5557_v58  ;;  %v2788_v58 = vrot.slane %v6371_v41, 1 }
 0x2a6   : > { %4892 = vmatmul.mubr.bf16.vlgmr.msra.gmra.mrb[28].mxu0 %v1272_v60  ;;  %5109 = vmatprep.subr.bf16.mxu1 %v5763_v33  ;;  %v5611_v60 = vld [vmem:[%s6908_s4 + $0x4c8] sm:$0xff]  }
 0x2a7   : > { %4896 = vmatpush3.bf16.msra.mxu0 %v5558_v59  ;;  %4911 = vmatprep.mubr.msk.bf16.mxu0 %vm5764_vm2, %v5763_v33  ;;  %v5610_v59 = vld [vmem:[%s6908_s4 + $0x210] sm:$0xff]  }
 0x2a8   : > { %4897 = vmatprep.subr.bf16.mxu0 %v5763_v33 }
 0x2a9   : > { %5110 = vmatpush3.bf16.msra.mxu1 %v5559_v61  ;;  %v5612_v61 = vld [vmem:[%s6908_s4 + $0x218] sm:$0xff]  }
 0x2aa   : > { %5115 = vmatprep.subr.bf16.mxu1 %v5763_v33 }
 0x2ab   : > { %4898 = vmatpush3.bf16.msra.mxu0 %v5560_v62  ;;  %v5613_v62 = vld [vmem:[%s6908_s4 + $0x4d0] sm:$0xff]  }
 0x2ac   : > { %5112 = vmatmul.mubr.bf16.vlgmr.msra.gmra.mrb[4].mxu1 %v2462_v1  ;;  %4899 = vmatprep.subr.bf16.mxu0 %v5763_v33  ;;  %v5615_v1 = vld [vmem:[%s6908_s4 + $0x4d8] sm:$0xff]  }
 0x2ad   : > { %5116 = vmatpush3.bf16.msra.mxu1 %v5561_v63  ;;  %5131 = vmatprep.mubr.msk.bf16.mxu1 %vm5764_vm2, %v5763_v33  ;;  %v5614_v63 = vld [vmem:[%s6908_s4 + $0x220] sm:$0xff]  }
 0x2ae   : > { %5117 = vmatprep.subr.bf16.mxu1 %v5763_v33 }
 0x2af   : > { %4900 = vmatpush3.bf16.msra.mxu0 %v5562_v2  ;;  %v5616_v2 = vld [vmem:[%s6908_s4 + $0x228] sm:$0xff]  }
 0x2b0   : > { %4901 = vmatprep.subr.bf16.mxu0 %v5763_v33 }
 0x2b1   : > { %5118 = vmatpush3.bf16.msra.mxu1 %v5563_v3  ;;  %v5617_v3 = vld [vmem:[%s6908_s4 + $0x4e0] sm:$0xff]  }
 0x2b2   : > { %5119 = vmatprep.subr.bf16.mxu1 %v5763_v33 }
 0x2b3   : > { %4902 = vmatpush3.bf16.msra.mxu0 %v5564_v4  ;;  %v5618_v4 = vld [vmem:[%s6908_s4 + $0x230] sm:$0xff]  }
 0x2b4   : > { %4903 = vmatprep.subr.bf16.mxu0 %v5763_v33 }
 0x2b5   : > { %5120 = vmatpush3.bf16.msra.mxu1 %v5565_v5  ;;  %v5619_v5 = vld [vmem:[%s6908_s4 + $0x4e8] sm:$0xff]  }
 0x2b6   : > { %5121 = vmatprep.subr.bf16.mxu1 %v5763_v33 }
 0x2b7   : > { %4904 = vmatpush3.bf16.msra.mxu0 %v5566_v6  ;;  %v5620_v6 = vld [vmem:[%s6908_s4 + $0x238] sm:$0xff]  }
 0x2b8   : > { %4905 = vmatprep.subr.bf16.mxu0 %v5763_v33 }
 0x2b9   : > { %5122 = vmatpush3.bf16.msra.mxu1 %v5567_v7  ;;  %v5621_v7 = vld [vmem:[%s6908_s4 + $0x4f0] sm:$0xff]  }
 0x2ba   : > { %5123 = vmatprep.subr.bf16.mxu1 %v5763_v33 }
 0x2bb   : > { %4906 = vmatpush3.bf16.msra.mxu0 %v5568_v8  ;;  %v5622_v8 = vld [vmem:[%s6908_s4 + $0x240] sm:$0xff]  }
 0x2bc   : > { %4907 = vmatprep.subr.bf16.mxu0 %v5763_v33 }
 0x2bd   : > { %5124 = vmatpush3.bf16.msra.mxu1 %v5569_v9  ;;  %v5623_v9 = vld [vmem:[%s6908_s4 + $0x4f8] sm:$0xff]  }
 0x2be   : > { %5125 = vmatprep.subr.bf16.mxu1 %v5763_v33 }
 0x2bf   : > { %4908 = vmatpush3.bf16.msra.mxu0 %v5570_v10  ;;  %v5624_v10 = vld [vmem:[%s6908_s4 + $0x248] sm:$0xff]  }
 0x2c0   : > { %4909 = vmatprep.subr.bf16.mxu0 %v5763_v33 }
 0x2c1   : > { %5126 = vmatpush3.bf16.msra.mxu1 %v5571_v11  ;;  %v5625_v11 = vld [vmem:[%s6908_s4 + $0x500] sm:$0xff]  }
 0x2c2   : > { %5127 = vmatprep.subr.bf16.mxu1 %v5763_v33 }
 0x2c3   : > { %4910 = vmatpush3.bf16.msra.mxu0 %v5572_v12  ;;  %v2896_v12 = vrot.slane %v6444_v35, 1 }
 0x2c4   : > { %4915 = vmatprep.subr.bf16.mxu0 %v5763_v33 }
 0x2c5   : > { %5128 = vmatpush3.bf16.msra.mxu1 %v5573_v13  ;;  %v5626_v13 = vld [vmem:[%s6908_s4 + $0x250] sm:$0xff]  }
 0x2c6   : > { %4912 = vmatmul.mubr.bf16.vlgmr.msra.gmra.mrb[28].mxu0 %v1380_v15  ;;  %5129 = vmatprep.subr.bf16.mxu1 %v5763_v33  ;;  %v5628_v15 = vld [vmem:[%s6908_s4 + $0x258] sm:$0xff]  }
 0x2c7   : > { %4916 = vmatpush3.bf16.msra.mxu0 %v5574_v14  ;;  %4931 = vmatprep.mubr.msk.bf16.mxu0 %vm5764_vm2, %v5763_v33  ;;  %v5627_v14 = vld [vmem:[%s6908_s4 + $0x508] sm:$0xff]  }
 0x2c8   : > { %4917 = vmatprep.subr.bf16.mxu0 %v5763_v33 }
 0x2c9   : > { %5130 = vmatpush3.bf16.msra.mxu1 %v5575_v16  ;;  %v5629_v16 = vld [vmem:[%s6908_s4 + $0x510] sm:$0xff]  }
 0x2ca   : > { %5135 = vmatprep.subr.bf16.mxu1 %v5763_v33 }
 0x2cb   : > { %4918 = vmatpush3.bf16.msra.mxu0 %v5576_v17  ;;  %v5630_v17 = vld [vmem:[%s6908_s4 + $0x260] sm:$0xff]  }
 0x2cc   : > { %5132 = vmatmul.mubr.bf16.vlgmr.msra.gmra.mrb[4].mxu1 %v6371_v41  ;;  %4919 = vmatprep.subr.bf16.mxu0 %v5763_v33 }
 0x2cd   : > { %5136 = vmatpush3.bf16.msra.mxu1 %v5577_v18  ;;  %5151 = vmatprep.mubr.msk.bf16.mxu1 %vm5764_vm2, %v5763_v33  ;;  %v5631_v18 = vld [vmem:[%s6908_s4 + $0x518] sm:$0xff]  }
 0x2ce   : > { %5137 = vmatprep.subr.bf16.mxu1 %v5763_v33 }
 0x2cf   : > { %4920 = vmatpush3.bf16.msra.mxu0 %v5578_v19  ;;  %v5632_v19 = vld [vmem:[%s6908_s4 + $0x268] sm:$0xff]  }
 0x2d0   : > { %4921 = vmatprep.subr.bf16.mxu0 %v5763_v33 }
 0x2d1   : > { %5138 = vmatpush3.bf16.msra.mxu1 %v5579_v20  ;;  %v5633_v20 = vld [vmem:[%s6908_s4 + $0x520] sm:$0xff]  }
 0x2d2   : > { %5139 = vmatprep.subr.bf16.mxu1 %v5763_v33 }
 0x2d3   : > { %4922 = vmatpush3.bf16.msra.mxu0 %v5580_v39  ;;  %v5634_v39 = vld [vmem:[%s6908_s4 + $0x270] sm:$0xff]  }
 0x2d4   : > { %4923 = vmatprep.subr.bf16.mxu0 %v5763_v33 }
 0x2d5   : > { %5140 = vmatpush3.bf16.msra.mxu1 %v5581_v21  ;;  %v5635_v21 = vld [vmem:[%s6908_s4 + $0x528] sm:$0xff]  }
 0x2d6   : > { %5141 = vmatprep.subr.bf16.mxu1 %v5763_v33 }
 0x2d7   : > { %4924 = vmatpush3.bf16.msra.mxu0 %v5582_v22  ;;  %v5636_v22 = vld [vmem:[%s6908_s4 + $0x278] sm:$0xff]  }
 0x2d8   : > { %4925 = vmatprep.subr.bf16.mxu0 %v5763_v33 }
 0x2d9   : > { %5142 = vmatpush3.bf16.msra.mxu1 %v5583_v23  ;;  %v5637_v23 = vld [vmem:[%s6908_s4 + $0x530] sm:$0xff]  }
 0x2da   : > { %5143 = vmatprep.subr.bf16.mxu1 %v5763_v33 }
 0x2db   : > { %4926 = vmatpush3.bf16.msra.mxu0 %v5584_v24  ;;  %v5638_v24 = vld [vmem:[%s6908_s4 + $0x280] sm:$0xff]  }
 0x2dc   : > { %4927 = vmatprep.subr.bf16.mxu0 %v5763_v33 }
 0x2dd   : > { %5144 = vmatpush3.bf16.msra.mxu1 %v5585_v25  ;;  %v5639_v25 = vld [vmem:[%s6908_s4 + $0x538] sm:$0xff]  }
 0x2de   : > { %5145 = vmatprep.subr.bf16.mxu1 %v5763_v33 }
 0x2df   : > { %4928 = vmatpush3.bf16.msra.mxu0 %v5586_v26  ;;  %v5640_v26 = vld [vmem:[%s6908_s4 + $0x288] sm:$0xff]  }
 0x2e0   : > { %4929 = vmatprep.subr.bf16.mxu0 %v5763_v33 }
 0x2e1   : > { %5146 = vmatpush3.bf16.msra.mxu1 %v5587_v27  ;;  %v5641_v27 = vld [vmem:[%s6908_s4 + $0x540] sm:$0xff]  }
 0x2e2   : > { %5147 = vmatprep.subr.bf16.mxu1 %v5763_v33 }
 0x2e3   : > { %4930 = vmatpush3.bf16.msra.mxu0 %v5588_v28  ;;  %v3004_v28 = vrot.slane %v6371_v41, 2 }
 0x2e4   : > { %4935 = vmatprep.subr.bf16.mxu0 %v5763_v33 }
 0x2e5   : > { %5148 = vmatpush3.bf16.msra.mxu1 %v5589_v29  ;;  %v5643_v29 = vld [vmem:[%s6908_s4 + $0x548] sm:$0xff]  }
 0x2e6   : > { %4932 = vmatmul.mubr.bf16.vlgmr.msra.gmra.mrb[28].mxu0 %v1488_v31  ;;  %5149 = vmatprep.subr.bf16.mxu1 %v5763_v33  ;;  %v5645_v31 = vld [vmem:[%s6908_s4 + $0x550] sm:$0xff]  }
 0x2e7   : > { %4936 = vmatpush3.bf16.msra.mxu0 %v5590_v30  ;;  %4951 = vmatprep.mubr.msk.bf16.mxu0 %vm5764_vm2, %v5763_v33  ;;  %v5644_v30 = vld [vmem:[%s6908_s4 + $0x298] sm:$0xff]  }
 0x2e8   : > { %4937 = vmatprep.subr.bf16.mxu0 %v5763_v33 }
 0x2e9   : > { %5150 = vmatpush3.bf16.msra.mxu1 %v5591_v32  ;;  %v5646_v32 = vld [vmem:[%s6908_s4 + $0x2a0] sm:$0xff]  }
 0x2ea   : > { %5155 = vmatprep.subr.bf16.mxu1 %v5763_v33 }
 0x2eb   : > { %4938 = vmatpush3.bf16.msra.mxu0 %v5592_v34  ;;  %v5647_v34 = vld [vmem:[%s6908_s4 + $0x558] sm:$0xff]  }
 0x2ec   : > { %5152 = vmatmul.mubr.bf16.vlgmr.msra.gmra.mrb[4].mxu1 %v6444_v35  ;;  %4939 = vmatprep.subr.bf16.mxu0 %v5763_v33 }
 0x2ed   : > { %5156 = vmatpush3.bf16.msra.mxu1 %v5593_v43  ;;  %5171 = vmatprep.mubr.msk.bf16.mxu1 %vm5764_vm2, %v5763_v33  ;;  %v5648_v43 = vld [vmem:[%s6908_s4 + $0x2a8] sm:$0xff]  }
 0x2ee   : > { %5157 = vmatprep.subr.bf16.mxu1 %v5763_v33 }
 0x2ef   : > { %4940 = vmatpush3.bf16.msra.mxu0 %v5594_v36  ;;  %v5649_v36 = vld [vmem:[%s6908_s4 + $0x560] sm:$0xff]  }
 0x2f0   : > { %4941 = vmatprep.subr.bf16.mxu0 %v5763_v33 }
 0x2f1   : > { %5158 = vmatpush3.bf16.msra.mxu1 %v5595_v37  ;;  %v5650_v37 = vld [vmem:[%s6908_s4 + $0x2b0] sm:$0xff]  }
 0x2f2   : > { %5159 = vmatprep.subr.bf16.mxu1 %v5763_v33 }
 0x2f3   : > { %4942 = vmatpush3.bf16.msra.mxu0 %v5596_v38  ;;  %v5651_v38 = vld [vmem:[%s6908_s4 + $0x568] sm:$0xff]  }
 0x2f4   : > { %4943 = vmatprep.subr.bf16.mxu0 %v5763_v33 }
 0x2f5   : > { %5160 = vmatpush3.bf16.msra.mxu1 %v5597_v40  ;;  %v5652_v40 = vld [vmem:[%s6908_s4 + $0x2b8] sm:$0xff]  }
 0x2f6   : > { %5161 = vmatprep.subr.bf16.mxu1 %v5763_v33 }
 0x2f7   : > { %4944 = vmatpush3.bf16.msra.mxu0 %v5598_v42  ;;  %v5653_v42 = vld [vmem:[%s6908_s4 + $0x570] sm:$0xff]  }
 0x2f8   : > { %4945 = vmatprep.subr.bf16.mxu0 %v5763_v33 }
 0x2f9   : > { %5162 = vmatpush3.bf16.msra.mxu1 %v5599_v45  ;;  %v1922_v45 = vrot.slane %v6002_v46, 1 }
 0x2fa   : > { %5163 = vmatprep.subr.bf16.mxu1 %v5763_v33 }
 0x2fb   : > { %4946 = vmatpush3.bf16.msra.mxu0 %v5600_v47  ;;  %v5654_v47 = vld [vmem:[%s6908_s4 + $0x578] sm:$0xff]  }
 0x2fc   : > { %4947 = vmatprep.subr.bf16.mxu0 %v5763_v33 }
 0x2fd   : > { %5164 = vmatpush3.bf16.msra.mxu1 %v5601_v49  ;;  %v5655_v49 = vld [vmem:[%s6908_s4 + $0x580] sm:$0xff]  }
 0x2fe   : > { %5165 = vmatprep.subr.bf16.mxu1 %v5763_v33 }
 0x2ff   : > { %4948 = vmatpush3.bf16.msra.mxu0 %v5602_v50  ;;  %v5656_v50 = vld [vmem:[%s6908_s4 + $0x588] sm:$0xff]  }
 0x300   : > { %4949 = vmatprep.subr.bf16.mxu0 %v5763_v33 }
 0x301   : > { %5166 = vmatpush3.bf16.msra.mxu1 %v5603_v51  ;;  %v5657_v51 = vld [vmem:[%s6908_s4 + $0x590] sm:$0xff]  }
 0x302   : > { %5167 = vmatprep.subr.bf16.mxu1 %v5763_v33 }
 0x303   : > { %4950 = vmatpush3.bf16.msra.mxu0 %v5604_v52  ;;  %v5658_v52 = vld [vmem:[%s6908_s4 + $0x598] sm:$0xff]  }
 0x304   : > { %4955 = vmatprep.subr.bf16.mxu0 %v5763_v33 }
 0x305   : > { %5168 = vmatpush3.bf16.msra.mxu1 %v5605_v53  ;;  %v5659_v53 = vld [vmem:[%s6908_s4 + $0x5a0] sm:$0xff]  }
 0x306   : > { %4952 = vmatmul.mubr.bf16.vlgmr.msra.gmra.mrb[28].mxu0 %v1596_v55  ;;  %5169 = vmatprep.subr.bf16.mxu1 %v5763_v33  ;;  %v5661_v55 = vld [vmem:[%s6908_s4 + $0x5b0] sm:$0xff]  }
 0x307   : > { %4956 = vmatpush3.bf16.msra.mxu0 %v5606_v54  ;;  %4971 = vmatprep.mubr.msk.bf16.mxu0 %vm5764_vm2, %v5763_v33  ;;  %v5660_v54 = vld [vmem:[%s6908_s4 + $0x5a8] sm:$0xff]  }
 0x308   : > { %4957 = vmatprep.subr.bf16.mxu0 %v5763_v33 }
 0x309   : > { %5170 = vmatpush3.bf16.msra.mxu1 %v5607_v56  ;;  %v5662_v56 = vld [vmem:[%s6908_s4 + $0x5b8] sm:$0xff]  }
 0x30a   : > { %5175 = vmatprep.subr.bf16.mxu1 %v5763_v33 }
 0x30b   : > { %4958 = vmatpush3.bf16.msra.mxu0 %v5608_v57  ;;  %v5663_v57 = vld [vmem:[%s6908_s4 + $0x5c0] sm:$0xff]  }
 0x30c   : > { %5172 = vmatmul.mubr.bf16.vlgmr.msra.gmra.mrb[4].mxu1 %v2788_v58  ;;  %4959 = vmatprep.subr.bf16.mxu0 %v5763_v33  ;;  %v5664_v58 = vld [vmem:[%s6908_s4 + $0x5c8] sm:$0xff]  }
 0x30d   : > { %5176 = vmatpush3.bf16.msra.mxu1 %v5609_v0  ;;  %5191 = vmatprep.mubr.msk.bf16.mxu1 %vm5764_vm2, %v5763_v33  ;;  %v3220_v0 = vrot.slane %v6371_v41, 3  ;;  %v5666_v41 = vld [vmem:[%s6908_s4 + $0x5d8] sm:$0xff]  }
 0x30e   : > { %5177 = vmatprep.subr.bf16.mxu1 %v5763_v33 }
 0x30f   : > { %4960 = vmatpush3.bf16.msra.mxu0 %v5610_v59  ;;  %v5665_v59 = vld [vmem:[%s6908_s4 + $0x5d0] sm:$0xff]  }
 0x310   : > { %4961 = vmatprep.subr.bf16.mxu0 %v5763_v33 }
 0x311   : > { %5178 = vmatpush3.bf16.msra.mxu1 %v5611_v60  ;;  %v5667_v60 = vld [vmem:[%s6908_s4 + $0x5e0] sm:$0xff]  }
 0x312   : > { %5179 = vmatprep.subr.bf16.mxu1 %v5763_v33 }
 0x313   : > { %4962 = vmatpush3.bf16.msra.mxu0 %v5612_v61  ;;  %v5668_v61 = vld [vmem:[%s6908_s4 + $0x5e8] sm:$0xff]  }
 0x314   : > { %4963 = vmatprep.subr.bf16.mxu0 %v5763_v33 }
 0x315   : > { %5180 = vmatpush3.bf16.msra.mxu1 %v5613_v62  ;;  %v5669_v62 = vld [vmem:[%s6908_s4 + $0x5f0] sm:$0xff]  }
 0x316   : > { %5181 = vmatprep.subr.bf16.mxu1 %v5763_v33 }
 0x317   : > { %4964 = vmatpush3.bf16.msra.mxu0 %v5614_v63  ;;  %v5670_v63 = vld [vmem:[%s6908_s4 + $0x5f8] sm:$0xff]  }
 0x318   : > { %4965 = vmatprep.subr.bf16.mxu0 %v5763_v33 }
 0x319   : > { %5182 = vmatpush3.bf16.msra.mxu1 %v5615_v1  ;;  %v5671_v1 = vld [vmem:[%s6908_s4 + $0x600] sm:$0xff]  }
 0x31a   : > { %5183 = vmatprep.subr.bf16.mxu1 %v5763_v33 }
 0x31b   : > { %4966 = vmatpush3.bf16.msra.mxu0 %v5616_v2  ;;  %v3328_v2 = vrot.slane %v6444_v35, 3 }
 0x31c   : > { %4967 = vmatprep.subr.bf16.mxu0 %v5763_v33 }
 0x31d   : > { %5184 = vmatpush3.bf16.msra.mxu1 %v5617_v3  ;;  %v5672_v3 = vld [vmem:[%s6908_s4 + $0x608] sm:$0xff]  }
 0x31e   : > { %5185 = vmatprep.subr.bf16.mxu1 %v5763_v33 }
 0x31f   : > { %4968 = vmatpush3.bf16.msra.mxu0 %v5618_v4  ;;  %v5673_v4 = vld [vmem:[%s6908_s4 + $0x610] sm:$0xff]  }
 0x320   : > { %4969 = vmatprep.subr.bf16.mxu0 %v5763_v33 }
 0x321   : > { %5186 = vmatpush3.bf16.msra.mxu1 %v5619_v5  ;;  %v5675_v5 = vld [vmem:[%s6908_s4 + $0x620] sm:$0xff]  }
 0x322   : > { %5187 = vmatprep.subr.bf16.mxu1 %v5763_v33 }
 0x323   : > { %4970 = vmatpush3.bf16.msra.mxu0 %v5620_v6  ;;  %v5676_v6 = vld [vmem:[%s6908_s4 + $0x628] sm:$0xff]  }
 0x324   : > { %4975 = vmatprep.subr.bf16.mxu0 %v5763_v33 }
 0x325   : > { %5188 = vmatpush3.bf16.msra.mxu1 %v5621_v7  ;;  %v5677_v7 = vld [vmem:[%s6908_s4 + $0x630] sm:$0xff]  }
 0x326   : > { %4972 = vmatmul.mubr.bf16.vlgmr.msra.gmra.mrb[28].mxu0 %v6002_v46  ;;  %5189 = vmatprep.subr.bf16.mxu1 %v5763_v33  ;;  %v3112_v46 = vrot.slane %v6444_v35, 2  ;;  %v5674_v35 = vld [vmem:[%s6908_s4 + $0x618] sm:$0xff]  }
 0x327   : > { %4976 = vmatpush3.bf16.msra.mxu0 %v5622_v8  ;;  %4991 = vmatprep.mubr.msk.bf16.mxu0 %vm5764_vm2, %v5763_v33  ;;  %v5678_v8 = vld [vmem:[%s6908_s4 + $0x638] sm:$0xff]  }
 0x328   : > { %4977 = vmatprep.subr.bf16.mxu0 %v5763_v33 }
 0x329   : > { %5190 = vmatpush3.bf16.msra.mxu1 %v5623_v9  ;;  %v3419_v9 = vpack.c.bf16 %v6000_v44, %v6000_v44  ;;  %v5682_v44 = vld [vmem:[%s6910_s6 + $0x18] sm:$0xff]  }
 0x32a   : > { %5195 = vmatprep.subr.bf16.mxu1 %v5763_v33 }
 0x32b   : > { %4978 = vmatpush3.bf16.msra.mxu0 %v5624_v10  ;;  %v5679_v10 = vld [vmem:[%s6910_s6] sm:$0xff]  }
 0x32c   : > { %5192 = vmatmul.mubr.bf16.vlgmr.msra.gmra.mrb[4].mxu1 %v2896_v12  ;;  %4979 = vmatprep.subr.bf16.mxu0 %v5763_v33  ;;  %v5681_v12 = vld [vmem:[%s6910_s6 + $0x10] sm:$0xff]  }
 0x32d   : > { %5196 = vmatpush3.bf16.msra.mxu1 %v5625_v11  ;;  %5211 = vmatprep.mubr.msk.bf16.mxu1 %vm5764_vm2, %v5763_v33  ;;  %v5680_v11 = vld [vmem:[%s6910_s6 + $0x8] sm:$0xff]  }
 0x32e   : > { %5197 = vmatprep.subr.bf16.mxu1 %v5763_v33 }
 0x32f   : > { %4980 = vmatpush3.bf16.msra.mxu0 %v5626_v13  ;;  %v5683_v13 = vld [vmem:[%s6910_s6 + $0x20] sm:$0xff]  }
 0x330   : > { %4981 = vmatprep.subr.bf16.mxu0 %v5763_v33 }
 0x331   : > { %5198 = vmatpush3.bf16.msra.mxu1 %v5627_v14  ;;  %v5684_v14 = vld [vmem:[%s6910_s6 + $0x28] sm:$0xff]  }
 0x332   : > { %5199 = vmatprep.subr.bf16.mxu1 %v5763_v33 }
 0x333   : > { %4982 = vmatpush3.bf16.msra.mxu0 %v5628_v15  ;;  %v5685_v15 = vld [vmem:[%s6910_s6 + $0x30] sm:$0xff]  }
 0x334   : > { %4983 = vmatprep.subr.bf16.mxu0 %v5763_v33 }
 0x335   : > { %5200 = vmatpush3.bf16.msra.mxu1 %v5629_v16  ;;  %v5686_v16 = vld [vmem:[%s6910_s6 + $0x38] sm:$0xff]  }
 0x336   : > { %5201 = vmatprep.subr.bf16.mxu1 %v5763_v33 }
 0x337   : > { %4984 = vmatpush3.bf16.msra.mxu0 %v5630_v17 }
 0x338   : > { %4985 = vmatprep.subr.bf16.mxu0 %v5763_v33 }
 0x339   : > { %5202 = vmatpush3.bf16.msra.mxu1 %v5631_v18 }
 0x33a   : > { %5203 = vmatprep.subr.bf16.mxu1 %v5763_v33 }
 0x33b   : > { %4986 = vmatpush3.bf16.msra.mxu0 %v5632_v19 }
 0x33c   : > { %4987 = vmatprep.subr.bf16.mxu0 %v5763_v33 }
 0x33d   : > { %5204 = vmatpush3.bf16.msra.mxu1 %v5633_v20 }
 0x33e   : > { %5205 = vmatprep.subr.bf16.mxu1 %v5763_v33 }
 0x33f   : > { %4988 = vmatpush3.bf16.msra.mxu0 %v5634_v39  ;;  %v821_v39 = vld [vmem:[%s6909_s5] sm:$0x1] }
 0x340   : > { %4989 = vmatprep.subr.bf16.mxu0 %v5763_v33 }
 0x341   : > { %5206 = vmatpush3.bf16.msra.mxu1 %v5635_v21 }
 0x342   : > { %5207 = vmatprep.subr.bf16.mxu1 %v5763_v33 }
 0x343   : > { %4990 = vmatpush3.bf16.msra.mxu0 %v5636_v22 }
 0x344   : > { %4995 = vmatprep.subr.bf16.mxu0 %v5763_v33 }
 0x345   : > { %5208 = vmatpush3.bf16.msra.mxu1 %v5637_v23 }
 0x346   : > { %4992 = vmatmul.mubr.bf16.vlgmr.msra.gmra.mrb[28].mxu0 %v6011_v48  ;;  %5209 = vmatprep.subr.bf16.mxu1 %v5763_v33  ;;  %v5642_v48 = vld [vmem:[%s6908_s4 + $0x290] sm:$0xff]  }
 0x347   : > { %4996 = vmatpush3.bf16.msra.mxu0 %v5638_v24  ;;  %5011 = vmatprep.mubr.msk.bf16.mxu0 %vm5764_vm2, %v5763_v33 }
 0x348   : > { %4997 = vmatprep.subr.bf16.mxu0 %v5763_v33 }
 0x349   : > { %5210 = vmatpush3.bf16.msra.mxu1 %v5639_v25 }
 0x34a   : > { %5215 = vmatprep.subr.bf16.mxu1 %v5763_v33 }
 0x34b   : > { %4998 = vmatpush3.bf16.msra.mxu0 %v5640_v26 }
 0x34c   : > { %5212 = vmatmul.mubr.bf16.vlgmr.msra.gmra.mrb[4].mxu1 %v3004_v28  ;;  %4999 = vmatprep.subr.bf16.mxu0 %v5763_v33 }
 0x34d   : > { %5216 = vmatpush3.bf16.msra.mxu1 %v5641_v27  ;;  %5231 = vmatprep.mubr.msk.bf16.mxu1 %vm5764_vm2, %v5763_v33 }
 0x34e   : > { %5217 = vmatprep.subr.bf16.mxu1 %v5763_v33 }
 0x34f   : > { %5000 = vmatpush3.bf16.msra.mxu0 %v5642_v48 }
 0x350   : > { %5001 = vmatprep.subr.bf16.mxu0 %v5763_v33 }
 0x351   : > { %5218 = vmatpush3.bf16.msra.mxu1 %v5643_v29 }
 0x352   : > { %5219 = vmatprep.subr.bf16.mxu1 %v5763_v33 }
 0x353   : > { %5002 = vmatpush3.bf16.msra.mxu0 %v5644_v30 }
 0x354   : > { %5003 = vmatprep.subr.bf16.mxu0 %v5763_v33 }
 0x355   : > { %5220 = vmatpush3.bf16.msra.mxu1 %v5645_v31  ;;  %v5687_v31 = vld [vmem:[%s6912_s8] sm:$0xff]  }
 0x356   : > { %5221 = vmatprep.subr.bf16.mxu1 %v5763_v33 }
 0x357   : > { %5004 = vmatpush3.bf16.msra.mxu0 %v5646_v32  ;;  %v5688_v32 = vld [vmem:[%s6912_s8 + $0x8] sm:$0xff]  }
 0x358   : > { %5005 = vmatprep.subr.bf16.mxu0 %v5763_v33 }
 0x359   : > { %5222 = vmatpush3.bf16.msra.mxu1 %v5647_v34  ;;  %v5689_v34 = vld [vmem:[%s6912_s8 + $0x10] sm:$0xff]  }
 0x35a   : > { %5223 = vmatprep.subr.bf16.mxu1 %v5763_v33 }
 0x35b   : > { %5006 = vmatpush3.bf16.msra.mxu0 %v5648_v43  ;;  %v5690_v43 = vld [vmem:[%s6912_s8 + $0x18] sm:$0xff]  }
 0x35c   : > { %5007 = vmatprep.subr.bf16.mxu0 %v5763_v33 }
 0x35d   : > { %5224 = vmatpush3.bf16.msra.mxu1 %v5649_v36  ;;  %v5691_v36 = vld [vmem:[%s6912_s8 + $0x20] sm:$0xff]  }
 0x35e   : > { %5225 = vmatprep.subr.bf16.mxu1 %v5763_v33 }
 0x35f   : > { %5008 = vmatpush3.bf16.msra.mxu0 %v5650_v37  ;;  %v5692_v37 = vld [vmem:[%s6912_s8 + $0x28] sm:$0xff]  }
 0x360   : > { %5009 = vmatprep.subr.bf16.mxu0 %v5763_v33 }
 0x361   : > { %5226 = vmatpush3.bf16.msra.mxu1 %v5651_v38  ;;  %v5693_v38 = vld [vmem:[%s6912_s8 + $0x30] sm:$0xff]  }
 0x362   : > { %5227 = vmatprep.subr.bf16.mxu1 %v5763_v33 }
 0x363   : > { %5010 = vmatpush3.bf16.msra.mxu0 %v5652_v40  ;;  %v5694_v40 = vld [vmem:[%s6912_s8 + $0x38] sm:$0xff]  }
 0x364   : > { %5295 = vmatprep.subr.bf16.mxu0 %v5763_v33 }
 0x365   : > { %5228 = vmatpush3.bf16.msra.mxu1 %v5653_v42  ;;  %v3549_v42 = vld [vmem:[%s6911_s7] sm:$0x1] }
 0x366   : > { %5012 = vmatmul.mubr.bf16.vlgmr.msra.gmra.mrb[28].mxu0 %v1922_v45  ;;  %5229 = vmatprep.subr.bf16.mxu1 %v5763_v33 }
 0x367   : > { %5311 = vmatprep.mubr.msk.bf16.mxu0 %vm5764_vm2, %v5763_v33  ;;  %5296 = vmatpush3.bf16.msra.mxu0 %v5679_v10 }
 0x368   : > { %5297 = vmatprep.subr.bf16.mxu0 %v5763_v33 }
 0x369   : > { %5230 = vmatpush3.bf16.msra.mxu1 %v5654_v47 }
 0x36a   : > { %5235 = vmatprep.subr.bf16.mxu1 %v5763_v33 }
 0x36b   : > { %5298 = vmatpush3.bf16.msra.mxu0 %v5680_v11 }
 0x36c   : > { %5232 = vmatmul.mubr.bf16.vlgmr.msra.gmra.mrb[4].mxu1 %v3112_v46  ;;  %5299 = vmatprep.subr.bf16.mxu0 %v5763_v33 }
 0x36d   : > { %5236 = vmatpush3.bf16.msra.mxu1 %v5655_v49  ;;  %5251 = vmatprep.mubr.msk.bf16.mxu1 %vm5764_vm2, %v5763_v33 }
 0x36e   : > { %5237 = vmatprep.subr.bf16.mxu1 %v5763_v33 }
 0x36f   : > { %5300 = vmatpush3.bf16.msra.mxu0 %v5681_v12 }
 0x370   : > { %5301 = vmatprep.subr.bf16.mxu0 %v5763_v33 }
 0x371   : > { %5238 = vmatpush3.bf16.msra.mxu1 %v5656_v50 }
 0x372   : > { %5239 = vmatprep.subr.bf16.mxu1 %v5763_v33 }
 0x373   : > { %5302 = vmatpush3.bf16.msra.mxu0 %v5682_v44 }
 0x374   : > { %5303 = vmatprep.subr.bf16.mxu0 %v5763_v33 }
 0x375   : > { %5240 = vmatpush3.bf16.msra.mxu1 %v5657_v51 }
 0x376   : > { %5241 = vmatprep.subr.bf16.mxu1 %v5763_v33 }
 0x377   : > { %5304 = vmatpush3.bf16.msra.mxu0 %v5683_v13 }
 0x378   : > { %5305 = vmatprep.subr.bf16.mxu0 %v5763_v33 }
 0x379   : > { %5242 = vmatpush3.bf16.msra.mxu1 %v5658_v52 }
 0x37a   : > { %5243 = vmatprep.subr.bf16.mxu1 %v5763_v33 }
 0x37b   : > { %5306 = vmatpush3.bf16.msra.mxu0 %v5684_v14 }
 0x37c   : > { %5307 = vmatprep.subr.bf16.mxu0 %v5763_v33 }
 0x37d   : > { %5244 = vmatpush3.bf16.msra.mxu1 %v5659_v53 }
 0x37e   : > { %5245 = vmatprep.subr.bf16.mxu1 %v5763_v33 }
 0x37f   : > { %5308 = vmatpush3.bf16.msra.mxu0 %v5685_v15 }
 0x380   : > { %5309 = vmatprep.subr.bf16.mxu0 %v5763_v33 }
 0x381   : > { %5246 = vmatpush3.bf16.msra.mxu1 %v5660_v54 }
 0x382   : > { %5247 = vmatprep.subr.bf16.mxu1 %v5763_v33 }
 0x383   : > { %5310 = vmatpush3.bf16.msra.mxu0 %v5686_v16 }
 0x384   : > { %5315 = vmatprep.subr.bf16.mxu0 %v5763_v33 }
 0x385   : > { %5248 = vmatpush3.bf16.msra.mxu1 %v5661_v55 }
 0x386   : > { %5249 = vmatprep.subr.bf16.mxu1 %v5763_v33 }
 0x389   : > { %5250 = vmatpush3.bf16.msra.mxu1 %v5662_v56 }
 0x38a   : > { %5255 = vmatprep.subr.bf16.mxu1 %v5763_v33 }
 0x38c   : > { %5252 = vmatmul.mubr.bf16.vlgmr.msra.gmra.mrb[4].mxu1 %v3220_v0 }
 0x38d   : > { %5256 = vmatpush3.bf16.msra.mxu1 %v5663_v57  ;;  %5271 = vmatprep.mubr.msk.bf16.mxu1 %vm5764_vm2, %v5763_v33  ;;  %v3661_v57 = vld [vmem:[%s6913_s9] sm:$0x1] }
 0x38e   : > { %5257 = vmatprep.subr.bf16.mxu1 %v5763_v33 }
 0x391   : > { %5258 = vmatpush3.bf16.msra.mxu1 %v5664_v58 }
 0x392   : > { %5259 = vmatprep.subr.bf16.mxu1 %v5763_v33 }
 0x395   : > { %5260 = vmatpush3.bf16.msra.mxu1 %v5665_v59 }
 0x396   : > { %5261 = vmatprep.subr.bf16.mxu1 %v5763_v33 }
 0x399   : > { %5262 = vmatpush3.bf16.msra.mxu1 %v5666_v41 }
 0x39a   : > { %5263 = vmatprep.subr.bf16.mxu1 %v5763_v33 }
 0x39d   : > { %5264 = vmatpush3.bf16.msra.mxu1 %v5667_v60 }
 0x39e   : > { %5265 = vmatprep.subr.bf16.mxu1 %v5763_v33 }
 0x3a1   : > { %5266 = vmatpush3.bf16.msra.mxu1 %v5668_v61 }
 0x3a2   : > { %5267 = vmatprep.subr.bf16.mxu1 %v5763_v33 }
 0x3a5   : > { %5268 = vmatpush3.bf16.msra.mxu1 %v5669_v62 }
 0x3a6   : > { %5269 = vmatprep.subr.bf16.mxu1 %v5763_v33 }
 0x3a9   : > { %5270 = vmatpush3.bf16.msra.mxu1 %v5670_v63 }
 0x3aa   : > { %5275 = vmatprep.subr.bf16.mxu1 %v5763_v33 }
 0x3ac   : > { %5272 = vmatmul.mubr.bf16.vlgmr.msra.gmra.mrb[4].mxu1 %v3328_v2 }
 0x3ad   : > { %5276 = vmatpush3.bf16.msra.mxu1 %v5671_v1  ;;  %5291 = vmatprep.mubr.msk.bf16.mxu1 %vm5764_vm2, %v5763_v33 }
 0x3ae   : > { %5277 = vmatprep.subr.bf16.mxu1 %v5763_v33 }
 0x3b1   : > { %5278 = vmatpush3.bf16.msra.mxu1 %v5672_v3 }
 0x3b2   : > { %5279 = vmatprep.subr.bf16.mxu1 %v5763_v33 }
 0x3b5   : > { %5280 = vmatpush3.bf16.msra.mxu1 %v5673_v4 }
 0x3b6   : > { %5281 = vmatprep.subr.bf16.mxu1 %v5763_v33 }
 0x3b9   : > { %5282 = vmatpush3.bf16.msra.mxu1 %v5674_v35 }
 0x3ba   : > { %5283 = vmatprep.subr.bf16.mxu1 %v5763_v33 }
 0x3bd   : > { %5284 = vmatpush3.bf16.msra.mxu1 %v5675_v5 }
 0x3be   : > { %5285 = vmatprep.subr.bf16.mxu1 %v5763_v33 }
 0x3c1   : > { %5286 = vmatpush3.bf16.msra.mxu1 %v5676_v6 }
 0x3c2   : > { %5287 = vmatprep.subr.bf16.mxu1 %v5763_v33 }
 0x3c5   : > { %5288 = vmatpush3.bf16.msra.mxu1 %v5677_v7 }
 0x3c6   : > { %5289 = vmatprep.subr.bf16.mxu1 %v5763_v33 }
 0x3c9   : > { %5290 = vmatpush3.bf16.msra.mxu1 %v5678_v8 }
 0x3cc   : > { %5292 = vmatmul.mubr.bf16.vlgmr.msra.gmra.mrb[4].mxu1 %v3419_v9 }
 0x439   : > { %v2006_v17 = vpop.f32.mrb[28].mxu0 }
 0x43a   : > { %v5013_v18 = vpop.f32.mrb[29].mxu0  ;;  %v5335_v21 = vadd.f32 %v2006_v17, %v821_v39 }
 0x43b   : > { %v2009_v19 = vpop.f32.mrb[30].mxu0 }
 0x43c   : > { %v5014_v20 = vpop.f32.mrb[31].mxu0 }
 0x49f   : > { %v3519_v22 = vpop.f32.mrb[4].mxu1 }
 0x4a0   : > { %v5336_v23 = vadd.f32 %v5335_v21, %v3519_v22  ;;  %v5293_v24 = vpop.f32.mrb[5].mxu1 }
 0x4a1   : > { %v3522_v25 = vpop.f32.mrb[6].mxu1 }
 0x4a2   : > { %v4447_v26 = vmul.f32 -1.442695, %v5336_v23  ;;  %v5294_v27 = vpop.f32.mrb[7].mxu1 }
 0x4a4   : > { %5747 = vpow2.f32 %v4447_v26 }
 0x4ae   : > { %v5748_v28 = vpop.eup %5747 }
 0x4af   : > { %v3529_v48 = vadd.f32 1.0, %v5748_v28 }
 0x4b1   : > { %5749 = vrcp.f32 %v3529_v48 }
 0x4bb   : > { %v5750_v29 = vpop.eup %5749 }
 0x4bc   : > { %v3532_v30 = vpack.c.bf16 %v5750_v29, %v5750_v29 }
 0x4be   : > { %5312 = vmatmul.mubr.bf16.vlgmr.msra.gmra.mrb[32].mxu0 %v3532_v30 }
 0x4bf   : > { %5331 = vmatprep.mubr.msk.bf16.mxu0 %vm5764_vm2, %v5763_v33  ;;  %5316 = vmatpush3.bf16.msra.mxu0 %v5687_v31 }
 0x4c0   : > { %5317 = vmatprep.subr.bf16.mxu0 %v5763_v33 }
 0x4c3   : > { %5318 = vmatpush3.bf16.msra.mxu0 %v5688_v32 }
 0x4c4   : > { %5319 = vmatprep.subr.bf16.mxu0 %v5763_v33 }
 0x4c7   : > { %5320 = vmatpush3.bf16.msra.mxu0 %v5689_v34 }
 0x4c8   : > { %5321 = vmatprep.subr.bf16.mxu0 %v5763_v33 }
 0x4cb   : > { %5322 = vmatpush3.bf16.msra.mxu0 %v5690_v43 }
 0x4cc   : > { %5323 = vmatprep.subr.bf16.mxu0 %v5763_v33 }
 0x4cf   : > { %5324 = vmatpush3.bf16.msra.mxu0 %v5691_v36 }
 0x4d0   : > { %5325 = vmatprep.subr.bf16.mxu0 %v5763_v33 }
 0x4d3   : > { %5326 = vmatpush3.bf16.msra.mxu0 %v5692_v37 }
 0x4d4   : > { %5327 = vmatprep.subr.bf16.mxu0 %v5763_v33 }
 0x4d7   : > { %5328 = vmatpush3.bf16.msra.mxu0 %v5693_v38 }
 0x4d8   : > { %5329 = vmatprep.subr.bf16.mxu0 %v5763_v33  ;;  %v3750_v33 = vlaneseq }
 0x4da   : > { %v3751_v56 = vshrl.u32 %v3750_v33, 7 }
 0x4db   : > { %5330 = vmatpush3.bf16.msra.mxu0 %v5694_v40 }
 0x4dc   : > { %v3752_v0 = vsub.s32 0, %v3751_v56 }
 0x591   : > { %v3632_v45 = vpop.f32.mrb[32].mxu0 }
 0x592   : > { %v3633_v47 = vadd.f32 %v3632_v45, %v3549_v42  ;;  %v5313_v49 = vpop.f32.mrb[33].mxu0 }
 0x593   : > { %v3635_v46 = vpop.f32.mrb[34].mxu0 }
 0x594   : > { %v4456_v50 = vmul.f32 -1.442695, %v3633_v47  ;;  %v5314_v51 = vpop.f32.mrb[35].mxu0 }
 0x596   : > { %5751 = vpow2.f32 %v4456_v50 }
 0x5a0   : > { %v5752_v52 = vpop.eup %5751 }
 0x5a1   : > { %v3641_v53 = vadd.f32 1.0, %v5752_v52 }
 0x5a3   : > { %5753 = vrcp.f32 %v3641_v53 }
 0x5ad   : > { %v5754_v54 = vpop.eup %5753 }
 0x5ae   : > { %v3644_v55 = vpack.c.bf16 %v5754_v54, %v5754_v54 }
 0x5b0   : > { %5332 = vmatmul.mubr.bf16.vlgmr.msra.gmra.mrb[36].mxu0 %v3644_v55 }
 0x683   : > { %v3744_v58 = vpop.f32.mrb[36].mxu0 }
 0x684   : > { %v3745_v59 = vadd.f32 %v3744_v58, %v3661_v57  ;;  %v5333_v41 = vpop.f32.mrb[37].mxu0 }
 0x685   : > { %v3747_v60 = vpop.f32.mrb[38].mxu0 }
 0x686   : > { %v3753_v61 = vrot.slane %v3745_v59, %v3752_v0  ;;  %v5334_v62 = vpop.f32.mrb[39].mxu0 }
 0x688   : > { %3754 = vst [vmem:[%s357_s30] sm:$0xff] %v3753_v61 }
 0x689 PF: > { %s20_s13 = sadd.s32 1, %s5761_s13  }
 0x68a   : > { %p17_p4 = scmp.ge.s32.totalorder %s20_s13, 4  }
 0x68c   :  { %19 = sbr.rel (!%p17_p4) target bundleno = 1 (0x1), region = 114 }

</bundles_post_ra>
